<compile_context>
chip_gen: v5e
topology: v5e:2x2
jax: 0.10.0
libtpu: 0.0.40
codegen_flags: <defaults>
</compile_context>

<pallas_src>
import functools

import jax
import jax.numpy as jnp
from jax.experimental import pallas as pl
from jax.experimental.pallas import tpu as pltpu


# Order of the stacked-weight operands passed to the fused kernel.
WEIGHT_KEYS = (
    "Wq_m", "Wk_m", "Wv_m", "Wo_m", "bo_m", "lnm_g", "lnm_b",
    "Wq_c", "Wk_c", "Wv_c", "Wo_c", "bo_c", "ln1_g", "ln1_b",
    "W1", "b1", "W2", "b2", "ln2_g", "ln2_b",
    "Wout_pad", "bout_pad",
)
_MATMUL_KEYS = frozenset(
    {"Wq_m", "Wk_m", "Wv_m", "Wo_m", "Wq_c", "Wk_c", "Wv_c", "Wo_c", "W1", "W2"})


# ----------------------------------------------------------------------------
# Fully fused decoder kernel (all layers + output projection; one batch element
# per grid step)
# ----------------------------------------------------------------------------

def _decoder_kernel(
    x_ref, ek_ref, ev_ref, tmask_ref, smask_ref,
    wq_m_ref, wk_m_ref, wv_m_ref, wo_m_ref, bo_m_ref, lnm_g_ref, lnm_b_ref,
    wq_c_ref, wk_c_ref, wv_c_ref, wo_c_ref, bo_c_ref, ln1_g_ref, ln1_b_ref,
    w1_ref, b1_ref, w2_ref, b2_ref, ln2_g_ref, ln2_b_ref,
    wout_ref, bout_ref,
    o_ref, *, heads, num_layers, eps):
    _, L, E = x_ref.shape
    D = E // heads
    f32 = jnp.float32
    bf16 = jnp.bfloat16

    x2 = x_ref[0]              # [L, E]  current decoder state
    ek2 = ek_ref[0]            # [L, E]  enc_key_out
    ev2 = ev_ref[0]            # [L, E]  enco_values_out
    tmask = tmask_ref[0, 0]    # [L, L]
    smask = smask_ref[0, 0]    # [1, L]

    def layernorm(y, g, b):
        mu = jnp.mean(y, axis=-1, keepdims=True)
        var = jnp.mean((y - mu) ** 2, axis=-1, keepdims=True)
        return (y - mu) * jax.lax.rsqrt(var + eps) * g + b

    def heads_view(y):                      # [L, E] -> [H, L, D]
        return jnp.swapaxes(y.reshape(L, heads, D), 0, 1)

    def mha(q_in, k_in, v_in, wq, wk, wv, wo, bo, mask):
        # Per-head shared [D,D] projections pre-expanded into block-diag [E,E] bf16
        # weights; 1/sqrt(embed_size) is already folded into `wq`.
        qh = heads_view(jnp.dot(q_in.astype(bf16), wq, preferred_element_type=f32))
        kh = heads_view(jnp.dot(k_in.astype(bf16), wk, preferred_element_type=f32))
        vh = heads_view(jnp.dot(v_in.astype(bf16), wv, preferred_element_type=f32))
        energy = jnp.einsum("hqd,hkd->hqk", qh, kh, preferred_element_type=f32)
        # masked_fill(mask == 0, -1e20): scale is already in `energy`; the un-scaled
        # sentinel still underflows to 0 after exp, matching the source semantics.
        energy = jnp.where(mask == 0, f32(-1e20), energy)
        emax = jnp.max(energy, axis=-1, keepdims=True)
        p = jnp.exp(energy - emax)
        denom = jnp.sum(p, axis=-1, keepdims=True)
        attn = p * pl.reciprocal(denom, approx=True)
        ctx = jnp.einsum("hqk,hkd->hqd", attn, vh, preferred_element_type=f32)
        ctx2 = jnp.swapaxes(ctx, 0, 1).reshape(L, E)
        return jnp.dot(ctx2.astype(bf16), wo, preferred_element_type=f32) + bo

    for l in range(num_layers):
        # ---- masked self-attention: values = keys = query = x, mask = target_mask ----
        ao = mha(x2, x2, x2, wq_m_ref[l], wk_m_ref[l], wv_m_ref[l],
                 wo_m_ref[l], bo_m_ref[l], tmask)
        q_state = layernorm(ao + x2, lnm_g_ref[l], lnm_b_ref[l])     # dropout = id

        # ---- cross attention (source arg order: values=q_state, keys=ev, query=ek) ----
        co = mha(ek2, ev2, q_state, wq_c_ref[l], wk_c_ref[l], wv_c_ref[l],
                 wo_c_ref[l], bo_c_ref[l], smask)
        xb = layernorm(co + ek2, ln1_g_ref[l], ln1_b_ref[l])          # residual = query = ek

        # ---- feed-forward + residual + LN ----
        h = jnp.maximum(
            jnp.dot(xb.astype(bf16), w1_ref[l], preferred_element_type=f32) + b1_ref[l],
            0.0)
        h = jnp.dot(h.astype(bf16), w2_ref[l], preferred_element_type=f32) + b2_ref[l]
        x2 = layernorm(h + xb, ln2_g_ref[l], ln2_b_ref[l])            # dropout = id

    # ---- final vocab projection (lane-dense: padded to a multiple of 128) ----
    logits = (jnp.dot(x2.astype(bf16), wout_ref[...], preferred_element_type=f32)
              + bout_ref[...])
    o_ref[0] = logits.astype(o_ref.dtype)


def decoder_pallas(x, ek, ev, tmask, smask, fp, *, heads, num_layers, eps=1e-5):
    N, L, E = x.shape
    Vp = fp["Wout_pad"].shape[1]
    weights = [fp[k] for k in WEIGHT_KEYS]

    def batch_spec(shape):
        nd = len(shape)
        return pl.BlockSpec((1,) + tuple(shape[1:]),
                            lambda b, _n=nd: (b,) + (0,) * (_n - 1))

    def full_spec(arr):
        nd = arr.ndim
        return pl.BlockSpec(tuple(arr.shape), lambda b, _n=nd: (0,) * _n)

    in_specs = ([batch_spec(x.shape), batch_spec(ek.shape), batch_spec(ev.shape),
                 batch_spec(tmask.shape), batch_spec(smask.shape)]
                + [full_spec(w) for w in weights])
    out_specs = pl.BlockSpec((1, L, Vp), lambda b: (b, 0, 0))

    kernel = functools.partial(_decoder_kernel, heads=heads,
                               num_layers=num_layers, eps=eps)
    return pl.pallas_call(
        kernel,
        grid=(N,),
        in_specs=in_specs,
        out_specs=out_specs,
        out_shape=jax.ShapeDtypeStruct((N, L, Vp), jnp.float32),
        compiler_params=pltpu.CompilerParams(
            dimension_semantics=("parallel",)),   # batch split across both TCs on v7x
    )(x, ek, ev, tmask, smask, *weights)


# ----------------------------------------------------------------------------
# Forward pass (only the embedding gather stays in XLA)
# ----------------------------------------------------------------------------

def decoder_fwd(fparams, x_ids, enc_key_out, enco_values_out, src_mask,
                target_mask, heads):
    N, seq_length = x_ids.shape
    positions = jnp.broadcast_to(jnp.arange(seq_length), (N, seq_length))
    # NOTE: source applies word_embedding to positions (position_embedding unused);
    # reproduced faithfully.  dropout = identity (inference).
    # TODO(synk): embedding gather stays in XLA (tiny; no Pallas gather needed here).
    x = fparams["word_emb"][x_ids] + fparams["word_emb"][positions]

    tmask = target_mask.astype(jnp.float32)   # [N, 1, L, L]
    smask = src_mask.astype(jnp.float32)      # [N, 1, 1, L]

    num_layers = fparams["Wq_m"].shape[0]
    out_pad = decoder_pallas(x, enc_key_out, enco_values_out, tmask, smask,
                             fparams, heads=heads, num_layers=num_layers)
    V = fparams["vocab_size"]
    return out_pad[:, :, :V]


# ----------------------------------------------------------------------------
# Deterministic parameter initialization + one-time fusion prep
# ----------------------------------------------------------------------------

def _init_linear(key, fan_in, fan_out, bias=True):
    k1, k2 = jax.random.split(key)
    W = jax.random.normal(k1, (fan_in, fan_out), jnp.float32) * 0.05
    b = jax.random.normal(k2, (fan_out,), jnp.float32) * 0.05 if bias else None
    return W, b


def _init_self_attention(key, embed_size, heads):
    hd = embed_size // heads
    ks = jax.random.split(key, 4)
    Wv, _ = _init_linear(ks[0], hd, hd, bias=False)
    Wk, _ = _init_linear(ks[1], hd, hd, bias=False)
    Wq, _ = _init_linear(ks[2], hd, hd, bias=False)
    Wo, bo = _init_linear(ks[3], embed_size, embed_size, bias=True)
    return dict(Wv=Wv, Wk=Wk, Wq=Wq, Wo=Wo, bo=bo)


def _init_transformer_block(key, embed_size, heads, forward_expansion):
    ks = jax.random.split(key, 3)
    attn = _init_self_attention(ks[0], embed_size, heads)
    W1, b1 = _init_linear(ks[1], embed_size, forward_expansion * embed_size)
    W2, b2 = _init_linear(ks[2], forward_expansion * embed_size, embed_size)
    return dict(attn=attn,
                ln1_g=jnp.ones((embed_size,), jnp.float32),
                ln1_b=jnp.zeros((embed_size,), jnp.float32),
                ln2_g=jnp.ones((embed_size,), jnp.float32),
                ln2_b=jnp.zeros((embed_size,), jnp.float32),
                W1=W1, b1=b1, W2=W2, b2=b2)


def _init_decoder_block(key, embed_size, heads, forward_expansion):
    ks = jax.random.split(key, 2)
    return dict(mask_attn=_init_self_attention(ks[0], embed_size, heads),
                ln_g=jnp.ones((embed_size,), jnp.float32),
                ln_b=jnp.zeros((embed_size,), jnp.float32),
                tblock=_init_transformer_block(ks[1], embed_size, heads,
                                               forward_expansion))


def init_decoder(key, target_vocab_size, embed_size, num_layers, heads,
                 forward_expansion, max_length):
    ks = jax.random.split(key, num_layers + 3)
    word_emb = jax.random.normal(ks[0], (target_vocab_size, embed_size),
                                 jnp.float32) * 0.05
    pos_emb = jax.random.normal(ks[1], (max_length, embed_size),
                                jnp.float32) * 0.05  # unused (as in source)
    layers = [_init_decoder_block(ks[2 + i], embed_size, heads, forward_expansion)
              for i in range(num_layers)]
    Wout, bout = _init_linear(ks[-1], embed_size, target_vocab_size)
    return dict(word_emb=word_emb, pos_emb=pos_emb, layers=layers,
                Wout=Wout, bout=bout)


def _expand_head_weight(W, heads):
    # per-head [D, D] linear shared across heads == block-diag [E, E] on x @ W layout
    return jnp.kron(jnp.eye(heads, dtype=W.dtype), W)


def prepare_params(params, heads):
    """One-time prep: block-diag per-head Q/K/V weights, fold 1/sqrt(E) into Q,
    stack per-layer weights on a leading layer axis (bf16 for matmul weights),
    pad the vocab projection to a lane-dense 128-wide output."""
    E = params["word_emb"].shape[1]
    inv_scale = 1.0 / (float(E) ** 0.5)   # source divides energy by sqrt(embed_size)

    per = {k: [] for k in WEIGHT_KEYS[:-2]}
    for lp in params["layers"]:
        ma = lp["mask_attn"]
        tb = lp["tblock"]
        ca = tb["attn"]
        per["Wq_m"].append(_expand_head_weight(ma["Wq"], heads) * inv_scale)
        per["Wk_m"].append(_expand_head_weight(ma["Wk"], heads))
        per["Wv_m"].append(_expand_head_weight(ma["Wv"], heads))
        per["Wo_m"].append(ma["Wo"])
        per["bo_m"].append(ma["bo"].reshape(1, E))
        per["lnm_g"].append(lp["ln_g"].reshape(1, E))
        per["lnm_b"].append(lp["ln_b"].reshape(1, E))
        per["Wq_c"].append(_expand_head_weight(ca["Wq"], heads) * inv_scale)
        per["Wk_c"].append(_expand_head_weight(ca["Wk"], heads))
        per["Wv_c"].append(_expand_head_weight(ca["Wv"], heads))
        per["Wo_c"].append(ca["Wo"])
        per["bo_c"].append(ca["bo"].reshape(1, E))
        per["ln1_g"].append(tb["ln1_g"].reshape(1, E))
        per["ln1_b"].append(tb["ln1_b"].reshape(1, E))
        per["W1"].append(tb["W1"])
        per["b1"].append(tb["b1"].reshape(1, -1))
        per["W2"].append(tb["W2"])
        per["b2"].append(tb["b2"].reshape(1, E))
        per["ln2_g"].append(tb["ln2_g"].reshape(1, E))
        per["ln2_b"].append(tb["ln2_b"].reshape(1, E))

    fused = {}
    for k, vals in per.items():
        stacked = jnp.stack(vals)
        fused[k] = stacked.astype(jnp.bfloat16) if k in _MATMUL_KEYS else stacked

    V = params["Wout"].shape[1]
    Vp = ((V + 127) // 128) * 128                                 # lane-dense output
    fused["Wout_pad"] = (jnp.zeros((E, Vp), jnp.float32)
                         .at[:, :V].set(params["Wout"]).astype(jnp.bfloat16))
    fused["bout_pad"] = jnp.zeros((1, Vp), jnp.float32).at[:, :V].set(params["bout"])
    fused["word_emb"] = params["word_emb"]
    fused["vocab_size"] = V
    return fused


# ----------------------------------------------------------------------------
# Main
# ----------------------------------------------------------------------------

if __name__ == "__main__":
    target_vocab_size = 50
    embed_size = 32
    num_layers = 2
    heads = 4
    forward_expansion = 4
    max_length = 16
    N, seq = 2, 8

    key = jax.random.PRNGKey(0)
    kp, kx, ke1, ke2 = jax.random.split(key, 4)

    params = init_decoder(kp, target_vocab_size, embed_size, num_layers, heads,
                          forward_expansion, max_length)
    fparams = prepare_params(params, heads)

    x_ids = jax.random.randint(kx, (N, seq), 0, target_vocab_size)
    enc_key_out = jax.random.normal(ke1, (N, seq, embed_size), jnp.float32)
    enco_values_out = jax.random.normal(ke2, (N, seq, embed_size), jnp.float32)
    src_mask = jnp.ones((N, 1, 1, seq), jnp.float32)
    target_mask = jnp.tril(jnp.ones((seq, seq), jnp.float32))[None, None, :, :]
    target_mask = jnp.broadcast_to(target_mask, (N, 1, seq, seq))

    out = decoder_fwd(fparams, x_ids, enc_key_out, enco_values_out,
                      src_mask, target_mask, heads)
    out = jax.block_until_ready(out)
    assert out.shape == (N, seq, target_vocab_size), out.shape
    assert bool(jnp.all(jnp.isfinite(out)))
    print("KERNEL_OK")
</pallas_src>

<mosaic_0001>
module attributes {stable_mosaic.version = 11 : i64} {
  func.func @_decoder_kernel(%arg0: i32, %arg1: memref<1x8x32xf32, #tpu.memory_space<vmem>>, %arg2: memref<1x8x32xf32, #tpu.memory_space<vmem>>, %arg3: memref<1x8x32xf32, #tpu.memory_space<vmem>>, %arg4: memref<1x1x8x8xf32, #tpu.memory_space<vmem>>, %arg5: memref<1x1x1x8xf32, #tpu.memory_space<vmem>>, %arg6: memref<2x32x32xbf16, #tpu.memory_space<vmem>>, %arg7: memref<2x32x32xbf16, #tpu.memory_space<vmem>>, %arg8: memref<2x32x32xbf16, #tpu.memory_space<vmem>>, %arg9: memref<2x32x32xbf16, #tpu.memory_space<vmem>>, %arg10: memref<2x1x32xf32, #tpu.memory_space<vmem>>, %arg11: memref<2x1x32xf32, #tpu.memory_space<vmem>>, %arg12: memref<2x1x32xf32, #tpu.memory_space<vmem>>, %arg13: memref<2x32x32xbf16, #tpu.memory_space<vmem>>, %arg14: memref<2x32x32xbf16, #tpu.memory_space<vmem>>, %arg15: memref<2x32x32xbf16, #tpu.memory_space<vmem>>, %arg16: memref<2x32x32xbf16, #tpu.memory_space<vmem>>, %arg17: memref<2x1x32xf32, #tpu.memory_space<vmem>>, %arg18: memref<2x1x32xf32, #tpu.memory_space<vmem>>, %arg19: memref<2x1x32xf32, #tpu.memory_space<vmem>>, %arg20: memref<2x32x128xbf16, #tpu.memory_space<vmem>>, %arg21: memref<2x1x128xf32, #tpu.memory_space<vmem>>, %arg22: memref<2x128x32xbf16, #tpu.memory_space<vmem>>, %arg23: memref<2x1x32xf32, #tpu.memory_space<vmem>>, %arg24: memref<2x1x32xf32, #tpu.memory_space<vmem>>, %arg25: memref<2x1x32xf32, #tpu.memory_space<vmem>>, %arg26: memref<32x128xbf16, #tpu.memory_space<vmem>>, %arg27: memref<1x128xf32, #tpu.memory_space<vmem>>, %arg28: memref<1x8x128xf32, #tpu.memory_space<vmem>>) attributes {dimension_semantics = [#tpu.dimension_semantics<parallel>], iteration_bounds = array<i64: 2>, scalar_prefetch = 0 : i64, scratch_operands = 0 : i64, tpu.core_type = #tpu.core_type<tc>, window_params = [{transform_indices = @transform_0, window_bounds = array<i64: 1, 8, 32>}, {transform_indices = @transform_1, window_bounds = array<i64: 1, 8, 32>}, {transform_indices = @transform_2, window_bounds = array<i64: 1, 8, 32>}, {transform_indices = @transform_3, window_bounds = array<i64: 1, 1, 8, 8>}, {transform_indices = @transform_4, window_bounds = array<i64: 1, 1, 1, 8>}, {pipeline_mode = #tpu.pipeline_mode<synchronous>, transform_indices = @transform_5, window_bounds = array<i64: 2, 32, 32>}, {pipeline_mode = #tpu.pipeline_mode<synchronous>, transform_indices = @transform_6, window_bounds = array<i64: 2, 32, 32>}, {pipeline_mode = #tpu.pipeline_mode<synchronous>, transform_indices = @transform_7, window_bounds = array<i64: 2, 32, 32>}, {pipeline_mode = #tpu.pipeline_mode<synchronous>, transform_indices = @transform_8, window_bounds = array<i64: 2, 32, 32>}, {pipeline_mode = #tpu.pipeline_mode<synchronous>, transform_indices = @transform_9, window_bounds = array<i64: 2, 1, 32>}, {pipeline_mode = #tpu.pipeline_mode<synchronous>, transform_indices = @transform_10, window_bounds = array<i64: 2, 1, 32>}, {pipeline_mode = #tpu.pipeline_mode<synchronous>, transform_indices = @transform_11, window_bounds = array<i64: 2, 1, 32>}, {pipeline_mode = #tpu.pipeline_mode<synchronous>, transform_indices = @transform_12, window_bounds = array<i64: 2, 32, 32>}, {pipeline_mode = #tpu.pipeline_mode<synchronous>, transform_indices = @transform_13, window_bounds = array<i64: 2, 32, 32>}, {pipeline_mode = #tpu.pipeline_mode<synchronous>, transform_indices = @transform_14, window_bounds = array<i64: 2, 32, 32>}, {pipeline_mode = #tpu.pipeline_mode<synchronous>, transform_indices = @transform_15, window_bounds = array<i64: 2, 32, 32>}, {pipeline_mode = #tpu.pipeline_mode<synchronous>, transform_indices = @transform_16, window_bounds = array<i64: 2, 1, 32>}, {pipeline_mode = #tpu.pipeline_mode<synchronous>, transform_indices = @transform_17, window_bounds = array<i64: 2, 1, 32>}, {pipeline_mode = #tpu.pipeline_mode<synchronous>, transform_indices = @transform_18, window_bounds = array<i64: 2, 1, 32>}, {pipeline_mode = #tpu.pipeline_mode<synchronous>, transform_indices = @transform_19, window_bounds = array<i64: 2, 32, 128>}, {pipeline_mode = #tpu.pipeline_mode<synchronous>, transform_indices = @transform_20, window_bounds = array<i64: 2, 1, 128>}, {pipeline_mode = #tpu.pipeline_mode<synchronous>, transform_indices = @transform_21, window_bounds = array<i64: 2, 128, 32>}, {pipeline_mode = #tpu.pipeline_mode<synchronous>, transform_indices = @transform_22, window_bounds = array<i64: 2, 1, 32>}, {pipeline_mode = #tpu.pipeline_mode<synchronous>, transform_indices = @transform_23, window_bounds = array<i64: 2, 1, 32>}, {pipeline_mode = #tpu.pipeline_mode<synchronous>, transform_indices = @transform_24, window_bounds = array<i64: 2, 1, 32>}, {pipeline_mode = #tpu.pipeline_mode<synchronous>, transform_indices = @transform_25, window_bounds = array<i64: 32, 128>}, {pipeline_mode = #tpu.pipeline_mode<synchronous>, transform_indices = @transform_26, window_bounds = array<i64: 1, 128>}, {transform_indices = @transform_27, window_bounds = array<i64: 1, 8, 128>}]} {
    %c0 = arith.constant 0 : index
    %c0_0 = arith.constant 0 : index
    %c0_1 = arith.constant 0 : index
    %0 = vector.load %arg1[%c0, %c0_0, %c0_1] : memref<1x8x32xf32, #tpu.memory_space<vmem>>, vector<1x8x32xf32>
    %1 = vector.shape_cast %0 : vector<1x8x32xf32> to vector<8x32xf32>
    %c0_2 = arith.constant 0 : index
    %c0_3 = arith.constant 0 : index
    %c0_4 = arith.constant 0 : index
    %2 = vector.load %arg2[%c0_2, %c0_3, %c0_4] : memref<1x8x32xf32, #tpu.memory_space<vmem>>, vector<1x8x32xf32>
    %3 = vector.shape_cast %2 : vector<1x8x32xf32> to vector<8x32xf32>
    %c0_5 = arith.constant 0 : index
    %c0_6 = arith.constant 0 : index
    %c0_7 = arith.constant 0 : index
    %4 = vector.load %arg3[%c0_5, %c0_6, %c0_7] : memref<1x8x32xf32, #tpu.memory_space<vmem>>, vector<1x8x32xf32>
    %5 = vector.shape_cast %4 : vector<1x8x32xf32> to vector<8x32xf32>
    %c0_8 = arith.constant 0 : index
    %c0_9 = arith.constant 0 : index
    %c0_10 = arith.constant 0 : index
    %c0_11 = arith.constant 0 : index
    %6 = vector.load %arg4[%c0_8, %c0_9, %c0_10, %c0_11] : memref<1x1x8x8xf32, #tpu.memory_space<vmem>>, vector<1x1x8x8xf32>
    %7 = vector.shape_cast %6 : vector<1x1x8x8xf32> to vector<8x8xf32>
    %c0_12 = arith.constant 0 : index
    %c0_13 = arith.constant 0 : index
    %c0_14 = arith.constant 0 : index
    %c0_15 = arith.constant 0 : index
    %8 = vector.load %arg5[%c0_12, %c0_13, %c0_14, %c0_15] : memref<1x1x1x8xf32, #tpu.memory_space<vmem>>, vector<1x1x1x8xf32>
    %9 = vector.shape_cast %8 : vector<1x1x1x8xf32> to vector<1x8xf32>
    %c0_16 = arith.constant 0 : index
    %c0_17 = arith.constant 0 : index
    %c0_18 = arith.constant 0 : index
    %10 = vector.load %arg6[%c0_16, %c0_17, %c0_18] : memref<2x32x32xbf16, #tpu.memory_space<vmem>>, vector<1x32x32xbf16>
    %11 = vector.shape_cast %10 : vector<1x32x32xbf16> to vector<32x32xbf16>
    %c0_19 = arith.constant 0 : index
    %c0_20 = arith.constant 0 : index
    %c0_21 = arith.constant 0 : index
    %12 = vector.load %arg7[%c0_19, %c0_20, %c0_21] : memref<2x32x32xbf16, #tpu.memory_space<vmem>>, vector<1x32x32xbf16>
    %13 = vector.shape_cast %12 : vector<1x32x32xbf16> to vector<32x32xbf16>
    %c0_22 = arith.constant 0 : index
    %c0_23 = arith.constant 0 : index
    %c0_24 = arith.constant 0 : index
    %14 = vector.load %arg8[%c0_22, %c0_23, %c0_24] : memref<2x32x32xbf16, #tpu.memory_space<vmem>>, vector<1x32x32xbf16>
    %15 = vector.shape_cast %14 : vector<1x32x32xbf16> to vector<32x32xbf16>
    %c0_25 = arith.constant 0 : index
    %c0_26 = arith.constant 0 : index
    %c0_27 = arith.constant 0 : index
    %16 = vector.load %arg9[%c0_25, %c0_26, %c0_27] : memref<2x32x32xbf16, #tpu.memory_space<vmem>>, vector<1x32x32xbf16>
    %17 = vector.shape_cast %16 : vector<1x32x32xbf16> to vector<32x32xbf16>
    %c0_28 = arith.constant 0 : index
    %c0_29 = arith.constant 0 : index
    %c0_30 = arith.constant 0 : index
    %18 = vector.load %arg10[%c0_28, %c0_29, %c0_30] : memref<2x1x32xf32, #tpu.memory_space<vmem>>, vector<1x1x32xf32>
    %19 = vector.shape_cast %18 : vector<1x1x32xf32> to vector<1x32xf32>
    %20 = arith.truncf %1 : vector<8x32xf32> to vector<8x32xbf16>
    %cst = arith.constant dense<0.000000e+00> : vector<8x32xf32>
    %21 = tpu.matmul %20, %11, %cst {dimension_numbers = #tpu.dot_dimension_numbers<[1], [0], [0], [1], [0, 0, 1, 1], [], []>} : vector<8x32xbf16>, vector<32x32xbf16>, vector<8x32xf32> -> vector<8x32xf32>
    %22 = vector.shape_cast %21 : vector<8x32xf32> to vector<8x4x8xf32>
    %23 = tpu.transpose %22, [1, 0, 2] : vector<8x4x8xf32> -> vector<4x8x8xf32>
    %24 = arith.truncf %1 : vector<8x32xf32> to vector<8x32xbf16>
    %cst_31 = arith.constant dense<0.000000e+00> : vector<8x32xf32>
    %25 = tpu.matmul %24, %13, %cst_31 {dimension_numbers = #tpu.dot_dimension_numbers<[1], [0], [0], [1], [0, 0, 1, 1], [], []>} : vector<8x32xbf16>, vector<32x32xbf16>, vector<8x32xf32> -> vector<8x32xf32>
    %26 = vector.shape_cast %25 : vector<8x32xf32> to vector<8x4x8xf32>
    %27 = tpu.transpose %26, [1, 0, 2] : vector<8x4x8xf32> -> vector<4x8x8xf32>
    %28 = arith.truncf %1 : vector<8x32xf32> to vector<8x32xbf16>
    %cst_32 = arith.constant dense<0.000000e+00> : vector<8x32xf32>
    %29 = tpu.matmul %28, %15, %cst_32 {dimension_numbers = #tpu.dot_dimension_numbers<[1], [0], [0], [1], [0, 0, 1, 1], [], []>} : vector<8x32xbf16>, vector<32x32xbf16>, vector<8x32xf32> -> vector<8x32xf32>
    %30 = vector.shape_cast %29 : vector<8x32xf32> to vector<8x4x8xf32>
    %31 = tpu.transpose %30, [1, 0, 2] : vector<8x4x8xf32> -> vector<4x8x8xf32>
    "tpu.trace_start"() <{level = 10 : i32, message = "hqd,hkd->hqk"}> : () -> ()
    %cst_33 = arith.constant dense<0.000000e+00> : vector<4x8x8xf32>
    %32 = tpu.matmul %23, %27, %cst_33 {dimension_numbers = #tpu.dot_dimension_numbers<[2], [2], [1], [1], [0, 0, 0, 1, 1, 1], [0], [0]>} : vector<4x8x8xf32>, vector<4x8x8xf32>, vector<4x8x8xf32> -> vector<4x8x8xf32>
    %cst_34 = arith.constant 0.000000e+00 : f32
    "tpu.trace_stop"() : () -> ()
    %33 = vector.broadcast %cst_34 : f32 to vector<8x8xf32>
    %34 = arith.cmpf oeq, %7, %33 : vector<8x8xf32>
    %cst_35 = arith.constant -1.000000e+20 : f32
    %35 = vector.shape_cast %34 : vector<8x8xi1> to vector<1x8x8xi1>
    %36 = vector.broadcast %35 : vector<1x8x8xi1> to vector<4x8x8xi1>
    %37 = vector.broadcast %cst_35 : f32 to vector<4x8x8xf32>
    %38 = arith.select %36, %37, %32 : vector<4x8x8xi1>, vector<4x8x8xf32>
    %cst_36 = arith.constant dense<0xFF800000> : vector<4x8xf32>
    %39 = vector.multi_reduction <maximumf>, %38, %cst_36 [2] : vector<4x8x8xf32> to vector<4x8xf32>
    %40 = vector.shape_cast %39 : vector<4x8xf32> to vector<4x8x1xf32>
    %41 = vector.broadcast %40 : vector<4x8x1xf32> to vector<4x8x8xf32>
    %42 = arith.subf %38, %41 : vector<4x8x8xf32>
    %43 = math.exp %42 : vector<4x8x8xf32>
    %cst_37 = arith.constant dense<0.000000e+00> : vector<4x8xf32>
    %44 = vector.multi_reduction <add>, %43, %cst_37 [2] : vector<4x8x8xf32> to vector<4x8xf32>
    %45 = vector.shape_cast %44 : vector<4x8xf32> to vector<4x8x1xf32>
    %46 = tpu.reciprocal %45 {approx = true} : vector<4x8x1xf32> -> vector<4x8x1xf32>
    %47 = vector.broadcast %46 : vector<4x8x1xf32> to vector<4x8x8xf32>
    %48 = arith.mulf %43, %47 : vector<4x8x8xf32>
    "tpu.trace_start"() <{level = 10 : i32, message = "hqk,hkd->hqd"}> : () -> ()
    %cst_38 = arith.constant dense<0.000000e+00> : vector<4x8x8xf32>
    %49 = tpu.matmul %48, %31, %cst_38 {dimension_numbers = #tpu.dot_dimension_numbers<[2], [1], [1], [2], [0, 0, 0, 1, 1, 2], [0], [0]>} : vector<4x8x8xf32>, vector<4x8x8xf32>, vector<4x8x8xf32> -> vector<4x8x8xf32>
    "tpu.trace_stop"() : () -> ()
    %50 = tpu.transpose %49, [1, 0, 2] : vector<4x8x8xf32> -> vector<8x4x8xf32>
    %51 = vector.shape_cast %50 : vector<8x4x8xf32> to vector<8x32xf32>
    %52 = arith.truncf %51 : vector<8x32xf32> to vector<8x32xbf16>
    %cst_39 = arith.constant dense<0.000000e+00> : vector<8x32xf32>
    %53 = tpu.matmul %52, %17, %cst_39 {dimension_numbers = #tpu.dot_dimension_numbers<[1], [0], [0], [1], [0, 0, 1, 1], [], []>} : vector<8x32xbf16>, vector<32x32xbf16>, vector<8x32xf32> -> vector<8x32xf32>
    %54 = vector.broadcast %19 : vector<1x32xf32> to vector<8x32xf32>
    %55 = arith.addf %53, %54 : vector<8x32xf32>
    %56 = arith.addf %55, %1 : vector<8x32xf32>
    %c0_40 = arith.constant 0 : index
    %c0_41 = arith.constant 0 : index
    %c0_42 = arith.constant 0 : index
    %57 = vector.load %arg11[%c0_40, %c0_41, %c0_42] : memref<2x1x32xf32, #tpu.memory_space<vmem>>, vector<1x1x32xf32>
    %58 = vector.shape_cast %57 : vector<1x1x32xf32> to vector<1x32xf32>
    %c0_43 = arith.constant 0 : index
    %c0_44 = arith.constant 0 : index
    %c0_45 = arith.constant 0 : index
    %59 = vector.load %arg12[%c0_43, %c0_44, %c0_45] : memref<2x1x32xf32, #tpu.memory_space<vmem>>, vector<1x1x32xf32>
    %60 = vector.shape_cast %59 : vector<1x1x32xf32> to vector<1x32xf32>
    %cst_46 = arith.constant dense<0.000000e+00> : vector<8xf32>
    %61 = vector.multi_reduction <add>, %56, %cst_46 [1] : vector<8x32xf32> to vector<8xf32>
    %62 = vector.shape_cast %61 : vector<8xf32> to vector<8x1xf32>
    %cst_47 = arith.constant 3.200000e+01 : f32
    %63 = vector.broadcast %cst_47 : f32 to vector<8x1xf32>
    %64 = arith.divf %62, %63 : vector<8x1xf32>
    %65 = vector.broadcast %64 : vector<8x1xf32> to vector<8x32xf32>
    %66 = arith.subf %56, %65 : vector<8x32xf32>
    %67 = arith.mulf %66, %66 : vector<8x32xf32>
    %cst_48 = arith.constant dense<0.000000e+00> : vector<8xf32>
    %68 = vector.multi_reduction <add>, %67, %cst_48 [1] : vector<8x32xf32> to vector<8xf32>
    %69 = vector.shape_cast %68 : vector<8xf32> to vector<8x1xf32>
    %cst_49 = arith.constant 3.200000e+01 : f32
    %70 = vector.broadcast %cst_49 : f32 to vector<8x1xf32>
    %71 = arith.divf %69, %70 : vector<8x1xf32>
    %72 = vector.broadcast %64 : vector<8x1xf32> to vector<8x32xf32>
    %73 = arith.subf %56, %72 : vector<8x32xf32>
    %cst_50 = arith.constant 9.99999974E-6 : f32
    %74 = vector.broadcast %cst_50 : f32 to vector<8x1xf32>
    %75 = arith.addf %71, %74 : vector<8x1xf32>
    %76 = math.rsqrt %75 : vector<8x1xf32>
    %77 = vector.broadcast %76 : vector<8x1xf32> to vector<8x32xf32>
    %78 = arith.mulf %73, %77 : vector<8x32xf32>
    %79 = vector.broadcast %58 : vector<1x32xf32> to vector<8x32xf32>
    %80 = arith.mulf %78, %79 : vector<8x32xf32>
    %81 = vector.broadcast %60 : vector<1x32xf32> to vector<8x32xf32>
    %82 = arith.addf %80, %81 : vector<8x32xf32>
    %c0_51 = arith.constant 0 : index
    %c0_52 = arith.constant 0 : index
    %c0_53 = arith.constant 0 : index
    %83 = vector.load %arg13[%c0_51, %c0_52, %c0_53] : memref<2x32x32xbf16, #tpu.memory_space<vmem>>, vector<1x32x32xbf16>
    %84 = vector.shape_cast %83 : vector<1x32x32xbf16> to vector<32x32xbf16>
    %c0_54 = arith.constant 0 : index
    %c0_55 = arith.constant 0 : index
    %c0_56 = arith.constant 0 : index
    %85 = vector.load %arg14[%c0_54, %c0_55, %c0_56] : memref<2x32x32xbf16, #tpu.memory_space<vmem>>, vector<1x32x32xbf16>
    %86 = vector.shape_cast %85 : vector<1x32x32xbf16> to vector<32x32xbf16>
    %c0_57 = arith.constant 0 : index
    %c0_58 = arith.constant 0 : index
    %c0_59 = arith.constant 0 : index
    %87 = vector.load %arg15[%c0_57, %c0_58, %c0_59] : memref<2x32x32xbf16, #tpu.memory_space<vmem>>, vector<1x32x32xbf16>
    %88 = vector.shape_cast %87 : vector<1x32x32xbf16> to vector<32x32xbf16>
    %c0_60 = arith.constant 0 : index
    %c0_61 = arith.constant 0 : index
    %c0_62 = arith.constant 0 : index
    %89 = vector.load %arg16[%c0_60, %c0_61, %c0_62] : memref<2x32x32xbf16, #tpu.memory_space<vmem>>, vector<1x32x32xbf16>
    %90 = vector.shape_cast %89 : vector<1x32x32xbf16> to vector<32x32xbf16>
    %c0_63 = arith.constant 0 : index
    %c0_64 = arith.constant 0 : index
    %c0_65 = arith.constant 0 : index
    %91 = vector.load %arg17[%c0_63, %c0_64, %c0_65] : memref<2x1x32xf32, #tpu.memory_space<vmem>>, vector<1x1x32xf32>
    %92 = vector.shape_cast %91 : vector<1x1x32xf32> to vector<1x32xf32>
    %93 = arith.truncf %3 : vector<8x32xf32> to vector<8x32xbf16>
    %cst_66 = arith.constant dense<0.000000e+00> : vector<8x32xf32>
    %94 = tpu.matmul %93, %84, %cst_66 {dimension_numbers = #tpu.dot_dimension_numbers<[1], [0], [0], [1], [0, 0, 1, 1], [], []>} : vector<8x32xbf16>, vector<32x32xbf16>, vector<8x32xf32> -> vector<8x32xf32>
    %95 = vector.shape_cast %94 : vector<8x32xf32> to vector<8x4x8xf32>
    %96 = tpu.transpose %95, [1, 0, 2] : vector<8x4x8xf32> -> vector<4x8x8xf32>
    %97 = arith.truncf %5 : vector<8x32xf32> to vector<8x32xbf16>
    %cst_67 = arith.constant dense<0.000000e+00> : vector<8x32xf32>
    %98 = tpu.matmul %97, %86, %cst_67 {dimension_numbers = #tpu.dot_dimension_numbers<[1], [0], [0], [1], [0, 0, 1, 1], [], []>} : vector<8x32xbf16>, vector<32x32xbf16>, vector<8x32xf32> -> vector<8x32xf32>
    %99 = vector.shape_cast %98 : vector<8x32xf32> to vector<8x4x8xf32>
    %100 = tpu.transpose %99, [1, 0, 2] : vector<8x4x8xf32> -> vector<4x8x8xf32>
    %101 = arith.truncf %82 : vector<8x32xf32> to vector<8x32xbf16>
    %cst_68 = arith.constant dense<0.000000e+00> : vector<8x32xf32>
    %102 = tpu.matmul %101, %88, %cst_68 {dimension_numbers = #tpu.dot_dimension_numbers<[1], [0], [0], [1], [0, 0, 1, 1], [], []>} : vector<8x32xbf16>, vector<32x32xbf16>, vector<8x32xf32> -> vector<8x32xf32>
    %103 = vector.shape_cast %102 : vector<8x32xf32> to vector<8x4x8xf32>
    %104 = tpu.transpose %103, [1, 0, 2] : vector<8x4x8xf32> -> vector<4x8x8xf32>
    "tpu.trace_start"() <{level = 10 : i32, message = "hqd,hkd->hqk"}> : () -> ()
    %cst_69 = arith.constant dense<0.000000e+00> : vector<4x8x8xf32>
    %105 = tpu.matmul %96, %100, %cst_69 {dimension_numbers = #tpu.dot_dimension_numbers<[2], [2], [1], [1], [0, 0, 0, 1, 1, 1], [0], [0]>} : vector<4x8x8xf32>, vector<4x8x8xf32>, vector<4x8x8xf32> -> vector<4x8x8xf32>
    %cst_70 = arith.constant 0.000000e+00 : f32
    "tpu.trace_stop"() : () -> ()
    %106 = vector.broadcast %cst_70 : f32 to vector<1x8xf32>
    %107 = arith.cmpf oeq, %9, %106 : vector<1x8xf32>
    %cst_71 = arith.constant -1.000000e+20 : f32
    %108 = vector.shape_cast %107 : vector<1x8xi1> to vector<1x1x8xi1>
    %109 = vector.broadcast %108 : vector<1x1x8xi1> to vector<4x8x8xi1>
    %110 = vector.broadcast %cst_71 : f32 to vector<4x8x8xf32>
    %111 = arith.select %109, %110, %105 : vector<4x8x8xi1>, vector<4x8x8xf32>
    %cst_72 = arith.constant dense<0xFF800000> : vector<4x8xf32>
    %112 = vector.multi_reduction <maximumf>, %111, %cst_72 [2] : vector<4x8x8xf32> to vector<4x8xf32>
    %113 = vector.shape_cast %112 : vector<4x8xf32> to vector<4x8x1xf32>
    %114 = vector.broadcast %113 : vector<4x8x1xf32> to vector<4x8x8xf32>
    %115 = arith.subf %111, %114 : vector<4x8x8xf32>
    %116 = math.exp %115 : vector<4x8x8xf32>
    %cst_73 = arith.constant dense<0.000000e+00> : vector<4x8xf32>
    %117 = vector.multi_reduction <add>, %116, %cst_73 [2] : vector<4x8x8xf32> to vector<4x8xf32>
    %118 = vector.shape_cast %117 : vector<4x8xf32> to vector<4x8x1xf32>
    %119 = tpu.reciprocal %118 {approx = true} : vector<4x8x1xf32> -> vector<4x8x1xf32>
    %120 = vector.broadcast %119 : vector<4x8x1xf32> to vector<4x8x8xf32>
    %121 = arith.mulf %116, %120 : vector<4x8x8xf32>
    "tpu.trace_start"() <{level = 10 : i32, message = "hqk,hkd->hqd"}> : () -> ()
    %cst_74 = arith.constant dense<0.000000e+00> : vector<4x8x8xf32>
    %122 = tpu.matmul %121, %104, %cst_74 {dimension_numbers = #tpu.dot_dimension_numbers<[2], [1], [1], [2], [0, 0, 0, 1, 1, 2], [0], [0]>} : vector<4x8x8xf32>, vector<4x8x8xf32>, vector<4x8x8xf32> -> vector<4x8x8xf32>
    "tpu.trace_stop"() : () -> ()
    %123 = tpu.transpose %122, [1, 0, 2] : vector<4x8x8xf32> -> vector<8x4x8xf32>
    %124 = vector.shape_cast %123 : vector<8x4x8xf32> to vector<8x32xf32>
    %125 = arith.truncf %124 : vector<8x32xf32> to vector<8x32xbf16>
    %cst_75 = arith.constant dense<0.000000e+00> : vector<8x32xf32>
    %126 = tpu.matmul %125, %90, %cst_75 {dimension_numbers = #tpu.dot_dimension_numbers<[1], [0], [0], [1], [0, 0, 1, 1], [], []>} : vector<8x32xbf16>, vector<32x32xbf16>, vector<8x32xf32> -> vector<8x32xf32>
    %127 = vector.broadcast %92 : vector<1x32xf32> to vector<8x32xf32>
    %128 = arith.addf %126, %127 : vector<8x32xf32>
    %129 = arith.addf %128, %3 : vector<8x32xf32>
    %c0_76 = arith.constant 0 : index
    %c0_77 = arith.constant 0 : index
    %c0_78 = arith.constant 0 : index
    %130 = vector.load %arg18[%c0_76, %c0_77, %c0_78] : memref<2x1x32xf32, #tpu.memory_space<vmem>>, vector<1x1x32xf32>
    %131 = vector.shape_cast %130 : vector<1x1x32xf32> to vector<1x32xf32>
    %c0_79 = arith.constant 0 : index
    %c0_80 = arith.constant 0 : index
    %c0_81 = arith.constant 0 : index
    %132 = vector.load %arg19[%c0_79, %c0_80, %c0_81] : memref<2x1x32xf32, #tpu.memory_space<vmem>>, vector<1x1x32xf32>
    %133 = vector.shape_cast %132 : vector<1x1x32xf32> to vector<1x32xf32>
    %cst_82 = arith.constant dense<0.000000e+00> : vector<8xf32>
    %134 = vector.multi_reduction <add>, %129, %cst_82 [1] : vector<8x32xf32> to vector<8xf32>
    %135 = vector.shape_cast %134 : vector<8xf32> to vector<8x1xf32>
    %cst_83 = arith.constant 3.200000e+01 : f32
    %136 = vector.broadcast %cst_83 : f32 to vector<8x1xf32>
    %137 = arith.divf %135, %136 : vector<8x1xf32>
    %138 = vector.broadcast %137 : vector<8x1xf32> to vector<8x32xf32>
    %139 = arith.subf %129, %138 : vector<8x32xf32>
    %140 = arith.mulf %139, %139 : vector<8x32xf32>
    %cst_84 = arith.constant dense<0.000000e+00> : vector<8xf32>
    %141 = vector.multi_reduction <add>, %140, %cst_84 [1] : vector<8x32xf32> to vector<8xf32>
    %142 = vector.shape_cast %141 : vector<8xf32> to vector<8x1xf32>
    %cst_85 = arith.constant 3.200000e+01 : f32
    %143 = vector.broadcast %cst_85 : f32 to vector<8x1xf32>
    %144 = arith.divf %142, %143 : vector<8x1xf32>
    %145 = vector.broadcast %137 : vector<8x1xf32> to vector<8x32xf32>
    %146 = arith.subf %129, %145 : vector<8x32xf32>
    %cst_86 = arith.constant 9.99999974E-6 : f32
    %147 = vector.broadcast %cst_86 : f32 to vector<8x1xf32>
    %148 = arith.addf %144, %147 : vector<8x1xf32>
    %149 = math.rsqrt %148 : vector<8x1xf32>
    %150 = vector.broadcast %149 : vector<8x1xf32> to vector<8x32xf32>
    %151 = arith.mulf %146, %150 : vector<8x32xf32>
    %152 = vector.broadcast %131 : vector<1x32xf32> to vector<8x32xf32>
    %153 = arith.mulf %151, %152 : vector<8x32xf32>
    %154 = vector.broadcast %133 : vector<1x32xf32> to vector<8x32xf32>
    %155 = arith.addf %153, %154 : vector<8x32xf32>
    %156 = arith.truncf %155 : vector<8x32xf32> to vector<8x32xbf16>
    %c0_87 = arith.constant 0 : index
    %c0_88 = arith.constant 0 : index
    %c0_89 = arith.constant 0 : index
    %157 = vector.load %arg20[%c0_87, %c0_88, %c0_89] : memref<2x32x128xbf16, #tpu.memory_space<vmem>>, vector<1x32x128xbf16>
    %158 = vector.shape_cast %157 : vector<1x32x128xbf16> to vector<32x128xbf16>
    %cst_90 = arith.constant dense<0.000000e+00> : vector<8x128xf32>
    %159 = tpu.matmul %156, %158, %cst_90 {dimension_numbers = #tpu.dot_dimension_numbers<[1], [0], [0], [1], [0, 0, 1, 1], [], []>} : vector<8x32xbf16>, vector<32x128xbf16>, vector<8x128xf32> -> vector<8x128xf32>
    %c0_91 = arith.constant 0 : index
    %c0_92 = arith.constant 0 : index
    %c0_93 = arith.constant 0 : index
    %160 = vector.load %arg21[%c0_91, %c0_92, %c0_93] : memref<2x1x128xf32, #tpu.memory_space<vmem>>, vector<1x1x128xf32>
    %161 = vector.shape_cast %160 : vector<1x1x128xf32> to vector<1x128xf32>
    %162 = vector.broadcast %161 : vector<1x128xf32> to vector<8x128xf32>
    %163 = arith.addf %159, %162 : vector<8x128xf32>
    %cst_94 = arith.constant 0.000000e+00 : f32
    %164 = vector.broadcast %cst_94 : f32 to vector<8x128xf32>
    %165 = arith.maximumf %163, %164 : vector<8x128xf32>
    %166 = arith.truncf %165 : vector<8x128xf32> to vector<8x128xbf16>
    %c0_95 = arith.constant 0 : index
    %c0_96 = arith.constant 0 : index
    %c0_97 = arith.constant 0 : index
    %167 = vector.load %arg22[%c0_95, %c0_96, %c0_97] : memref<2x128x32xbf16, #tpu.memory_space<vmem>>, vector<1x128x32xbf16>
    %168 = vector.shape_cast %167 : vector<1x128x32xbf16> to vector<128x32xbf16>
    %cst_98 = arith.constant dense<0.000000e+00> : vector<8x32xf32>
    %169 = tpu.matmul %166, %168, %cst_98 {dimension_numbers = #tpu.dot_dimension_numbers<[1], [0], [0], [1], [0, 0, 1, 1], [], []>} : vector<8x128xbf16>, vector<128x32xbf16>, vector<8x32xf32> -> vector<8x32xf32>
    %c0_99 = arith.constant 0 : index
    %c0_100 = arith.constant 0 : index
    %c0_101 = arith.constant 0 : index
    %170 = vector.load %arg23[%c0_99, %c0_100, %c0_101] : memref<2x1x32xf32, #tpu.memory_space<vmem>>, vector<1x1x32xf32>
    %171 = vector.shape_cast %170 : vector<1x1x32xf32> to vector<1x32xf32>
    %172 = vector.broadcast %171 : vector<1x32xf32> to vector<8x32xf32>
    %173 = arith.addf %169, %172 : vector<8x32xf32>
    %174 = arith.addf %173, %155 : vector<8x32xf32>
    %c0_102 = arith.constant 0 : index
    %c0_103 = arith.constant 0 : index
    %c0_104 = arith.constant 0 : index
    %175 = vector.load %arg24[%c0_102, %c0_103, %c0_104] : memref<2x1x32xf32, #tpu.memory_space<vmem>>, vector<1x1x32xf32>
    %176 = vector.shape_cast %175 : vector<1x1x32xf32> to vector<1x32xf32>
    %c0_105 = arith.constant 0 : index
    %c0_106 = arith.constant 0 : index
    %c0_107 = arith.constant 0 : index
    %177 = vector.load %arg25[%c0_105, %c0_106, %c0_107] : memref<2x1x32xf32, #tpu.memory_space<vmem>>, vector<1x1x32xf32>
    %178 = vector.shape_cast %177 : vector<1x1x32xf32> to vector<1x32xf32>
    %cst_108 = arith.constant dense<0.000000e+00> : vector<8xf32>
    %179 = vector.multi_reduction <add>, %174, %cst_108 [1] : vector<8x32xf32> to vector<8xf32>
    %180 = vector.shape_cast %179 : vector<8xf32> to vector<8x1xf32>
    %cst_109 = arith.constant 3.200000e+01 : f32
    %181 = vector.broadcast %cst_109 : f32 to vector<8x1xf32>
    %182 = arith.divf %180, %181 : vector<8x1xf32>
    %183 = vector.broadcast %182 : vector<8x1xf32> to vector<8x32xf32>
    %184 = arith.subf %174, %183 : vector<8x32xf32>
    %185 = arith.mulf %184, %184 : vector<8x32xf32>
    %cst_110 = arith.constant dense<0.000000e+00> : vector<8xf32>
    %186 = vector.multi_reduction <add>, %185, %cst_110 [1] : vector<8x32xf32> to vector<8xf32>
    %187 = vector.shape_cast %186 : vector<8xf32> to vector<8x1xf32>
    %cst_111 = arith.constant 3.200000e+01 : f32
    %188 = vector.broadcast %cst_111 : f32 to vector<8x1xf32>
    %189 = arith.divf %187, %188 : vector<8x1xf32>
    %190 = vector.broadcast %182 : vector<8x1xf32> to vector<8x32xf32>
    %191 = arith.subf %174, %190 : vector<8x32xf32>
    %cst_112 = arith.constant 9.99999974E-6 : f32
    %192 = vector.broadcast %cst_112 : f32 to vector<8x1xf32>
    %193 = arith.addf %189, %192 : vector<8x1xf32>
    %194 = math.rsqrt %193 : vector<8x1xf32>
    %195 = vector.broadcast %194 : vector<8x1xf32> to vector<8x32xf32>
    %196 = arith.mulf %191, %195 : vector<8x32xf32>
    %197 = vector.broadcast %176 : vector<1x32xf32> to vector<8x32xf32>
    %198 = arith.mulf %196, %197 : vector<8x32xf32>
    %199 = vector.broadcast %178 : vector<1x32xf32> to vector<8x32xf32>
    %200 = arith.addf %198, %199 : vector<8x32xf32>
    %c1 = arith.constant 1 : index
    %c0_113 = arith.constant 0 : index
    %c0_114 = arith.constant 0 : index
    %201 = vector.load %arg6[%c1, %c0_113, %c0_114] : memref<2x32x32xbf16, #tpu.memory_space<vmem>>, vector<1x32x32xbf16>
    %202 = vector.shape_cast %201 : vector<1x32x32xbf16> to vector<32x32xbf16>
    %c1_115 = arith.constant 1 : index
    %c0_116 = arith.constant 0 : index
    %c0_117 = arith.constant 0 : index
    %203 = vector.load %arg7[%c1_115, %c0_116, %c0_117] : memref<2x32x32xbf16, #tpu.memory_space<vmem>>, vector<1x32x32xbf16>
    %204 = vector.shape_cast %203 : vector<1x32x32xbf16> to vector<32x32xbf16>
    %c1_118 = arith.constant 1 : index
    %c0_119 = arith.constant 0 : index
    %c0_120 = arith.constant 0 : index
    %205 = vector.load %arg8[%c1_118, %c0_119, %c0_120] : memref<2x32x32xbf16, #tpu.memory_space<vmem>>, vector<1x32x32xbf16>
    %206 = vector.shape_cast %205 : vector<1x32x32xbf16> to vector<32x32xbf16>
    %c1_121 = arith.constant 1 : index
    %c0_122 = arith.constant 0 : index
    %c0_123 = arith.constant 0 : index
    %207 = vector.load %arg9[%c1_121, %c0_122, %c0_123] : memref<2x32x32xbf16, #tpu.memory_space<vmem>>, vector<1x32x32xbf16>
    %208 = vector.shape_cast %207 : vector<1x32x32xbf16> to vector<32x32xbf16>
    %c1_124 = arith.constant 1 : index
    %c0_125 = arith.constant 0 : index
    %c0_126 = arith.constant 0 : index
    %209 = vector.load %arg10[%c1_124, %c0_125, %c0_126] : memref<2x1x32xf32, #tpu.memory_space<vmem>>, vector<1x1x32xf32>
    %210 = vector.shape_cast %209 : vector<1x1x32xf32> to vector<1x32xf32>
    %211 = arith.truncf %200 : vector<8x32xf32> to vector<8x32xbf16>
    %cst_127 = arith.constant dense<0.000000e+00> : vector<8x32xf32>
    %212 = tpu.matmul %211, %202, %cst_127 {dimension_numbers = #tpu.dot_dimension_numbers<[1], [0], [0], [1], [0, 0, 1, 1], [], []>} : vector<8x32xbf16>, vector<32x32xbf16>, vector<8x32xf32> -> vector<8x32xf32>
    %213 = vector.shape_cast %212 : vector<8x32xf32> to vector<8x4x8xf32>
    %214 = tpu.transpose %213, [1, 0, 2] : vector<8x4x8xf32> -> vector<4x8x8xf32>
    %215 = arith.truncf %200 : vector<8x32xf32> to vector<8x32xbf16>
    %cst_128 = arith.constant dense<0.000000e+00> : vector<8x32xf32>
    %216 = tpu.matmul %215, %204, %cst_128 {dimension_numbers = #tpu.dot_dimension_numbers<[1], [0], [0], [1], [0, 0, 1, 1], [], []>} : vector<8x32xbf16>, vector<32x32xbf16>, vector<8x32xf32> -> vector<8x32xf32>
    %217 = vector.shape_cast %216 : vector<8x32xf32> to vector<8x4x8xf32>
    %218 = tpu.transpose %217, [1, 0, 2] : vector<8x4x8xf32> -> vector<4x8x8xf32>
    %219 = arith.truncf %200 : vector<8x32xf32> to vector<8x32xbf16>
    %cst_129 = arith.constant dense<0.000000e+00> : vector<8x32xf32>
    %220 = tpu.matmul %219, %206, %cst_129 {dimension_numbers = #tpu.dot_dimension_numbers<[1], [0], [0], [1], [0, 0, 1, 1], [], []>} : vector<8x32xbf16>, vector<32x32xbf16>, vector<8x32xf32> -> vector<8x32xf32>
    %221 = vector.shape_cast %220 : vector<8x32xf32> to vector<8x4x8xf32>
    %222 = tpu.transpose %221, [1, 0, 2] : vector<8x4x8xf32> -> vector<4x8x8xf32>
    "tpu.trace_start"() <{level = 10 : i32, message = "hqd,hkd->hqk"}> : () -> ()
    %cst_130 = arith.constant dense<0.000000e+00> : vector<4x8x8xf32>
    %223 = tpu.matmul %214, %218, %cst_130 {dimension_numbers = #tpu.dot_dimension_numbers<[2], [2], [1], [1], [0, 0, 0, 1, 1, 1], [0], [0]>} : vector<4x8x8xf32>, vector<4x8x8xf32>, vector<4x8x8xf32> -> vector<4x8x8xf32>
    %cst_131 = arith.constant 0.000000e+00 : f32
    "tpu.trace_stop"() : () -> ()
    %224 = vector.broadcast %cst_131 : f32 to vector<8x8xf32>
    %225 = arith.cmpf oeq, %7, %224 : vector<8x8xf32>
    %cst_132 = arith.constant -1.000000e+20 : f32
    %226 = vector.shape_cast %225 : vector<8x8xi1> to vector<1x8x8xi1>
    %227 = vector.broadcast %226 : vector<1x8x8xi1> to vector<4x8x8xi1>
    %228 = vector.broadcast %cst_132 : f32 to vector<4x8x8xf32>
    %229 = arith.select %227, %228, %223 : vector<4x8x8xi1>, vector<4x8x8xf32>
    %cst_133 = arith.constant dense<0xFF800000> : vector<4x8xf32>
    %230 = vector.multi_reduction <maximumf>, %229, %cst_133 [2] : vector<4x8x8xf32> to vector<4x8xf32>
    %231 = vector.shape_cast %230 : vector<4x8xf32> to vector<4x8x1xf32>
    %232 = vector.broadcast %231 : vector<4x8x1xf32> to vector<4x8x8xf32>
    %233 = arith.subf %229, %232 : vector<4x8x8xf32>
    %234 = math.exp %233 : vector<4x8x8xf32>
    %cst_134 = arith.constant dense<0.000000e+00> : vector<4x8xf32>
    %235 = vector.multi_reduction <add>, %234, %cst_134 [2] : vector<4x8x8xf32> to vector<4x8xf32>
    %236 = vector.shape_cast %235 : vector<4x8xf32> to vector<4x8x1xf32>
    %237 = tpu.reciprocal %236 {approx = true} : vector<4x8x1xf32> -> vector<4x8x1xf32>
    %238 = vector.broadcast %237 : vector<4x8x1xf32> to vector<4x8x8xf32>
    %239 = arith.mulf %234, %238 : vector<4x8x8xf32>
    "tpu.trace_start"() <{level = 10 : i32, message = "hqk,hkd->hqd"}> : () -> ()
    %cst_135 = arith.constant dense<0.000000e+00> : vector<4x8x8xf32>
    %240 = tpu.matmul %239, %222, %cst_135 {dimension_numbers = #tpu.dot_dimension_numbers<[2], [1], [1], [2], [0, 0, 0, 1, 1, 2], [0], [0]>} : vector<4x8x8xf32>, vector<4x8x8xf32>, vector<4x8x8xf32> -> vector<4x8x8xf32>
    "tpu.trace_stop"() : () -> ()
    %241 = tpu.transpose %240, [1, 0, 2] : vector<4x8x8xf32> -> vector<8x4x8xf32>
    %242 = vector.shape_cast %241 : vector<8x4x8xf32> to vector<8x32xf32>
    %243 = arith.truncf %242 : vector<8x32xf32> to vector<8x32xbf16>
    %cst_136 = arith.constant dense<0.000000e+00> : vector<8x32xf32>
    %244 = tpu.matmul %243, %208, %cst_136 {dimension_numbers = #tpu.dot_dimension_numbers<[1], [0], [0], [1], [0, 0, 1, 1], [], []>} : vector<8x32xbf16>, vector<32x32xbf16>, vector<8x32xf32> -> vector<8x32xf32>
    %245 = vector.broadcast %210 : vector<1x32xf32> to vector<8x32xf32>
    %246 = arith.addf %244, %245 : vector<8x32xf32>
    %247 = arith.addf %246, %200 : vector<8x32xf32>
    %c1_137 = arith.constant 1 : index
    %c0_138 = arith.constant 0 : index
    %c0_139 = arith.constant 0 : index
    %248 = vector.load %arg11[%c1_137, %c0_138, %c0_139] : memref<2x1x32xf32, #tpu.memory_space<vmem>>, vector<1x1x32xf32>
    %249 = vector.shape_cast %248 : vector<1x1x32xf32> to vector<1x32xf32>
    %c1_140 = arith.constant 1 : index
    %c0_141 = arith.constant 0 : index
    %c0_142 = arith.constant 0 : index
    %250 = vector.load %arg12[%c1_140, %c0_141, %c0_142] : memref<2x1x32xf32, #tpu.memory_space<vmem>>, vector<1x1x32xf32>
    %251 = vector.shape_cast %250 : vector<1x1x32xf32> to vector<1x32xf32>
    %cst_143 = arith.constant dense<0.000000e+00> : vector<8xf32>
    %252 = vector.multi_reduction <add>, %247, %cst_143 [1] : vector<8x32xf32> to vector<8xf32>
    %253 = vector.shape_cast %252 : vector<8xf32> to vector<8x1xf32>
    %cst_144 = arith.constant 3.200000e+01 : f32
    %254 = vector.broadcast %cst_144 : f32 to vector<8x1xf32>
    %255 = arith.divf %253, %254 : vector<8x1xf32>
    %256 = vector.broadcast %255 : vector<8x1xf32> to vector<8x32xf32>
    %257 = arith.subf %247, %256 : vector<8x32xf32>
    %258 = arith.mulf %257, %257 : vector<8x32xf32>
    %cst_145 = arith.constant dense<0.000000e+00> : vector<8xf32>
    %259 = vector.multi_reduction <add>, %258, %cst_145 [1] : vector<8x32xf32> to vector<8xf32>
    %260 = vector.shape_cast %259 : vector<8xf32> to vector<8x1xf32>
    %cst_146 = arith.constant 3.200000e+01 : f32
    %261 = vector.broadcast %cst_146 : f32 to vector<8x1xf32>
    %262 = arith.divf %260, %261 : vector<8x1xf32>
    %263 = vector.broadcast %255 : vector<8x1xf32> to vector<8x32xf32>
    %264 = arith.subf %247, %263 : vector<8x32xf32>
    %cst_147 = arith.constant 9.99999974E-6 : f32
    %265 = vector.broadcast %cst_147 : f32 to vector<8x1xf32>
    %266 = arith.addf %262, %265 : vector<8x1xf32>
    %267 = math.rsqrt %266 : vector<8x1xf32>
    %268 = vector.broadcast %267 : vector<8x1xf32> to vector<8x32xf32>
    %269 = arith.mulf %264, %268 : vector<8x32xf32>
    %270 = vector.broadcast %249 : vector<1x32xf32> to vector<8x32xf32>
    %271 = arith.mulf %269, %270 : vector<8x32xf32>
    %272 = vector.broadcast %251 : vector<1x32xf32> to vector<8x32xf32>
    %273 = arith.addf %271, %272 : vector<8x32xf32>
    %c1_148 = arith.constant 1 : index
    %c0_149 = arith.constant 0 : index
    %c0_150 = arith.constant 0 : index
    %274 = vector.load %arg13[%c1_148, %c0_149, %c0_150] : memref<2x32x32xbf16, #tpu.memory_space<vmem>>, vector<1x32x32xbf16>
    %275 = vector.shape_cast %274 : vector<1x32x32xbf16> to vector<32x32xbf16>
    %c1_151 = arith.constant 1 : index
    %c0_152 = arith.constant 0 : index
    %c0_153 = arith.constant 0 : index
    %276 = vector.load %arg14[%c1_151, %c0_152, %c0_153] : memref<2x32x32xbf16, #tpu.memory_space<vmem>>, vector<1x32x32xbf16>
    %277 = vector.shape_cast %276 : vector<1x32x32xbf16> to vector<32x32xbf16>
    %c1_154 = arith.constant 1 : index
    %c0_155 = arith.constant 0 : index
    %c0_156 = arith.constant 0 : index
    %278 = vector.load %arg15[%c1_154, %c0_155, %c0_156] : memref<2x32x32xbf16, #tpu.memory_space<vmem>>, vector<1x32x32xbf16>
    %279 = vector.shape_cast %278 : vector<1x32x32xbf16> to vector<32x32xbf16>
    %c1_157 = arith.constant 1 : index
    %c0_158 = arith.constant 0 : index
    %c0_159 = arith.constant 0 : index
    %280 = vector.load %arg16[%c1_157, %c0_158, %c0_159] : memref<2x32x32xbf16, #tpu.memory_space<vmem>>, vector<1x32x32xbf16>
    %281 = vector.shape_cast %280 : vector<1x32x32xbf16> to vector<32x32xbf16>
    %c1_160 = arith.constant 1 : index
    %c0_161 = arith.constant 0 : index
    %c0_162 = arith.constant 0 : index
    %282 = vector.load %arg17[%c1_160, %c0_161, %c0_162] : memref<2x1x32xf32, #tpu.memory_space<vmem>>, vector<1x1x32xf32>
    %283 = vector.shape_cast %282 : vector<1x1x32xf32> to vector<1x32xf32>
    %284 = arith.truncf %3 : vector<8x32xf32> to vector<8x32xbf16>
    %cst_163 = arith.constant dense<0.000000e+00> : vector<8x32xf32>
    %285 = tpu.matmul %284, %275, %cst_163 {dimension_numbers = #tpu.dot_dimension_numbers<[1], [0], [0], [1], [0, 0, 1, 1], [], []>} : vector<8x32xbf16>, vector<32x32xbf16>, vector<8x32xf32> -> vector<8x32xf32>
    %286 = vector.shape_cast %285 : vector<8x32xf32> to vector<8x4x8xf32>
    %287 = tpu.transpose %286, [1, 0, 2] : vector<8x4x8xf32> -> vector<4x8x8xf32>
    %288 = arith.truncf %5 : vector<8x32xf32> to vector<8x32xbf16>
    %cst_164 = arith.constant dense<0.000000e+00> : vector<8x32xf32>
    %289 = tpu.matmul %288, %277, %cst_164 {dimension_numbers = #tpu.dot_dimension_numbers<[1], [0], [0], [1], [0, 0, 1, 1], [], []>} : vector<8x32xbf16>, vector<32x32xbf16>, vector<8x32xf32> -> vector<8x32xf32>
    %290 = vector.shape_cast %289 : vector<8x32xf32> to vector<8x4x8xf32>
    %291 = tpu.transpose %290, [1, 0, 2] : vector<8x4x8xf32> -> vector<4x8x8xf32>
    %292 = arith.truncf %273 : vector<8x32xf32> to vector<8x32xbf16>
    %cst_165 = arith.constant dense<0.000000e+00> : vector<8x32xf32>
    %293 = tpu.matmul %292, %279, %cst_165 {dimension_numbers = #tpu.dot_dimension_numbers<[1], [0], [0], [1], [0, 0, 1, 1], [], []>} : vector<8x32xbf16>, vector<32x32xbf16>, vector<8x32xf32> -> vector<8x32xf32>
    %294 = vector.shape_cast %293 : vector<8x32xf32> to vector<8x4x8xf32>
    %295 = tpu.transpose %294, [1, 0, 2] : vector<8x4x8xf32> -> vector<4x8x8xf32>
    "tpu.trace_start"() <{level = 10 : i32, message = "hqd,hkd->hqk"}> : () -> ()
    %cst_166 = arith.constant dense<0.000000e+00> : vector<4x8x8xf32>
    %296 = tpu.matmul %287, %291, %cst_166 {dimension_numbers = #tpu.dot_dimension_numbers<[2], [2], [1], [1], [0, 0, 0, 1, 1, 1], [0], [0]>} : vector<4x8x8xf32>, vector<4x8x8xf32>, vector<4x8x8xf32> -> vector<4x8x8xf32>
    %cst_167 = arith.constant 0.000000e+00 : f32
    "tpu.trace_stop"() : () -> ()
    %297 = vector.broadcast %cst_167 : f32 to vector<1x8xf32>
    %298 = arith.cmpf oeq, %9, %297 : vector<1x8xf32>
    %cst_168 = arith.constant -1.000000e+20 : f32
    %299 = vector.shape_cast %298 : vector<1x8xi1> to vector<1x1x8xi1>
    %300 = vector.broadcast %299 : vector<1x1x8xi1> to vector<4x8x8xi1>
    %301 = vector.broadcast %cst_168 : f32 to vector<4x8x8xf32>
    %302 = arith.select %300, %301, %296 : vector<4x8x8xi1>, vector<4x8x8xf32>
    %cst_169 = arith.constant dense<0xFF800000> : vector<4x8xf32>
    %303 = vector.multi_reduction <maximumf>, %302, %cst_169 [2] : vector<4x8x8xf32> to vector<4x8xf32>
    %304 = vector.shape_cast %303 : vector<4x8xf32> to vector<4x8x1xf32>
    %305 = vector.broadcast %304 : vector<4x8x1xf32> to vector<4x8x8xf32>
    %306 = arith.subf %302, %305 : vector<4x8x8xf32>
    %307 = math.exp %306 : vector<4x8x8xf32>
    %cst_170 = arith.constant dense<0.000000e+00> : vector<4x8xf32>
    %308 = vector.multi_reduction <add>, %307, %cst_170 [2] : vector<4x8x8xf32> to vector<4x8xf32>
    %309 = vector.shape_cast %308 : vector<4x8xf32> to vector<4x8x1xf32>
    %310 = tpu.reciprocal %309 {approx = true} : vector<4x8x1xf32> -> vector<4x8x1xf32>
    %311 = vector.broadcast %310 : vector<4x8x1xf32> to vector<4x8x8xf32>
    %312 = arith.mulf %307, %311 : vector<4x8x8xf32>
    "tpu.trace_start"() <{level = 10 : i32, message = "hqk,hkd->hqd"}> : () -> ()
    %cst_171 = arith.constant dense<0.000000e+00> : vector<4x8x8xf32>
    %313 = tpu.matmul %312, %295, %cst_171 {dimension_numbers = #tpu.dot_dimension_numbers<[2], [1], [1], [2], [0, 0, 0, 1, 1, 2], [0], [0]>} : vector<4x8x8xf32>, vector<4x8x8xf32>, vector<4x8x8xf32> -> vector<4x8x8xf32>
    "tpu.trace_stop"() : () -> ()
    %314 = tpu.transpose %313, [1, 0, 2] : vector<4x8x8xf32> -> vector<8x4x8xf32>
    %315 = vector.shape_cast %314 : vector<8x4x8xf32> to vector<8x32xf32>
    %316 = arith.truncf %315 : vector<8x32xf32> to vector<8x32xbf16>
    %cst_172 = arith.constant dense<0.000000e+00> : vector<8x32xf32>
    %317 = tpu.matmul %316, %281, %cst_172 {dimension_numbers = #tpu.dot_dimension_numbers<[1], [0], [0], [1], [0, 0, 1, 1], [], []>} : vector<8x32xbf16>, vector<32x32xbf16>, vector<8x32xf32> -> vector<8x32xf32>
    %318 = vector.broadcast %283 : vector<1x32xf32> to vector<8x32xf32>
    %319 = arith.addf %317, %318 : vector<8x32xf32>
    %320 = arith.addf %319, %3 : vector<8x32xf32>
    %c1_173 = arith.constant 1 : index
    %c0_174 = arith.constant 0 : index
    %c0_175 = arith.constant 0 : index
    %321 = vector.load %arg18[%c1_173, %c0_174, %c0_175] : memref<2x1x32xf32, #tpu.memory_space<vmem>>, vector<1x1x32xf32>
    %322 = vector.shape_cast %321 : vector<1x1x32xf32> to vector<1x32xf32>
    %c1_176 = arith.constant 1 : index
    %c0_177 = arith.constant 0 : index
    %c0_178 = arith.constant 0 : index
    %323 = vector.load %arg19[%c1_176, %c0_177, %c0_178] : memref<2x1x32xf32, #tpu.memory_space<vmem>>, vector<1x1x32xf32>
    %324 = vector.shape_cast %323 : vector<1x1x32xf32> to vector<1x32xf32>
    %cst_179 = arith.constant dense<0.000000e+00> : vector<8xf32>
    %325 = vector.multi_reduction <add>, %320, %cst_179 [1] : vector<8x32xf32> to vector<8xf32>
    %326 = vector.shape_cast %325 : vector<8xf32> to vector<8x1xf32>
    %cst_180 = arith.constant 3.200000e+01 : f32
    %327 = vector.broadcast %cst_180 : f32 to vector<8x1xf32>
    %328 = arith.divf %326, %327 : vector<8x1xf32>
    %329 = vector.broadcast %328 : vector<8x1xf32> to vector<8x32xf32>
    %330 = arith.subf %320, %329 : vector<8x32xf32>
    %331 = arith.mulf %330, %330 : vector<8x32xf32>
    %cst_181 = arith.constant dense<0.000000e+00> : vector<8xf32>
    %332 = vector.multi_reduction <add>, %331, %cst_181 [1] : vector<8x32xf32> to vector<8xf32>
    %333 = vector.shape_cast %332 : vector<8xf32> to vector<8x1xf32>
    %cst_182 = arith.constant 3.200000e+01 : f32
    %334 = vector.broadcast %cst_182 : f32 to vector<8x1xf32>
    %335 = arith.divf %333, %334 : vector<8x1xf32>
    %336 = vector.broadcast %328 : vector<8x1xf32> to vector<8x32xf32>
    %337 = arith.subf %320, %336 : vector<8x32xf32>
    %cst_183 = arith.constant 9.99999974E-6 : f32
    %338 = vector.broadcast %cst_183 : f32 to vector<8x1xf32>
    %339 = arith.addf %335, %338 : vector<8x1xf32>
    %340 = math.rsqrt %339 : vector<8x1xf32>
    %341 = vector.broadcast %340 : vector<8x1xf32> to vector<8x32xf32>
    %342 = arith.mulf %337, %341 : vector<8x32xf32>
    %343 = vector.broadcast %322 : vector<1x32xf32> to vector<8x32xf32>
    %344 = arith.mulf %342, %343 : vector<8x32xf32>
    %345 = vector.broadcast %324 : vector<1x32xf32> to vector<8x32xf32>
    %346 = arith.addf %344, %345 : vector<8x32xf32>
    %347 = arith.truncf %346 : vector<8x32xf32> to vector<8x32xbf16>
    %c1_184 = arith.constant 1 : index
    %c0_185 = arith.constant 0 : index
    %c0_186 = arith.constant 0 : index
    %348 = vector.load %arg20[%c1_184, %c0_185, %c0_186] : memref<2x32x128xbf16, #tpu.memory_space<vmem>>, vector<1x32x128xbf16>
    %349 = vector.shape_cast %348 : vector<1x32x128xbf16> to vector<32x128xbf16>
    %cst_187 = arith.constant dense<0.000000e+00> : vector<8x128xf32>
    %350 = tpu.matmul %347, %349, %cst_187 {dimension_numbers = #tpu.dot_dimension_numbers<[1], [0], [0], [1], [0, 0, 1, 1], [], []>} : vector<8x32xbf16>, vector<32x128xbf16>, vector<8x128xf32> -> vector<8x128xf32>
    %c1_188 = arith.constant 1 : index
    %c0_189 = arith.constant 0 : index
    %c0_190 = arith.constant 0 : index
    %351 = vector.load %arg21[%c1_188, %c0_189, %c0_190] : memref<2x1x128xf32, #tpu.memory_space<vmem>>, vector<1x1x128xf32>
    %352 = vector.shape_cast %351 : vector<1x1x128xf32> to vector<1x128xf32>
    %353 = vector.broadcast %352 : vector<1x128xf32> to vector<8x128xf32>
    %354 = arith.addf %350, %353 : vector<8x128xf32>
    %cst_191 = arith.constant 0.000000e+00 : f32
    %355 = vector.broadcast %cst_191 : f32 to vector<8x128xf32>
    %356 = arith.maximumf %354, %355 : vector<8x128xf32>
    %357 = arith.truncf %356 : vector<8x128xf32> to vector<8x128xbf16>
    %c1_192 = arith.constant 1 : index
    %c0_193 = arith.constant 0 : index
    %c0_194 = arith.constant 0 : index
    %358 = vector.load %arg22[%c1_192, %c0_193, %c0_194] : memref<2x128x32xbf16, #tpu.memory_space<vmem>>, vector<1x128x32xbf16>
    %359 = vector.shape_cast %358 : vector<1x128x32xbf16> to vector<128x32xbf16>
    %cst_195 = arith.constant dense<0.000000e+00> : vector<8x32xf32>
    %360 = tpu.matmul %357, %359, %cst_195 {dimension_numbers = #tpu.dot_dimension_numbers<[1], [0], [0], [1], [0, 0, 1, 1], [], []>} : vector<8x128xbf16>, vector<128x32xbf16>, vector<8x32xf32> -> vector<8x32xf32>
    %c1_196 = arith.constant 1 : index
    %c0_197 = arith.constant 0 : index
    %c0_198 = arith.constant 0 : index
    %361 = vector.load %arg23[%c1_196, %c0_197, %c0_198] : memref<2x1x32xf32, #tpu.memory_space<vmem>>, vector<1x1x32xf32>
    %362 = vector.shape_cast %361 : vector<1x1x32xf32> to vector<1x32xf32>
    %363 = vector.broadcast %362 : vector<1x32xf32> to vector<8x32xf32>
    %364 = arith.addf %360, %363 : vector<8x32xf32>
    %365 = arith.addf %364, %346 : vector<8x32xf32>
    %c1_199 = arith.constant 1 : index
    %c0_200 = arith.constant 0 : index
    %c0_201 = arith.constant 0 : index
    %366 = vector.load %arg24[%c1_199, %c0_200, %c0_201] : memref<2x1x32xf32, #tpu.memory_space<vmem>>, vector<1x1x32xf32>
    %367 = vector.shape_cast %366 : vector<1x1x32xf32> to vector<1x32xf32>
    %c1_202 = arith.constant 1 : index
    %c0_203 = arith.constant 0 : index
    %c0_204 = arith.constant 0 : index
    %368 = vector.load %arg25[%c1_202, %c0_203, %c0_204] : memref<2x1x32xf32, #tpu.memory_space<vmem>>, vector<1x1x32xf32>
    %369 = vector.shape_cast %368 : vector<1x1x32xf32> to vector<1x32xf32>
    %cst_205 = arith.constant dense<0.000000e+00> : vector<8xf32>
    %370 = vector.multi_reduction <add>, %365, %cst_205 [1] : vector<8x32xf32> to vector<8xf32>
    %371 = vector.shape_cast %370 : vector<8xf32> to vector<8x1xf32>
    %cst_206 = arith.constant 3.200000e+01 : f32
    %372 = vector.broadcast %cst_206 : f32 to vector<8x1xf32>
    %373 = arith.divf %371, %372 : vector<8x1xf32>
    %374 = vector.broadcast %373 : vector<8x1xf32> to vector<8x32xf32>
    %375 = arith.subf %365, %374 : vector<8x32xf32>
    %376 = arith.mulf %375, %375 : vector<8x32xf32>
    %cst_207 = arith.constant dense<0.000000e+00> : vector<8xf32>
    %377 = vector.multi_reduction <add>, %376, %cst_207 [1] : vector<8x32xf32> to vector<8xf32>
    %378 = vector.shape_cast %377 : vector<8xf32> to vector<8x1xf32>
    %cst_208 = arith.constant 3.200000e+01 : f32
    %379 = vector.broadcast %cst_208 : f32 to vector<8x1xf32>
    %380 = arith.divf %378, %379 : vector<8x1xf32>
    %381 = vector.broadcast %373 : vector<8x1xf32> to vector<8x32xf32>
    %382 = arith.subf %365, %381 : vector<8x32xf32>
    %cst_209 = arith.constant 9.99999974E-6 : f32
    %383 = vector.broadcast %cst_209 : f32 to vector<8x1xf32>
    %384 = arith.addf %380, %383 : vector<8x1xf32>
    %385 = math.rsqrt %384 : vector<8x1xf32>
    %386 = vector.broadcast %385 : vector<8x1xf32> to vector<8x32xf32>
    %387 = arith.mulf %382, %386 : vector<8x32xf32>
    %388 = vector.broadcast %367 : vector<1x32xf32> to vector<8x32xf32>
    %389 = arith.mulf %387, %388 : vector<8x32xf32>
    %390 = vector.broadcast %369 : vector<1x32xf32> to vector<8x32xf32>
    %391 = arith.addf %389, %390 : vector<8x32xf32>
    %392 = arith.truncf %391 : vector<8x32xf32> to vector<8x32xbf16>
    %c0_210 = arith.constant 0 : index
    %c0_211 = arith.constant 0 : index
    %393 = vector.load %arg26[%c0_210, %c0_211] : memref<32x128xbf16, #tpu.memory_space<vmem>>, vector<32x128xbf16>
    %cst_212 = arith.constant dense<0.000000e+00> : vector<8x128xf32>
    %394 = tpu.matmul %392, %393, %cst_212 {dimension_numbers = #tpu.dot_dimension_numbers<[1], [0], [0], [1], [0, 0, 1, 1], [], []>} : vector<8x32xbf16>, vector<32x128xbf16>, vector<8x128xf32> -> vector<8x128xf32>
    %c0_213 = arith.constant 0 : index
    %c0_214 = arith.constant 0 : index
    %395 = vector.load %arg27[%c0_213, %c0_214] : memref<1x128xf32, #tpu.memory_space<vmem>>, vector<1x128xf32>
    %396 = vector.broadcast %395 : vector<1x128xf32> to vector<8x128xf32>
    %397 = arith.addf %394, %396 : vector<8x128xf32>
    %c0_215 = arith.constant 0 : index
    %c0_216 = arith.constant 0 : index
    %c0_217 = arith.constant 0 : index
    %398 = vector.load %arg28[%c0_215, %c0_216, %c0_217] : memref<1x8x128xf32, #tpu.memory_space<vmem>>, vector<1x8x128xf32>
    %399 = vector.shape_cast %398 : vector<1x8x128xf32> to vector<8x128xf32>
    %400 = vector.shape_cast %397 : vector<8x128xf32> to vector<1x8x128xf32>
    tpu.vector_store %arg28[%c0_215, %c0_216, %c0_217], %400 {strides = array<i32>} : memref<1x8x128xf32, #tpu.memory_space<vmem>>, vector<1x8x128xf32>,
    return
  }
  func.func @transform_0(%arg0: i32) -> (i32, i32, i32) {
    %c0_i32 = arith.constant 0 : i32
    %c0_i32_0 = arith.constant 0 : i32
    %c0_i32_1 = arith.constant 0 : i32
    return %arg0, %c0_i32, %c0_i32_0 : i32, i32, i32
  }
  func.func @transform_1(%arg0: i32) -> (i32, i32, i32) {
    %c0_i32 = arith.constant 0 : i32
    %c0_i32_0 = arith.constant 0 : i32
    %c0_i32_1 = arith.constant 0 : i32
    return %arg0, %c0_i32, %c0_i32_0 : i32, i32, i32
  }
  func.func @transform_2(%arg0: i32) -> (i32, i32, i32) {
    %c0_i32 = arith.constant 0 : i32
    %c0_i32_0 = arith.constant 0 : i32
    %c0_i32_1 = arith.constant 0 : i32
    return %arg0, %c0_i32, %c0_i32_0 : i32, i32, i32
  }
  func.func @transform_3(%arg0: i32) -> (i32, i32, i32, i32) {
    %c0_i32 = arith.constant 0 : i32
    %c0_i32_0 = arith.constant 0 : i32
    %c0_i32_1 = arith.constant 0 : i32
    %c0_i32_2 = arith.constant 0 : i32
    return %arg0, %c0_i32, %c0_i32_0, %c0_i32_1 : i32, i32, i32, i32
  }
  func.func @transform_4(%arg0: i32) -> (i32, i32, i32, i32) {
    %c0_i32 = arith.constant 0 : i32
    %c0_i32_0 = arith.constant 0 : i32
    %c0_i32_1 = arith.constant 0 : i32
    %c0_i32_2 = arith.constant 0 : i32
    return %arg0, %c0_i32, %c0_i32_0, %c0_i32_1 : i32, i32, i32, i32
  }
  func.func @transform_5(%arg0: i32) -> (i32, i32, i32) {
    %c0_i32 = arith.constant 0 : i32
    %c0_i32_0 = arith.constant 0 : i32
    %c0_i32_1 = arith.constant 0 : i32
    %c0_i32_2 = arith.constant 0 : i32
    return %c0_i32, %c0_i32_0, %c0_i32_1 : i32, i32, i32
  }
  func.func @transform_6(%arg0: i32) -> (i32, i32, i32) {
    %c0_i32 = arith.constant 0 : i32
    %c0_i32_0 = arith.constant 0 : i32
    %c0_i32_1 = arith.constant 0 : i32
    %c0_i32_2 = arith.constant 0 : i32
    return %c0_i32, %c0_i32_0, %c0_i32_1 : i32, i32, i32
  }
  func.func @transform_7(%arg0: i32) -> (i32, i32, i32) {
    %c0_i32 = arith.constant 0 : i32
    %c0_i32_0 = arith.constant 0 : i32
    %c0_i32_1 = arith.constant 0 : i32
    %c0_i32_2 = arith.constant 0 : i32
    return %c0_i32, %c0_i32_0, %c0_i32_1 : i32, i32, i32
  }
  func.func @transform_8(%arg0: i32) -> (i32, i32, i32) {
    %c0_i32 = arith.constant 0 : i32
    %c0_i32_0 = arith.constant 0 : i32
    %c0_i32_1 = arith.constant 0 : i32
    %c0_i32_2 = arith.constant 0 : i32
    return %c0_i32, %c0_i32_0, %c0_i32_1 : i32, i32, i32
  }
  func.func @transform_9(%arg0: i32) -> (i32, i32, i32) {
    %c0_i32 = arith.constant 0 : i32
    %c0_i32_0 = arith.constant 0 : i32
    %c0_i32_1 = arith.constant 0 : i32
    %c0_i32_2 = arith.constant 0 : i32
    return %c0_i32, %c0_i32_0, %c0_i32_1 : i32, i32, i32
  }
  func.func @transform_10(%arg0: i32) -> (i32, i32, i32) {
    %c0_i32 = arith.constant 0 : i32
    %c0_i32_0 = arith.constant 0 : i32
    %c0_i32_1 = arith.constant 0 : i32
    %c0_i32_2 = arith.constant 0 : i32
    return %c0_i32, %c0_i32_0, %c0_i32_1 : i32, i32, i32
  }
  func.func @transform_11(%arg0: i32) -> (i32, i32, i32) {
    %c0_i32 = arith.constant 0 : i32
    %c0_i32_0 = arith.constant 0 : i32
    %c0_i32_1 = arith.constant 0 : i32
    %c0_i32_2 = arith.constant 0 : i32
    return %c0_i32, %c0_i32_0, %c0_i32_1 : i32, i32, i32
  }
  func.func @transform_12(%arg0: i32) -> (i32, i32, i32) {
    %c0_i32 = arith.constant 0 : i32
    %c0_i32_0 = arith.constant 0 : i32
    %c0_i32_1 = arith.constant 0 : i32
    %c0_i32_2 = arith.constant 0 : i32
    return %c0_i32, %c0_i32_0, %c0_i32_1 : i32, i32, i32
  }
  func.func @transform_13(%arg0: i32) -> (i32, i32, i32) {
    %c0_i32 = arith.constant 0 : i32
    %c0_i32_0 = arith.constant 0 : i32
    %c0_i32_1 = arith.constant 0 : i32
    %c0_i32_2 = arith.constant 0 : i32
    return %c0_i32, %c0_i32_0, %c0_i32_1 : i32, i32, i32
  }
  func.func @transform_14(%arg0: i32) -> (i32, i32, i32) {
    %c0_i32 = arith.constant 0 : i32
    %c0_i32_0 = arith.constant 0 : i32
    %c0_i32_1 = arith.constant 0 : i32
    %c0_i32_2 = arith.constant 0 : i32
    return %c0_i32, %c0_i32_0, %c0_i32_1 : i32, i32, i32
  }
  func.func @transform_15(%arg0: i32) -> (i32, i32, i32) {
    %c0_i32 = arith.constant 0 : i32
    %c0_i32_0 = arith.constant 0 : i32
    %c0_i32_1 = arith.constant 0 : i32
    %c0_i32_2 = arith.constant 0 : i32
    return %c0_i32, %c0_i32_0, %c0_i32_1 : i32, i32, i32
  }
  func.func @transform_16(%arg0: i32) -> (i32, i32, i32) {
    %c0_i32 = arith.constant 0 : i32
    %c0_i32_0 = arith.constant 0 : i32
    %c0_i32_1 = arith.constant 0 : i32
    %c0_i32_2 = arith.constant 0 : i32
    return %c0_i32, %c0_i32_0, %c0_i32_1 : i32, i32, i32
  }
  func.func @transform_17(%arg0: i32) -> (i32, i32, i32) {
    %c0_i32 = arith.constant 0 : i32
    %c0_i32_0 = arith.constant 0 : i32
    %c0_i32_1 = arith.constant 0 : i32
    %c0_i32_2 = arith.constant 0 : i32
    return %c0_i32, %c0_i32_0, %c0_i32_1 : i32, i32, i32
  }
  func.func @transform_18(%arg0: i32) -> (i32, i32, i32) {
    %c0_i32 = arith.constant 0 : i32
    %c0_i32_0 = arith.constant 0 : i32
    %c0_i32_1 = arith.constant 0 : i32
    %c0_i32_2 = arith.constant 0 : i32
    return %c0_i32, %c0_i32_0, %c0_i32_1 : i32, i32, i32
  }
  func.func @transform_19(%arg0: i32) -> (i32, i32, i32) {
    %c0_i32 = arith.constant 0 : i32
    %c0_i32_0 = arith.constant 0 : i32
    %c0_i32_1 = arith.constant 0 : i32
    %c0_i32_2 = arith.constant 0 : i32
    return %c0_i32, %c0_i32_0, %c0_i32_1 : i32, i32, i32
  }
  func.func @transform_20(%arg0: i32) -> (i32, i32, i32) {
    %c0_i32 = arith.constant 0 : i32
    %c0_i32_0 = arith.constant 0 : i32
    %c0_i32_1 = arith.constant 0 : i32
    %c0_i32_2 = arith.constant 0 : i32
    return %c0_i32, %c0_i32_0, %c0_i32_1 : i32, i32, i32
  }
  func.func @transform_21(%arg0: i32) -> (i32, i32, i32) {
    %c0_i32 = arith.constant 0 : i32
    %c0_i32_0 = arith.constant 0 : i32
    %c0_i32_1 = arith.constant 0 : i32
    %c0_i32_2 = arith.constant 0 : i32
    return %c0_i32, %c0_i32_0, %c0_i32_1 : i32, i32, i32
  }
  func.func @transform_22(%arg0: i32) -> (i32, i32, i32) {
    %c0_i32 = arith.constant 0 : i32
    %c0_i32_0 = arith.constant 0 : i32
    %c0_i32_1 = arith.constant 0 : i32
    %c0_i32_2 = arith.constant 0 : i32
    return %c0_i32, %c0_i32_0, %c0_i32_1 : i32, i32, i32
  }
  func.func @transform_23(%arg0: i32) -> (i32, i32, i32) {
    %c0_i32 = arith.constant 0 : i32
    %c0_i32_0 = arith.constant 0 : i32
    %c0_i32_1 = arith.constant 0 : i32
    %c0_i32_2 = arith.constant 0 : i32
    return %c0_i32, %c0_i32_0, %c0_i32_1 : i32, i32, i32
  }
  func.func @transform_24(%arg0: i32) -> (i32, i32, i32) {
    %c0_i32 = arith.constant 0 : i32
    %c0_i32_0 = arith.constant 0 : i32
    %c0_i32_1 = arith.constant 0 : i32
    %c0_i32_2 = arith.constant 0 : i32
    return %c0_i32, %c0_i32_0, %c0_i32_1 : i32, i32, i32
  }
  func.func @transform_25(%arg0: i32) -> (i32, i32) {
    %c0_i32 = arith.constant 0 : i32
    %c0_i32_0 = arith.constant 0 : i32
    %c0_i32_1 = arith.constant 0 : i32
    return %c0_i32, %c0_i32_0 : i32, i32
  }
  func.func @transform_26(%arg0: i32) -> (i32, i32) {
    %c0_i32 = arith.constant 0 : i32
    %c0_i32_0 = arith.constant 0 : i32
    %c0_i32_1 = arith.constant 0 : i32
    return %c0_i32, %c0_i32_0 : i32, i32
  }
  func.func @transform_27(%arg0: i32) -> (i32, i32, i32) {
    %c0_i32 = arith.constant 0 : i32
    %c0_i32_0 = arith.constant 0 : i32
    %c0_i32_1 = arith.constant 0 : i32
    return %arg0, %c0_i32, %c0_i32_0 : i32, i32, i32
  }
}

</mosaic_0001>

<bundles_post_ra>
// kernel: tpu_custom_call.1
= control target key start
LH: loop header
LB: loop body
LE: loop exit
PB: predicated region body
PF: predicated region fallthrough
CT: control target
= control target key end

     0   :  { %s8342_s0 = inlined_call_operand.hbm [shape: f32[2,8,32], index: 0, kind: input, shape index: {}]   ;;  %s8343_s1 = inlined_call_operand.hbm [shape: f32[2,8,32], index: 1, kind: input, shape index: {}]   ;;  %s8344_s2 = inlined_call_operand.hbm [shape: f32[2,8,32], index: 2, kind: input, shape index: {}]   ;;  %s8345_s3 = inlined_call_operand.hbm [shape: f32[2,1,8,8], index: 3, kind: input, shape index: {}]   ;;  %s8346_s4 = inlined_call_operand.hbm [shape: f32[2,1,1,8], index: 4, kind: input, shape index: {}]   ;;  %s8347_s5 = inlined_call_operand.vmem [shape: bf16[2,32,32], index: 5, kind: input, shape index: {}]   ;;  %s8348_s6 = inlined_call_operand.vmem [shape: bf16[2,32,32], index: 6, kind: input, shape index: {}]   ;;  %s8349_s7 = inlined_call_operand.vmem [shape: bf16[2,32,32], index: 7, kind: input, shape index: {}]   ;;  %s8350_s8 = inlined_call_operand.vmem [shape: bf16[2,32,32], index: 8, kind: input, shape index: {}]   ;;  %s8351_s9 = inlined_call_operand.hbm [shape: f32[2,1,32], index: 9, kind: input, shape index: {}]   ;;  %s8352_s10 = inlined_call_operand.hbm [shape: f32[2,1,32], index: 10, kind: input, shape index: {}]   ;;  %s8353_s11 = inlined_call_operand.hbm [shape: f32[2,1,32], index: 11, kind: input, shape index: {}]   ;;  %s8354_s12 = inlined_call_operand.vmem [shape: bf16[2,32,32], index: 12, kind: input, shape index: {}]   ;;  %s8355_s13 = inlined_call_operand.hbm [shape: bf16[2,32,32], index: 13, kind: input, shape index: {}]   ;;  %s8356_s14 = inlined_call_operand.hbm [shape: bf16[2,32,32], index: 14, kind: input, shape index: {}]   ;;  %s8357_s15 = inlined_call_operand.hbm [shape: bf16[2,32,32], index: 15, kind: input, shape index: {}]   ;;  %s8358_s16 = inlined_call_operand.hbm [shape: f32[2,1,32], index: 16, kind: input, shape index: {}]   ;;  %s8359_s17 = inlined_call_operand.hbm [shape: f32[2,1,32], index: 17, kind: input, shape index: {}]   ;;  %s8360_s18 = inlined_call_operand.hbm [shape: f32[2,1,32], index: 18, kind: input, shape index: {}]   ;;  %s8361_s19 = inlined_call_operand.hbm [shape: bf16[2,32,128], index: 19, kind: input, shape index: {}]   ;;  %s8362_s20 = inlined_call_operand.vmem [shape: f32[2,1,128], index: 20, kind: input, shape index: {}]   ;;  %s8363_s21 = inlined_call_operand.vmem [shape: bf16[2,128,32], index: 21, kind: input, shape index: {}]   ;;  %s8364_s22 = inlined_call_operand.vmem [shape: f32[2,1,32], index: 22, kind: input, shape index: {}]   ;;  %s8365_s23 = inlined_call_operand.hbm [shape: f32[2,1,32], index: 23, kind: input, shape index: {}]   ;;  %s8366_s24 = inlined_call_operand.vmem [shape: f32[2,1,32], index: 24, kind: input, shape index: {}]   ;;  %s8367_s25 = inlined_call_operand.vmem [shape: bf16[32,128], index: 25, kind: input, shape index: {}]   ;;  %s8368_s26 = inlined_call_operand.vmem [shape: f32[1,128], index: 26, kind: input, shape index: {}]   ;;  %s8369_s27 = inlined_call_operand.hbm [shape: f32[2,8,128], index: 27, kind: output, shape index: {}]  }
   0x1   :  { %8425 = sst [smem:[#allocation47_spill]] %s8342_s0 }
   0x2   :  { %8426 = sst [smem:[#allocation48_spill]] %s8343_s1 }
   0x3   :  { %8427 = sst [smem:[#allocation49_spill]] %s8344_s2 }
   0x4   :  { %8428 = sst [smem:[#allocation50_spill]] %s8345_s3 }
   0x5   :  { %8429 = sst [smem:[#allocation51_spill]] %s8346_s4 }
   0x6   :  { %8430 = sst [smem:[#allocation52_spill]] %s8347_s5 }
   0x7   :  { %8431 = sst [smem:[#allocation53_spill]] %s8348_s6 }
   0x8   :  { %8432 = sst [smem:[#allocation54_spill]] %s8349_s7 }
   0x9   :  { %8433 = sst [smem:[#allocation55_spill]] %s8350_s8 }
   0xa   :  { %8434 = sst [smem:[#allocation56_spill]] %s8351_s9 }
   0xb   :  { %8435 = sst [smem:[#allocation57_spill]] %s8352_s10 }
   0xc   :  { %8436 = sst [smem:[#allocation58_spill]] %s8353_s11 }
   0xd   :  { %8437 = sst [smem:[#allocation59_spill]] %s8354_s12 }
   0xe   :  { %8438 = sst [smem:[#allocation60_spill]] %s8355_s13 }
   0xf   :  { %8439 = sst [smem:[#allocation61_spill]] %s8356_s14 }
  0x10   :  { %8440 = sst [smem:[#allocation62_spill]] %s8357_s15 }
  0x11   :  { %8441 = sst [smem:[#allocation63_spill]] %s8358_s16 }
  0x12   :  { %8442 = sst [smem:[#allocation64_spill]] %s8360_s18 }
  0x13   :  { %8443 = sst [smem:[#allocation65_spill]] %s8362_s20 }
  0x14   :  { %8444 = sst [smem:[#allocation66_spill]] %s8363_s21 }
  0x15   :  { %8445 = sst [smem:[#allocation67_spill]] %s8364_s22 }
  0x16   :  { %8446 = sst [smem:[#allocation68_spill]] %s8366_s24 }
  0x17   :  { %8447 = sst [smem:[#allocation69_spill]] %s8367_s25 }
  0x18   :  { %8448 = sst [smem:[#allocation70_spill]] %s8368_s26 }
  0x19   :  { %8449 = sst [smem:[#allocation71_spill]] %s8369_s27 }
  0x1a   :  { %32 = vsyncpa [#allocation3], 0 }
  0x1b   :  { %34 = vsyncpa [#allocation3 + $0x1], 0 }
  0x1c   :  { %35 = vsyncpa [#allocation6], 0 }
  0x1d   :  { %37 = vsyncpa [#allocation6 + $0x1], 0 }
  0x1e   :  { %38 = vsyncpa [#allocation9], 0 }
  0x1f   :  { %40 = vsyncpa [#allocation9 + $0x1], 0 }
  0x20   :  { %41 = vsyncpa [#allocation12], 0 }
  0x21   :  { %42 = vsyncpa [#allocation15], 0 }
  0x22   :  { %43 = vsyncpa [#allocation18], 0 }
  0x23   :  { %44 = vsyncpa [#allocation21], 0 }
  0x24   :  { %45 = vsyncpa [#allocation24], 0 }
  0x25   :  { %46 = vsyncpa [#allocation27], 0 }
  0x26   :  { %47 = vsyncpa [#allocation4], 0 }
  0x27   :  { %49 = vsyncpa [#allocation4 + $0x1], 0  ;;  %s6849_s7 = smov 0   ;;  %s6851_s4 = smov 0  }
  0x28   :  { %s6853_s8 = smov 0   ;;  %s6855_s30 = smov 0  }
  0x29 LB: > { %8450 = sst [smem:[#allocation39_spill]] %s6670_s7  ;;  %s6873_s10 = sadd.s32 4294967295, %s6682_s30   ;;  %s6682_s30 = sphi %s6855_s30, %s8523_s30   ;;  %s6678_s8 = sphi %s6853_s8, %s8525_s8   ;;  %s6674_s4 = sphi %s6851_s4, %s8527_s4   ;;  %s6670_s7 = sphi %s6849_s7, %s8526_s7  }
  0x2a   : > { %8451 = sst [smem:[#allocation40_spill]] %s6678_s8  ;;  %p5395_p0 = scmp.ge.s32.totalorder %s6682_s30, 1 }
  0x2b   : > { %s8452_s28 = sld [smem:[#allocation56_spill]]  ;;  %p8397_p1 = scmp.eq.s32.totalorder %s6873_s10, 0 }
  0x2c   : > { %8453 = sst [smem:[#allocation41_spill]] %s6873_s10  ;;  %p678_p2 = scmp.lt.s32.totalorder %s6682_s30, 3 }
  0x2d   : > { %s6684_s1 = smov [#allocation11]   ;;  %s8455_s3 = sld [smem:[#allocation58_spill]] }
  0x2e   : > { %p6878_p3 = pnand %p5395_p0, %p678_p2  ;;  %s703_s6 = sshll.u32 %s6684_s1, 4  ;;  %s704_s6 = int_to_ptr.vmem [resolvable:$true] %s703_s6 }
  0x2f   : > { %s8388_s1 = smov 16   ;;  %s8390_s27 = smov 1  }
  0x30   : > { %p5869_p4 = pneg %p6878_p3  ;;  %s8457_s14 = sld [smem:[#allocation61_spill]] }
  0x31   : > { %s701_s0 = sshll.u32 %s8452_s28, 4  ;;  %s6685_s28 = smov [#allocation14]   ;;  %s702_s0 = int_to_ptr.hbm [resolvable:$true] %s701_s0 }
  0x32   : > { %p6890_p6 = pnand %p5869_p4, %p8397_p1  ;;  %s731_s26 = sshll.u32 %s6685_s28, 4  ;;  %s732_s26 = int_to_ptr.vmem [resolvable:$true] %s731_s26 }
  0x33   : > { %s729_s9 = sshll.u32 %s8455_s3, 4  ;;  %s6688_s28 = smov [#allocation17]   ;;  %s730_s9 = int_to_ptr.hbm [resolvable:$true] %s729_s9 }
  0x34   : > { %5872 = dma.hbm_to_vmem [thread:$0]  (!%p6890_p6), %s702_s0, 32, %s704_s6, [#allocation12], %s8388_s1, %s8388_s1, %s8390_s27  }
  0x35   : > { %5878 = dma.hbm_to_vmem [thread:$0]  (!%p6890_p6), %s730_s9, 32, %s732_s26, [#allocation15], %s8388_s1, %s8388_s1, %s8390_s27  }
  0x36   : > { %s760_s3 = sshll.u32 %s8457_s14, 4  ;;  %s762_s25 = sshll.u32 %s6688_s28, 4  ;;  %s761_s3 = int_to_ptr.hbm [resolvable:$true] %s760_s3  ;;  %s763_s25 = int_to_ptr.vmem [resolvable:$true] %s762_s25 }
  0x37   : > { %s8458_s16 = sld [smem:[#allocation63_spill]]  ;;  %s8384_s6 = smov 64  }
  0x38   : > { %s8386_s20 = smov 4   ;;  %s6691_s26 = smov [#allocation20]  }
  0x39   : > { %5884 = dma.hbm_to_vmem [thread:$0]  (!%p6890_p6), %s761_s3, 512, %s763_s25, [#allocation18], %s8384_s6, %s8384_s6, %s8386_s20  }
  0x3a   : > { %s790_s9 = sshll.u32 %s6691_s26, 4  ;;  %s8459_s18 = sld [smem:[#allocation64_spill]]  ;;  %s791_s9 = int_to_ptr.vmem [resolvable:$true] %s790_s9 }
  0x3b   : > { %s6692_s25 = smov [#allocation23]   ;;  %s5394_s3 = sadd.s32 4294967294, %s6682_s30  }
  0x3c   : > { %s818_s2 = sshll.u32 %s6692_s25, 4  ;;  %s6930_s28 = sadd.s32 1, %s6682_s30   ;;  %s819_s2 = int_to_ptr.vmem [resolvable:$true] %s818_s2 }
  0x3d   : > { %s788_s0 = sshll.u32 %s8458_s16, 4  ;;  %8460 = sst [smem:[#allocation42_spill]] %s6930_s28  ;;  %s789_s0 = int_to_ptr.hbm [resolvable:$true] %s788_s0 }
  0x3e   : > { %5890 = dma.hbm_to_vmem [thread:$0]  (!%p6890_p6), %s789_s0, 32, %s791_s9, [#allocation21], %s8388_s1, %s8388_s1, %s8390_s27  }
  0x3f   : > { %s62_s26 = sadd.s32 1, %s6678_s8  ;;  %s59_s11 = ssub.s32 %s6682_s30, %s6930_s28 }
  0x40   : > { %s816_s24 = sshll.u32 %s8459_s18, 4  ;;  %p69_p7 = scmp.ne.s32.totalorder %s6678_s8, %s6674_s4  ;;  %s817_s24 = int_to_ptr.hbm [resolvable:$true] %s816_s24 }
  0x41   : > { %5896 = dma.hbm_to_vmem [thread:$0]  (!%p6890_p6), %s817_s24, 32, %s819_s2, [#allocation24], %s8388_s1, %s8388_s1, %s8390_s27  }
  0x42   : > { %p60_p8 = scmp.eq.s32.totalorder %s59_s11, 0  ;;  %p70_p9 = scmp.eq.s32.totalorder %s6682_s30, 0 }
  0x43   : > { %p75_p10 = scmp.ne.s32.totalorder %s6674_s4, %s6670_s7  ;;  %p665_p11 = scmp.eq.s32.totalorder %s6873_s10, 1 }
  0x44   : > { %s6942_s0 = scalar_select %p60_p8, %s6678_s8, %s62_s26  }
  0x45   : > { %p71_p12 = por %p70_p9, %p69_p7  ;;  %p6946_p13 = por %p8397_p1, %p75_p10 }
  0x46   : > { %8461 = sst [smem:[#allocation43_spill]] %s6942_s0  ;;  %p6950_p0 = por %p665_p11, %p69_p7 }
  0x47   : > { %s8462_s9 = scalar_select %p6946_p13, 1, 0 }
  0x48   : > { %s8464_s22 = scalar_select %p6950_p0, 1, 0 }
  0x49   : > { %8463 = sst [smem:[#allocation44_spill]] %s8462_s9  ;;  %p671_p2 = scmp.eq.s32.totalorder %s5394_s3, 1 }
  0x4a   : > { %8465 = sst [smem:[#allocation45_spill]] %s8464_s22  ;;  %p5934_p4 = scmp.lt.s32.totalorder %s6682_s30, 2 }
  0x4b   : > { %s6956_s24 = sand.u32 1, %s6678_s8   ;;  %p6958_p5 = por %p671_p2, %p75_p10 }
  0x4c   : > { %s6963_s2 = sshll.u32 %s6956_s24, 3  ;;  %s6966_s26 = sshll.u32 %s6682_s30, 3 }
  0x4d   : > { %s8466_s25 = scalar_select %p6958_p5, 1, 0 }
  0x4e   : > { %p6968_p8 = pnand %p5934_p4, %p71_p12  ;;  %s897_s3 = sand.u32 1, %s6682_s30  }
  0x4f   : > { %8467 = sst [smem:[#allocation46_spill]] %s8466_s25  ;;  %s901_s14 = scalar_lea.vmem [#allocation5], %s6963_s2 }
  0x50   : > { %s8469_s1 = sld [smem:[#allocation48_spill]]  ;;  %s909_s16 = sshll.u32 %s901_s14, 4  ;;  %s910_s16 = int_to_ptr.vmem [resolvable:$true] %s909_s16 }
  0x51   : > { %s6978_s0 = scalar_lea.sflag [#allocation6], %s897_s3  ;;  %p6982_p9 = pneg %p6968_p8 }
  0x56   : > { %s905_s27 = scalar_lea.hbm %s8469_s1, %s6966_s26 }
  0x57   : > { %s907_s18 = sshll.u32 %s905_s27, 4  ;;  %s6261_s27 = scalar_lea.hbm %s8469_s1, 16  ;;  %s908_s18 = int_to_ptr.hbm [resolvable:$true] %s907_s18 }
  0x58   : > { %s6254_s8 = sshra.s32 %s908_s18, 4  ;;  %s6255_s8 = int_to_ptr.hbm [resolvable:$true] %s6254_s8 }
  0x59   : > { %s6256_s28 = scalar_lea.hbm %s6255_s8, 8  ;;  %p6262_p12 = scmp.lt.s32.totalorder %s6255_s8, %s8469_s1 }
  0x5a   : > { %p6257_p7 = scmp.ne.s32.totalorder %s6255_s8, %s6256_s28  ;;  %p6263_p2 = scmp.lt.s32.totalorder %s6261_s27, %s6256_s28 }
  0x5c   : > { %p6259_p10 = pnand %p6982_p9, %p6257_p7  ;;  %p6264_p4 = por %p6263_p2, %p6262_p12 }
  0x5e   : > { %p6260_p11 = pneg %p6259_p10 }
  0x60   : > { %p6265_p1 = pnand %p6264_p4, %p6260_p11 }
  0x62   : > { %6268 = shalt.err (!%p6265_p1)
}
  0x63   : > { %5909 = dma.hbm_to_vmem [thread:$0]  (!%p6968_p8), %s908_s18, 128, %s910_s16, %s6978_s0  }
  0x64   : > { %s8471_s12 = sld [smem:[#allocation50_spill]]  ;;  %s939_s10 = scalar_lea.vmem [#allocation8], %s6963_s2 }
  0x65   : > { %s947_s9 = sshll.u32 %s939_s10, 4  ;;  %s7002_s7 = scalar_lea.sflag [#allocation9], %s897_s3  ;;  %s948_s9 = int_to_ptr.vmem [resolvable:$true] %s947_s9 }
  0x6a   : > { %s943_s20 = scalar_lea.hbm %s8471_s12, %s6966_s26  ;;  %s6291_s18 = scalar_lea.hbm %s8471_s12, 16 }
  0x6b   : > { %s945_s14 = sshll.u32 %s943_s20, 4  ;;  %s946_s14 = int_to_ptr.hbm [resolvable:$true] %s945_s14 }
  0x6c   : > { %s6284_s8 = sshra.s32 %s946_s14, 4  ;;  %s6285_s8 = int_to_ptr.hbm [resolvable:$true] %s6284_s8 }
  0x6d   : > { %s6286_s28 = scalar_lea.hbm %s6285_s8, 8  ;;  %p6292_p11 = scmp.lt.s32.totalorder %s6285_s8, %s8471_s12 }
  0x6e   : > { %p6287_p1 = scmp.ne.s32.totalorder %s6285_s8, %s6286_s28  ;;  %p6293_p12 = scmp.lt.s32.totalorder %s6291_s18, %s6286_s28 }
  0x70   : > { %p6289_p7 = pnand %p6287_p1, %p6982_p9  ;;  %p6294_p2 = por %p6293_p12, %p6292_p11 }
  0x72   : > { %p6290_p10 = pneg %p6289_p7 }
  0x74   : > { %p6295_p4 = pnand %p6294_p2, %p6290_p10 }
  0x76   : > { %6298 = shalt.err (!%p6295_p4)
}
  0x77   : > { %5915 = dma.hbm_to_vmem [thread:$0]  (!%p6968_p8), %s946_s14, 128, %s948_s9, %s7002_s7  }
  0x78   : > { %s8472_s6 = sld [smem:[#allocation57_spill]]  ;;  %s6693_s27 = smov [#allocation13]  }
  0x79   : > { %s717_s16 = sshll.u32 %s6693_s27, 4  ;;  %s8473_s13 = sld [smem:[#allocation60_spill]]  ;;  %s718_s16 = int_to_ptr.vmem [resolvable:$true] %s717_s16 }
  0x7a   : > { %s8474_s21 = smov 1   ;;  %s8475_s22 = smov 16  }
  0x7b   : > { %s6694_s9 = smov [#allocation16]   ;;  %s8476_s15 = sld [smem:[#allocation62_spill]] }
  0x7c   : > { %s748_s14 = sshll.u32 %s6694_s9, 4  ;;  %s8478_s27 = smov 64   ;;  %s749_s14 = int_to_ptr.vmem [resolvable:$true] %s748_s14 }
  0x7d   : > { %s802_s12 = sshll.u32 %s8359_s17, 4  ;;  %s6696_s1 = smov [#allocation22]   ;;  %s803_s12 = int_to_ptr.hbm [resolvable:$true] %s802_s12 }
  0x7e   : > { %s715_s20 = sshll.u32 %s8472_s6, 4  ;;  %s8477_s6 = smov 4   ;;  %s716_s20 = int_to_ptr.hbm [resolvable:$true] %s715_s20 }
  0x7f   : > { %s746_s18 = sshll.u32 %s8473_s13, 4  ;;  %s804_s9 = sshll.u32 %s6696_s1, 4  ;;  %s747_s18 = int_to_ptr.hbm [resolvable:$true] %s746_s18  ;;  %s805_s9 = int_to_ptr.vmem [resolvable:$true] %s804_s9 }
  0x80   : > { %5875 = dma.hbm_to_vmem [thread:$0]  (!%p6890_p6), %s716_s20, 32, %s718_s16, [#allocation12], %s8475_s22, %s8475_s22, %s8474_s21  }
  0x81   : > { %s774_s3 = sshll.u32 %s8476_s15, 4  ;;  %s6695_s20 = smov [#allocation19]   ;;  %s775_s3 = int_to_ptr.hbm [resolvable:$true] %s774_s3 }
  0x82   : > { %5881 = dma.hbm_to_vmem [thread:$0]  (!%p6890_p6), %s747_s18, 512, %s749_s14, [#allocation15], %s8478_s27, %s8478_s27, %s8477_s6  }
  0x83   : > { %s776_s16 = sshll.u32 %s6695_s20, 4  ;;  %s830_s14 = sshll.u32 %s8361_s19, 4  ;;  %s777_s16 = int_to_ptr.vmem [resolvable:$true] %s776_s16  ;;  %s831_s14 = int_to_ptr.hbm [resolvable:$true] %s830_s14 }
  0x84   : > { %5887 = dma.hbm_to_vmem [thread:$0]  (!%p6890_p6), %s775_s3, 512, %s777_s16, [#allocation18], %s8478_s27, %s8478_s27, %s8477_s6  }
  0x85   : > { %5893 = dma.hbm_to_vmem [thread:$0]  (!%p6890_p6), %s803_s12, 32, %s805_s9, [#allocation21], %s8475_s22, %s8475_s22, %s8474_s21  }
  0x86   : > { %s853_s3 = sshll.u32 %s8365_s23, 4  ;;  %s6697_s20 = smov [#allocation25]   ;;  %s854_s3 = int_to_ptr.hbm [resolvable:$true] %s853_s3 }
  0x87   : > { %s832_s16 = sshll.u32 %s6697_s20, 4  ;;  %s6698_s1 = smov [#allocation26]   ;;  %s833_s16 = int_to_ptr.vmem [resolvable:$true] %s832_s16 }
  0x88   : > { %5899 = dma.hbm_to_vmem [thread:$0]  (!%p6890_p6), %s831_s14, 512, %s833_s16, [#allocation24], %s8478_s27, %s8478_s27, %s8477_s6  }
  0x89   : > { %s855_s10 = sshll.u32 %s6698_s1, 4  ;;  %s8479_s18 = sld [smem:[#allocation47_spill]]  ;;  %s856_s10 = int_to_ptr.vmem [resolvable:$true] %s855_s10 }
  0x8a   : > { %5902 = dma.hbm_to_vmem [thread:$0]  (!%p6890_p6), %s854_s3, 32, %s856_s10, [#allocation27], %s8475_s22, %s8475_s22, %s8474_s21  }
  0x8b   : > { %s882_s28 = scalar_lea.vmem [#allocation2], %s6963_s2  ;;  %s879_s15 = scalar_lea.sflag [#allocation3], %s6956_s24 }
  0x8c   : > { %s890_s20 = sshll.u32 %s882_s28, 4  ;;  %s891_s20 = int_to_ptr.vmem [resolvable:$true] %s890_s20 }
  0x8f   : > { %s886_s8 = scalar_lea.hbm %s8479_s18, %s6966_s26  ;;  %s6501_s21 = scalar_lea.hbm %s8479_s18, 16 }
  0x90   : > { %s888_s13 = sshll.u32 %s886_s8, 4  ;;  %s889_s13 = int_to_ptr.hbm [resolvable:$true] %s888_s13 }
  0x91   : > { %s6494_s6 = sshra.s32 %s889_s13, 4  ;;  %s6495_s6 = int_to_ptr.hbm [resolvable:$true] %s6494_s6 }
  0x92   : > { %s6496_s27 = scalar_lea.hbm %s6495_s6, 8  ;;  %p6502_p6 = scmp.lt.s32.totalorder %s6495_s6, %s8479_s18 }
  0x93   : > { %p6497_p1 = scmp.ne.s32.totalorder %s6495_s6, %s6496_s27  ;;  %p6503_p11 = scmp.lt.s32.totalorder %s6501_s21, %s6496_s27 }
  0x95   : > { %p6499_p7 = pnand %p6497_p1, %p6982_p9  ;;  %p6504_p12 = por %p6503_p11, %p6502_p6 }
  0x97   : > { %p6500_p10 = pneg %p6499_p7 }
  0x99   : > { %p6505_p2 = pnand %p6504_p12, %p6500_p10 }
  0x9b   : > { %6508 = shalt.err (!%p6505_p2)
}
  0x9c   : > { %5906 = dma.hbm_to_vmem [thread:$0]  (!%p6968_p8), %s889_s13, 128, %s891_s20, %s879_s15  }
  0x9d   : > { %s8480_s10 = sld [smem:[#allocation49_spill]]  ;;  %s920_s9 = scalar_lea.vmem [#allocation7], %s6963_s2 }
  0x9e   : > { %s928_s8 = sshll.u32 %s920_s9, 4  ;;  %s929_s8 = int_to_ptr.vmem [resolvable:$true] %s928_s8 }
  0xa3   : > { %s924_s12 = scalar_lea.hbm %s8480_s10, %s6966_s26  ;;  %s6531_s13 = scalar_lea.hbm %s8480_s10, 16 }
  0xa4   : > { %s926_s28 = sshll.u32 %s924_s12, 4  ;;  %s927_s28 = int_to_ptr.hbm [resolvable:$true] %s926_s28 }
  0xa5   : > { %s6524_s6 = sshra.s32 %s927_s28, 4  ;;  %s6525_s6 = int_to_ptr.hbm [resolvable:$true] %s6524_s6 }
  0xa6   : > { %s6526_s27 = scalar_lea.hbm %s6525_s6, 8  ;;  %p6532_p10 = scmp.lt.s32.totalorder %s6525_s6, %s8480_s10 }
  0xa7   : > { %p6527_p4 = scmp.ne.s32.totalorder %s6525_s6, %s6526_s27  ;;  %p6533_p6 = scmp.lt.s32.totalorder %s6531_s13, %s6526_s27 }
  0xa9   : > { %p6529_p1 = pnand %p6527_p4, %p6982_p9  ;;  %p6534_p11 = por %p6533_p6, %p6532_p10 }
  0xab   : > { %p6530_p7 = pneg %p6529_p1 }
  0xad   : > { %p6535_p12 = pnand %p6534_p11, %p6530_p7 }
  0xaf   : > { %6538 = shalt.err (!%p6535_p12)
}
  0xb0   : > { %5912 = dma.hbm_to_vmem [thread:$0]  (!%p6968_p8), %s927_s28, 128, %s929_s8, %s6978_s0  }
  0xb1   : > { %s8481_s21 = sld [smem:[#allocation51_spill]]  ;;  %s957_s3 = scalar_lea.vmem [#allocation10], %s6956_s24 }
  0xb2   : > { %s964_s16 = sshll.u32 %s957_s3, 4  ;;  %s965_s16 = int_to_ptr.vmem [resolvable:$true] %s964_s16 }
  0xb7   : > { %s960_s22 = scalar_lea.hbm %s8481_s21, %s6682_s30  ;;  %s6561_s0 = scalar_lea.hbm %s8481_s21, 2 }
  0xb8   : > { %s962_s1 = sshll.u32 %s960_s22, 4  ;;  %s963_s1 = int_to_ptr.hbm [resolvable:$true] %s962_s1 }
  0xb9   : > { %s6554_s12 = sshra.s32 %s963_s1, 4  ;;  %s6555_s12 = int_to_ptr.hbm [resolvable:$true] %s6554_s12 }
  0xba   : > { %s6556_s9 = scalar_lea.hbm %s6555_s12, 1  ;;  %p6562_p7 = scmp.lt.s32.totalorder %s6555_s12, %s8481_s21 }
  0xbb   : > { %p6557_p2 = scmp.ne.s32.totalorder %s6555_s12, %s6556_s9  ;;  %p6563_p10 = scmp.lt.s32.totalorder %s6561_s0, %s6556_s9 }
  0xbd   : > { %p6559_p4 = pnand %p6557_p2, %p6982_p9  ;;  %p6564_p6 = por %p6563_p10, %p6562_p7 }
  0xbf   : > { %p6560_p1 = pneg %p6559_p4 }
  0xc1   : > { %p6565_p11 = pnand %p6564_p6, %p6560_p1 }
  0xc3   : > { %6568 = shalt.err (!%p6565_p11)
}
  0xc4   : > { %5918 = dma.hbm_to_vmem [thread:$0]  (!%p6968_p8), %s963_s1, 16, %s965_s16, %s7002_s7  }
  0xc5   : > { %973 = sbr.rel (%p6878_p3) target bundleno = 6319 (0x18af), region = 128  ;;  %s7114_s25 = sand.u32 (!%p6878_p3), 1, %s6674_s4  }
  0xc6   : > { %s7117_s5 = sshll.u32 (!%p6878_p3), %s7114_s25, 3  ;;  %s976_s14 = scalar_lea.sflag (!%p6878_p3), [#allocation3], %s7114_s25 }
  0xc7   : > { %s979_s13 = scalar_lea.vmem (!%p6878_p3), [#allocation2], %s7117_s5 }
  0xca   : > { %6629 = dma.done.wait (%p6946_p13), %s976_s14, 128  }
  0xcb   : > { %6631 = vsyncadd (%p6946_p13), %s976_s14, 4294967168  ;;  %s8483_s11 = sld [smem:[#allocation41_spill]]  ;;  %s8410_s15 = scalar_lea.vmem [#allocation5], %s7117_s5 }
  0xd1   : > { %s985_s29 = sand.u32 1, %s8483_s11  }
  0xd2   : > { %s986_s7 = scalar_lea.sflag [#allocation6], %s985_s29 }
  0xd3   : > { %6633 = dma.done.wait (%p6946_p13), %s986_s7, 256  }
  0xd4   : > { %6635 = vsyncadd (%p6946_p13), %s986_s7, 4294967040  ;;  %s999_s20 = scalar_lea.vmem [#allocation7], %s7117_s5  ;;  %s1006_s2 = scalar_lea.sflag [#allocation9], %s985_s29 }
  0xd5   : > { %s1009_s26 = scalar_lea.vmem [#allocation8], %s7117_s5 }
  0xd6   : > { %6637 = dma.done.wait (%p6946_p13), %s1006_s2, 144  }
  0xd7   : > { %6639 = vsyncadd (%p6946_p13), %s1006_s2, 4294967152  ;;  %s1018_s22 = scalar_lea.vmem [#allocation10], %s7114_s25  ;;  %p8484_p3 = scmp.eq.s32.totalorder %s8483_s11, 0 }
  0xd9   : > { %6641 = dma.done.wait (%p8484_p3), [#allocation12], 64   ;;  %p8485_p8 = pmov %p8484_p3 }
  0xda   : > { %p8486_p9 = pmov %p8484_p3 }
  0xdb   : > { %6643 = vsyncadd (%p8485_p8), [#allocation12], 4294967232 }
  0xdc   : > { %6645 = dma.done.wait (%p8486_p9), [#allocation15], 544   ;;  %p8487_p12 = pmov %p8484_p3 }
  0xdd   : > { %p8488_p2 = pmov %p8484_p3 }
  0xde   : > { %6647 = vsyncadd (%p8487_p12), [#allocation15], 4294966752 }
  0xdf   : > { %6649 = dma.done.wait (%p8488_p2), [#allocation18], 1024   ;;  %p8489_p4 = pmov %p8488_p2 }
  0xe0   : > { %p8490_p13 = pmov %p8488_p2 }
  0xe1   : > { %6651 = vsyncadd (%p8489_p4), [#allocation18], 4294966272 }
  0xe2   : > { %6653 = dma.done.wait (%p8490_p13), [#allocation21], 64   ;;  %p8491_p1 = pmov %p8488_p2 }
  0xe4   : > { %6655 = vsyncadd (%p8491_p1), [#allocation21], 4294967232  ;;  %p8492_p7 = pmov %p8491_p1 }
  0xe5   : > { %p8493_p10 = pmov %p8491_p1 }
  0xe6   : > { %6657 = dma.done.wait (%p8492_p7), [#allocation24], 544  }
  0xe7   : > { %6659 = vsyncadd (%p8493_p10), [#allocation24], 4294966752  ;;  %p8494_p6 = pmov %p8491_p1 }
  0xe8   : > { %p8495_p11 = pmov %p8491_p1 }
  0xe9   : > { %6661 = dma.done.wait (%p8494_p6), [#allocation27], 32  }
  0xea   : > { %6663 = vsyncadd (%p8495_p11), [#allocation27], 4294967264  ;;  %s8496_s1 = sld [smem:[#allocation52_spill]]  ;;  %v7176_v4 = vld [vmem:[%s979_s13] sm:$0xff]  ;;  %vm1200_vm0 = vcmask 261120   ;;  %s8415_s24 = smov 104  }
  0xeb   : > { %s8497_s6 = sld [smem:[#allocation53_spill]]  ;;  %v7180_v5 = vpack.c.bf16 %v7176_v4, %v7176_v4  ;;  %s8419_s14 = smov 120   ;;  %v6702_v11 = vmov 1983009808   ;;  %vm1228_vm1 = vcmask 1047556   ;;  %vm1628_vm2 = vcmask 64512  }
  0xec   : > { %s8417_s13 = smov 112   ;;  %v1233_v12 = vunpack.c.l.s4 %v6702_v11  ;;  %v6703_v24 = vmov 1934713408   ;;  %s8498_s2 = sld [smem:[#allocation54_spill]]  ;;  %vm1999_vm4 = vcmask 130048   ;;  %vm2001_vm5 = vcmask 195584  }
  0xed   : > { %v1257_v25 = vunpack.c.l.s4 %v6703_v24  ;;  %s8408_s12 = smov 24   ;;  %s8411_s9 = smov 8  }
  0xee   : > { %v7193_v20 = vunpack.c.0.s8 %v1233_v12  ;;  %s8499_s8 = sld [smem:[#allocation55_spill]]  ;;  %s8511_s0 = smov 104  }
  0xef   : > { %v7202_v33 = vunpack.c.0.s8 %v1257_v25  ;;  %s8505_s29 = sld [smem:[#allocation66_spill]] }
  0xf0   : > { %v5760_v0 = vld [vmem:[%s8496_s1 + $0x8] sm:$0xff]  ;;  %v5759_v2 = vld [vmem:[%s8496_s1] sm:$0xff]  ;;  %s8506_s7 = sld [smem:[#allocation65_spill]] }
  0xf1   : > { %v5762_v1 = vld [vmem:[%s8497_s6 + $0x8] sm:$0xff]  ;;  %v5761_v3 = vld [vmem:[%s8497_s6] sm:$0xff]  ;;  %1210 = vmatpush.bf16.msra.mxu0 %v5760_v0 }
  0xf2   : > { %1356 = vmatpush.bf16.msra.mxu1 %v5762_v1 }
  0xf4   : > { %s8500_s28 = smov %s8499_s8 }
  0xf5   : > { %1211 = vmatpush.bf16.msra.mxu0 %v5759_v2 }
  0xf6   : > { %1357 = vmatpush.bf16.msra.mxu1 %v5761_v3  ;;  %s8507_s3 = smov %s8506_s7 }
  0xf8   : > { %5441 = vmatmul.msk.bf16.vlgmr.msra.gmra.mxu0 %vm1200_vm0, %v7180_v5 }
  0xf9   : > { %5450 = vmatmul.msk.bf16.vlgmr.msra.gmra.mxu1 %vm1200_vm0, %v7180_v5 }
 0x175   : > { %v1213_v6 = vpop.f32.mrf.mxu0 }
 0x176   : > { %v1359_v7 = vpop.f32.mrf.mxu1  ;;  %1221 = vrot.lane.b32.xlu2 %v1213_v6, %s8417_s13  ;;  %v1230_v18 = vrot.slane %v1213_v6, 4 }
 0x177   : > { %1370 = vrot.lane.b32.xlu1 %v1359_v7, %s8415_s24  ;;  %1364 = vrot.lane.b32.xlu0 %v1359_v7, %s8419_s14  ;;  %v1375_v31 = vrot.slane %v1359_v7, 4 }
 0x17d   : > { %v1215_v9 = vpop.f32.mrf.mxu0 }
 0x17e   : > { %v1361_v8 = vpop.f32.mrf.mxu1  ;;  %1224 = vrot.lane.b32.xlu2 %v1213_v6, %s8415_s24 }
 0x17f   : > { %1367 = vrot.lane.b32.xlu0 %v1359_v7, %s8417_s13  ;;  %1218 = vrot.lane.b32.xlu1 %v1213_v6, %s8419_s14 }
 0x1d0   : > { %v1222_v10 = vpop.permute.xlu2 %1221 }
 0x1d1   : > { %v1227_v13 = vrot.slane %v1222_v10, 4  ;;  %v1231_v26 = vsel %vm1228_vm1, %v1222_v10, %v1230_v18 }
 0x1d2   : > { %v1239_v32 = vperm.slane %v1231_v26, %v7193_v20 }
 0x1d3   : > { %v1229_v21 = vsel %vm1228_vm1, %v1227_v13, %v1213_v6 }
 0x1d4   : > { %v1235_v28 = vperm.slane %v1229_v21, %v7193_v20  ;;  %v1266_v51 = vrot.slane %v1239_v32, 4 }
 0x1d6   : > { %v1254_v43 = vrot.slane %v1235_v28, 4 }
 0x1d8   : > { %v1225_v22 = vpop.permute.xlu2 %1224 }
 0x1d9   : > { %v1240_v29 = vrot.slane %v1225_v22, 4 }
 0x1e9   : > { %v1371_v14 = vpop.permute.xlu1 %1370  ;;  %v1365_v15 = vpop.permute.xlu0 %1364 }
 0x1ea   : > { %v1385_v16 = vrot.slane %v1371_v14, 4  ;;  %v1387_v17 = vrot.slane %v1365_v15, 4 }
 0x1ec   : > { %v1388_v19 = vsel %vm1228_vm1, %v1371_v14, %v1387_v17  ;;  %v1386_v23 = vsel %vm1228_vm1, %v1385_v16, %v1365_v15 }
 0x1ed   : > { %v1396_v27 = vperm.slane %v1388_v19, %v7193_v20  ;;  %v1392_v30 = vperm.slane %v1386_v23, %v7193_v20 }
 0x1ef   : > { %v1409_v40 = vrot.slane %v1396_v27, 4  ;;  %v1397_v44 = vrot.slane %v1392_v30, 4 }
 0x1f1   : > { %v1368_v34 = vpop.permute.xlu0 %1367  ;;  %v1219_v35 = vpop.permute.xlu1 %1218 }
 0x1f2   : > { %v1373_v36 = vrot.slane %v1368_v34, 4  ;;  %v1376_v37 = vsel %vm1228_vm1, %v1368_v34, %v1375_v31  ;;  %v1241_v38 = vsel %vm1228_vm1, %v1240_v29, %v1219_v35  ;;  %v1242_v39 = vrot.slane %v1219_v35, 4 }
 0x1f3   : > { %v1384_v41 = vperm.slane %v1376_v37, %v7193_v20  ;;  %v1247_v42 = vperm.slane %v1241_v38, %v7193_v20 }
 0x1f4   : > { %v1374_v45 = vsel %vm1228_vm1, %v1373_v36, %v1359_v7  ;;  %v1243_v46 = vsel %vm1228_vm1, %v1225_v22, %v1242_v39 }
 0x1f5   : > { %v1380_v47 = vperm.slane %v1374_v45, %v7193_v20  ;;  %v1410_v48 = vsel %vm1228_vm1, %v1409_v40, %v1384_v41  ;;  %v1411_v49 = vrot.slane %v1384_v41, 4  ;;  %v1251_v50 = vperm.slane %v1243_v46, %v7193_v20  ;;  %v5763_v40 = vld [vmem:[%s8498_s2] sm:$0xff] }
 0x1f6   : > { %v1416_v52 = vperm.slane %v1410_v48, %v7202_v33  ;;  %v1252_v53 = vrot.slane %v1247_v42, 4  ;;  %v1255_v54 = vsel %vm1228_vm1, %v1247_v42, %v1254_v43 }
 0x1f7   : > { %v1398_v55 = vsel %vm1228_vm1, %v1397_v44, %v1380_v47  ;;  %v1399_v56 = vrot.slane %v1380_v47, 4  ;;  %v1412_v57 = vsel %vm1228_vm1, %v1396_v27, %v1411_v49  ;;  %v1263_v58 = vperm.slane %v1255_v54, %v7202_v33 }
 0x1f8   : > { %v1404_v59 = vperm.slane %v1398_v55, %v7202_v33  ;;  %v1420_v60 = vperm.slane %v1412_v57, %v7202_v33  ;;  %v1425_v61 = vrot.slane %v1416_v52, 4  ;;  %v1253_v62 = vsel %vm1228_vm1, %v1252_v53, %v1235_v28 }
 0x1f9   : > { %v1400_v63 = vsel %vm1228_vm1, %v1392_v30, %v1399_v56  ;;  %v1259_v0 = vperm.slane %v1253_v62, %v7202_v33  ;;  %v1264_v1 = vrot.slane %v1251_v50, 4  ;;  %v1267_v2 = vsel %vm1228_vm1, %v1251_v50, %v1266_v51  ;;  %v5764_v30 = vld [vmem:[%s8498_s2 + $0x8] sm:$0xff] }
 0x1fa   : > { %v1408_v3 = vperm.slane %v1400_v63, %v7202_v33  ;;  %v1421_v6 = vrot.slane %v1404_v59, 4  ;;  %v1426_v7 = vsel %vm1228_vm1, 0.0, %v1425_v61  ;;  %v1427_v8 = vrot.slane %v1420_v60, 4  ;;  %1501 = vmatpush.bf16.msrb.mxu0 %v5764_v30 }
 0x1fb   : > { %v1265_v9 = vsel %vm1228_vm1, %v1264_v1, %v1239_v32  ;;  %v1275_v10 = vperm.slane %v1267_v2, %v7202_v33  ;;  %v1276_v11 = vrot.slane %v1259_v0, 4  ;;  %v1278_v12 = vrot.slane %v1263_v58, 4 }
 0x1fc   : > { %v1423_v13 = vrot.slane %v1408_v3, 4  ;;  %v1428_v14 = vsel %vm1228_vm1, 0.0, %v1427_v8  ;;  %v1440_v15 = vsel %vm1228_vm1, %v1427_v8, %v1416_v52  ;;  %v1271_v16 = vperm.slane %v1265_v9, %v7202_v33 }
 0x1fd   : > { %v1445_v17 = vrot.slane %v1428_v14, 4  ;;  %v1277_v18 = vsel %vm1228_vm1, 0.0, %v1276_v11  ;;  %v1279_v19 = vsel %vm1228_vm1, 0.0, %v1278_v12  ;;  %v1282_v21 = vrot.slane %v1275_v10, 4 }
 0x1fe   : > { %v1424_v22 = vsel %vm1228_vm1, 0.0, %v1423_v13  ;;  %v1280_v23 = vrot.slane %v1271_v16, 4  ;;  %v1289_v24 = vrot.slane %v1279_v19, 4  ;;  %v1422_v25 = vsel %vm1228_vm1, 0.0, %v1421_v6  ;;  %1502 = vmatpush.bf16.msrb.mxu0 %v5763_v40 }
 0x1ff   : > { %v1434_v26 = vrot.slane %v1424_v22, 4  ;;  %v1446_v27 = vsel %vm1228_vm1, %v1445_v17, %v1426_v7  ;;  %v1283_v28 = vsel %vm1228_vm1, 0.0, %v1282_v21  ;;  %v1429_v29 = vsel %vm1228_vm1, %v1423_v13, %v1404_v59 }
 0x200   : > { %v1281_v31 = vsel %vm1228_vm1, 0.0, %v1280_v23  ;;  %v1300_v32 = vrot.slane %v1283_v28, 4  ;;  %v1433_v34 = vperm.slane %v1429_v29, %v7193_v20  ;;  %v1444_v35 = vperm.slane %v1440_v15, %v7193_v20 }
 0x201   : > { %v1435_v36 = vsel %vm1228_vm1, %v1434_v26, %v1422_v25  ;;  %v1450_v37 = vperm.slane %v1446_v27, %v7193_v20  ;;  %v1284_v38 = vsel %vm1228_vm1, %v1278_v12, %v1259_v0  ;;  %v1290_v39 = vsel %vm1228_vm1, %v1289_v24, %v1277_v18  ;;  %5459 = vmatmul.msk.bf16.vlgmr.msrb.gmra.mxu0 %vm1200_vm0, %v7180_v5  ;;  %v7294_v27 = vld [vmem:[%s1009_s26] sm:$0xff]  ;;  %s8413_s26 = smov 16  }
 0x202   : > { %v1439_v41 = vperm.slane %v1435_v36, %v7193_v20  ;;  %v1453_v42 = vrot.slane %v1433_v34, 4  ;;  %v1465_v43 = vrot.slane %v1444_v35, 4  ;;  %v1288_v44 = vperm.slane %v1284_v38, %v7193_v20 }
 0x203   : > { %v1463_v45 = vrot.slane %v1450_v37, 4  ;;  %v1294_v46 = vperm.slane %v1290_v39, %v7193_v20  ;;  %v1295_v47 = vsel %vm1228_vm1, %v1282_v21, %v1271_v16  ;;  %v1301_v48 = vsel %vm1228_vm1, %v1300_v32, %v1281_v31 }
 0x204   : > { %v1451_v49 = vrot.slane %v1439_v41, 4  ;;  %v1454_v50 = vsel %vm1228_vm1, %v1439_v41, %v1453_v42  ;;  %v1466_v51 = vsel %vm1228_vm1, %v1450_v37, %v1465_v43  ;;  %v1299_v52 = vperm.slane %v1295_v47, %v7193_v20 }
 0x205   : > { %v1464_v53 = vsel %vm1228_vm1, %v1463_v45, %v1444_v35  ;;  %v1462_v54 = vperm.slane %v1454_v50, %v7202_v33  ;;  %v1305_v55 = vperm.slane %v1301_v48, %v7193_v20  ;;  %v1306_v58 = vrot.slane %v1294_v46, 4 }
 0x206   : > { %v1452_v56 = vsel %vm1228_vm1, %v1451_v49, %v1433_v34  ;;  %v1470_v57 = vperm.slane %v1464_v53, %v7202_v33  ;;  %v1308_v59 = vrot.slane %v1288_v44, 4  ;;  %v1474_v61 = vperm.slane %v1466_v51, %v7202_v33 }
 0x207   : > { %v1458_v60 = vperm.slane %v1452_v56, %v7202_v33  ;;  %v1481_v62 = vrot.slane %v1462_v54, 4  ;;  %v1318_v63 = vrot.slane %v1305_v55, 4  ;;  %v1320_v2 = vrot.slane %v1299_v52, 4 }
 0x208   : > { %v1475_v0 = vrot.slane %v1470_v57, 4  ;;  %v1309_v1 = vsel %vm1228_vm1, %v1294_v46, %v1308_v59  ;;  %v1307_v7 = vsel %vm1228_vm1, %v1306_v58, %v1288_v44  ;;  %v1479_v5 = vrot.slane %v1474_v61, 4 }
 0x209   : > { %v1482_v3 = vsel %vm1228_vm1, %v1474_v61, %v1481_v62  ;;  %v1477_v6 = vrot.slane %v1458_v60, 4  ;;  %v1319_v8 = vsel %vm1228_vm1, %v1318_v63, %v1299_v52  ;;  %v1317_v11 = vperm.slane %v1309_v1, %v7202_v33 }
 0x20a   : > { %v1476_v9 = vsel %vm1228_vm1, %v1475_v0, %v1458_v60  ;;  %5466 = vmatpush.xpose.msk.msrb.mxu1 %vm1628_vm2, %v1482_v3  ;;  %v1325_v10 = vperm.slane %v1319_v8, %v7202_v33  ;;  %v1321_v12 = vsel %vm1228_vm1, %v1305_v55, %v1320_v2  ;;  %v1313_v15 = vperm.slane %v1307_v7, %v7202_v33 }
 0x20b   : > { %5460 = vmatpush.xpose.msk.msra.mxu3 %vm1628_vm2, %v1476_v9  ;;  %v1478_v13 = vsel %vm1228_vm1, %v1470_v57, %v1477_v6  ;;  %v1329_v14 = vperm.slane %v1321_v12, %v7202_v33  ;;  %v1336_v17 = vrot.slane %v1317_v11, 4  ;;  %v1480_v21 = vsel %vm1228_vm1, %v1479_v5, %v1462_v54 }
 0x20c   : > { %v1330_v16 = vrot.slane %v1325_v10, 4  ;;  %v1332_v22 = vrot.slane %v1313_v15, 4  ;;  %vm1733_vm3 = vcmp.eq.f32.partialorder %v7294_v27, 0.0 }
 0x20d   : > { %v1337_v19 = vsel %vm1228_vm1, %v1329_v14, %v1336_v17  ;;  %v1334_v24 = vrot.slane %v1329_v14, 4 }
 0x20e   : > { %v1331_v18 = vsel %vm1228_vm1, %v1330_v16, %v1313_v15  ;;  %5467 = vmatmul.msk.f32.vlgmr.msrb.gmra.mxu1 %vm1628_vm2, %v1337_v19  ;;  %v1333_v23 = vsel %vm1228_vm1, %v1325_v10, %v1332_v22 }
 0x20f   : > { %5462 = vmatpush.xpose.msk.msrb.mxu3 %vm1628_vm2, %v1478_v13  ;;  %v1335_v25 = vsel %vm1228_vm1, %v1334_v24, %v1317_v11 }
 0x210   : > { %5461 = vmatmul.msk.f32.vlgmr.msra.gmra.mxu3 %vm1628_vm2, %v1331_v18 }
 0x213   : > { %5464 = vmatpush.xpose.msk.msra.mxu3 %vm1628_vm2, %v1480_v21 }
 0x218   : > { %5463 = vmatmul.msk.f32.vlgmr.msrb.gmra.mxu3 %vm1628_vm2, %v1333_v23 }
 0x220   : > { %5465 = vmatmul.msk.f32.vlgmr.msra.gmra.mxu3 %vm1628_vm2, %v1335_v25 }
 0x27e   : > { %v1504_v26 = vpop.f32.mrf.mxu0 }
 0x27f   : > { %v1520_v61 = vrot.slane %v1504_v26, 4 }
 0x286   : > { %v1506_v30 = vpop.f32.mrf.mxu0 }
 0x28b   : > { %v1730_v28 = vpop.f32.mrf.mxu1 }
 0x28c   : > { %v1739_v29 = vsel %vm1733_vm3, -1e+20, %v1730_v28 }
 0x28d   : > { %v1749_v31 = vsel %vm1628_vm2, %v1739_v29, -inf }
 0x28e   : > { %1750 = vmax.xlane.f32.xlu2 %v1749_v31 }
 0x293   : > { %v1652_v32 = vpop.f32.mrf.mxu3 }
 0x294   : > { %v1736_v34 = vsel %vm1733_vm3, -1e+20, %v1652_v32 }
 0x295   : > { %v1740_v35 = vsel %vm1628_vm2, %v1736_v34, -inf }
 0x296   : > { %1741 = vmax.xlane.f32.xlu2 %v1740_v35 }
 0x29b   : > { %v1678_v36 = vpop.f32.mrf.mxu3 }
 0x29c   : > { %v1737_v37 = vsel %vm1733_vm3, -1e+20, %v1678_v36 }
 0x29d   : > { %v1743_v38 = vsel %vm1628_vm2, %v1737_v37, -inf }
 0x29e   : > { %1744 = vmax.xlane.f32.xlu1 %v1743_v38 }
 0x2a3   : > { %v1704_v39 = vpop.f32.mrf.mxu3 }
 0x2a4   : > { %v1738_v40 = vsel %vm1733_vm3, -1e+20, %v1704_v39 }
 0x2a5   : > { %v1746_v41 = vsel %vm1628_vm2, %v1738_v40, -inf }
 0x2a6   : > { %1747 = vmax.xlane.f32.xlu0 %v1746_v41 }
 0x2ae   : > { %1515 = vrot.lane.b32.xlu2 %v1504_v26, %s8415_s24 }
 0x2b7   : > { %1512 = vrot.lane.b32.xlu1 %v1504_v26, %s8417_s13 }
 0x2ba   : > { %1509 = vrot.lane.b32.xlu0 %v1504_v26, %s8419_s14 }
 0x301   : > { %v1751_v42 = vpop.xlane.xlu2 %1750 }
 0x302   : > { %v1755_v54 = vsub.f32 %v1739_v29, %v1751_v42 }
 0x304   : > { %v1762_v57 = vmul.f32 1.442695, %v1755_v54 }
 0x309   : > { %v1742_v43 = vpop.xlane.xlu2 %1741 }
 0x30a   : > { %v1752_v44 = vsub.f32 %v1736_v34, %v1742_v43 }
 0x30c   : > { %v1756_v45 = vmul.f32 1.442695, %v1752_v44 }
 0x30e   : > { %6025 = vpow2.f32 %v1756_v45 }
 0x311   : > { %v1745_v46 = vpop.xlane.xlu1 %1744  ;;  %v1516_v60 = vpop.permute.xlu2 %1515 }
 0x312   : > { %v1753_v47 = vsub.f32 %v1737_v37, %v1745_v46  ;;  %v1530_v63 = vrot.slane %v1516_v60, 4 }
 0x314   : > { %v1758_v48 = vmul.f32 1.442695, %v1753_v47  ;;  %v7312_v49 = vpop.eup %6025 }
 0x315   : > { %v1764_v50 = vsel %vm1628_vm2, %v7312_v49, 0.0 }
 0x316   : > { %6027 = vpow2.f32 %v1758_v48  ;;  %1765 = vadd.xlane.f32.xlu2 %v1764_v50 }
 0x319   : > { %v1748_v51 = vpop.xlane.xlu0 %1747 }
 0x31a   : > { %v1754_v52 = vsub.f32 %v1738_v40, %v1748_v51 }
 0x31c   : > { %v7316_v53 = vpop.eup %6027  ;;  %v1760_v55 = vmul.f32 1.442695, %v1754_v52 }
 0x31d   : > { %v1767_v56 = vsel %vm1628_vm2, %v7316_v53, 0.0 }
 0x31e   : > { %6029 = vpow2.f32 %v1760_v55  ;;  %1768 = vadd.xlane.f32.xlu1 %v1767_v56 }
 0x31f   : > { %6031 = vpow2.f32 %v1762_v57 }
 0x324   : > { %v7320_v58 = vpop.eup %6029 }
 0x325   : > { %v1770_v59 = vsel %vm1628_vm2, %v7320_v58, 0.0  ;;  %v7324_v0 = vpop.eup %6031 }
 0x326   : > { %1771 = vadd.xlane.f32.xlu0 %v1770_v59  ;;  %v1773_v11 = vsel %vm1628_vm2, %v7324_v0, 0.0 }
 0x329   : > { %v1513_v62 = vpop.permute.xlu1 %1512 }
 0x32a   : > { %v1518_v1 = vrot.slane %v1513_v62, 4  ;;  %v1521_v2 = vsel %vm1228_vm1, %v1513_v62, %v1520_v61 }
 0x32b   : > { %v1529_v6 = vperm.slane %v1521_v2, %v7193_v20 }
 0x32c   : > { %v1519_v3 = vsel %vm1228_vm1, %v1518_v1, %v1504_v26  ;;  %v1510_v7 = vpop.permute.xlu0 %1509 }
 0x32d   : > { %v1525_v8 = vperm.slane %v1519_v3, %v7193_v20  ;;  %v1531_v9 = vsel %vm1228_vm1, %v1530_v63, %v1510_v7  ;;  %v1532_v10 = vrot.slane %v1510_v7, 4  ;;  %v1556_v14 = vrot.slane %v1529_v6, 4 }
 0x32e   : > { %v1537_v12 = vperm.slane %v1531_v9, %v7193_v20  ;;  %1774 = vadd.xlane.f32.xlu0 %v1773_v11 }
 0x32f   : > { %v1544_v5 = vrot.slane %v1525_v8, 4  ;;  %v1533_v13 = vsel %vm1228_vm1, %v1516_v60, %v1532_v10 }
 0x330   : > { %v1541_v15 = vperm.slane %v1533_v13, %v7193_v20  ;;  %v1542_v16 = vrot.slane %v1537_v12, 4 }
 0x331   : > { %v1545_v17 = vsel %vm1228_vm1, %v1537_v12, %v1544_v5 }
 0x332   : > { %v1543_v18 = vsel %vm1228_vm1, %v1542_v16, %v1525_v8  ;;  %v1553_v19 = vperm.slane %v1545_v17, %v7202_v33  ;;  %v1554_v21 = vrot.slane %v1541_v15, 4  ;;  %v1557_v22 = vsel %vm1228_vm1, %v1541_v15, %v1556_v14 }
 0x333   : > { %v1549_v23 = vperm.slane %v1543_v18, %v7202_v33  ;;  %v1565_v24 = vperm.slane %v1557_v22, %v7202_v33 }
 0x334   : > { %v1555_v25 = vsel %vm1228_vm1, %v1554_v21, %v1529_v6  ;;  %v1568_v26 = vrot.slane %v1553_v19, 4 }
 0x335   : > { %v1561_v28 = vperm.slane %v1555_v25, %v7202_v33  ;;  %v1566_v29 = vrot.slane %v1549_v23, 4  ;;  %v1572_v30 = vrot.slane %v1565_v24, 4 }
 0x336   : > { %v1569_v31 = vsel %vm1228_vm1, 0.0, %v1568_v26  ;;  %v1574_v32 = vsel %vm1228_vm1, %v1568_v26, %v1549_v23 }
 0x337   : > { %v1567_v34 = vsel %vm1228_vm1, 0.0, %v1566_v29  ;;  %v1570_v35 = vrot.slane %v1561_v28, 4  ;;  %v1573_v36 = vsel %vm1228_vm1, 0.0, %v1572_v30  ;;  %v1578_v37 = vperm.slane %v1574_v32, %v7193_v20 }
 0x338   : > { %v1579_v38 = vrot.slane %v1569_v31, 4  ;;  %v1590_v39 = vrot.slane %v1573_v36, 4  ;;  %v1585_v40 = vsel %vm1228_vm1, %v1572_v30, %v1561_v28 }
 0x339   : > { %v1571_v41 = vsel %vm1228_vm1, 0.0, %v1570_v35  ;;  %v1589_v42 = vperm.slane %v1585_v40, %v7193_v20  ;;  %v1598_v43 = vrot.slane %v1578_v37, 4 }
 0x33a   : > { %v1580_v44 = vsel %vm1228_vm1, %v1579_v38, %v1567_v34  ;;  %v1591_v45 = vsel %vm1228_vm1, %v1590_v39, %v1571_v41 }
 0x33b   : > { %v1584_v46 = vperm.slane %v1580_v44, %v7193_v20  ;;  %v1595_v47 = vperm.slane %v1591_v45, %v7193_v20  ;;  %v1610_v48 = vrot.slane %v1589_v42, 4 }
 0x33d   : > { %v1599_v50 = vsel %vm1228_vm1, %v1584_v46, %v1598_v43  ;;  %v1611_v51 = vsel %vm1228_vm1, %v1595_v47, %v1610_v48  ;;  %v1596_v52 = vrot.slane %v1584_v46, 4  ;;  %v1608_v54 = vrot.slane %v1595_v47, 4 }
 0x33e   : > { %v1607_v55 = vperm.slane %v1599_v50, %v7202_v33  ;;  %v1619_v56 = vperm.slane %v1611_v51, %v7202_v33 }
 0x33f   : > { %v1597_v57 = vsel %vm1228_vm1, %v1596_v52, %v1578_v37  ;;  %v1609_v59 = vsel %vm1228_vm1, %v1608_v54, %v1589_v42 }
 0x340   : > { %v1626_v60 = vrot.slane %v1607_v55, 4  ;;  %v1624_v61 = vrot.slane %v1619_v56, 4  ;;  %v1603_v62 = vperm.slane %v1597_v57, %v7202_v33  ;;  %v1615_v63 = vperm.slane %v1609_v59, %v7202_v33 }
 0x342   : > { %v1627_v1 = vsel %vm1228_vm1, %v1619_v56, %v1626_v60  ;;  %v1625_v2 = vsel %vm1228_vm1, %v1624_v61, %v1607_v55  ;;  %v1620_v3 = vrot.slane %v1615_v63, 4  ;;  %v1622_v6 = vrot.slane %v1603_v62, 4 }
 0x343   : > { %1871 = vmatpush.msra.mxu0 %v1627_v1  ;;  %1848 = vmatpush.msrb.mxu3 %v1625_v2 }
 0x344   : > { %v1623_v7 = vsel %vm1228_vm1, %v1615_v63, %v1622_v6  ;;  %v1621_v8 = vsel %vm1228_vm1, %v1620_v3, %v1603_v62 }
 0x345   : > { %1825 = vmatpush.msra.mxu2 %v1623_v7  ;;  %1802 = vmatpush.msra.mxu1 %v1621_v8 }
 0x389   : > { %v1766_v9 = vpop.xlane.xlu2 %1765 }
 0x38a   : > { %6033 = vrcp.f32 %v1766_v9 }
 0x390   : > { %v6034_v11 = vpop.eup %6033 }
 0x391   : > { %v1769_v10 = vpop.xlane.xlu1 %1768  ;;  %v1780_v12 = vmul.f32 %v6034_v11, %v7312_v49 }
 0x392   : > { %6035 = vrcp.f32 %v1769_v10 }
 0x393   : > { %5468 = vmatmul.msk.f32.vlgmr.msra.gmra.mxu1 %vm1628_vm2, %v1780_v12 }
 0x398   : > { %v6036_v5 = vpop.eup %6035 }
 0x399   : > { %v1772_v13 = vpop.xlane.xlu0 %1771  ;;  %v1781_v14 = vmul.f32 %v6036_v5, %v7316_v53 }
 0x39a   : > { %6037 = vrcp.f32 %v1772_v13 }
 0x39b   : > { %5469 = vmatmul.msk.f32.vlgmr.msra.gmra.mxu2 %vm1628_vm2, %v1781_v14 }
 0x3a0   : > { %v6038_v15 = vpop.eup %6037 }
 0x3a1   : > { %v1782_v16 = vmul.f32 %v6038_v15, %v7320_v58  ;;  %v1775_v17 = vpop.xlane.xlu0 %1774 }
 0x3a2   : > { %6039 = vrcp.f32 %v1775_v17 }
 0x3a3   : > { %5470 = vmatmul.msk.f32.vlgmr.msrb.gmra.mxu3 %vm1628_vm2, %v1782_v16 }
 0x3a8   : > { %v6040_v18 = vpop.eup %6039 }
 0x3a9   : > { %v1783_v19 = vmul.f32 %v6040_v18, %v7324_v0 }
 0x3ab   : > { %5471 = vmatmul.msk.f32.vlgmr.msra.gmra.mxu0 %vm1628_vm2, %v1783_v19 }
 0x410   : > { %v1804_v49 = vpop.f32.mrf.mxu1 }
 0x411   : > { %v1878_v22 = vrot.slane %v1804_v49, 4 }
 0x41e   : > { %v1827_v21 = vpop.f32.mrf.mxu2 }
 0x41f   : > { %v1890_v53 = vrot.slane %v1827_v21, 4 }
 0x426   : > { %v1850_v23 = vpop.f32.mrf.mxu3 }
 0x427   : > { %v1876_v24 = vrot.slane %v1850_v23, 4  ;;  %v1879_v25 = vsel %vm1228_vm1, %v1850_v23, %v1878_v22 }
 0x428   : > { %v1887_v26 = vperm.slane %v1879_v25, %v7193_v20  ;;  %v1873_v58 = vpop.f32.mrf.mxu0  ;;  %v5766_v25 = vld [vmem:[%s8499_s8 + $0x8] sm:$0xff]  ;;  %s8513_s8 = smov 8  }
 0x429   : > { %v1877_v28 = vsel %vm1228_vm1, %v1876_v24, %v1804_v49  ;;  %v1888_v29 = vrot.slane %v1873_v58, 4  ;;  %v1891_v30 = vsel %vm1228_vm1, %v1873_v58, %v1890_v53  ;;  %2028 = vmatpush.bf16.msrb.mxu1 %v5766_v25  ;;  %v5765_v58 = vld [vmem:[%s8500_s28] sm:$0xff] }
 0x42a   : > { %v1883_v0 = vperm.slane %v1877_v28, %v7193_v20  ;;  %v1914_v31 = vrot.slane %v1887_v26, 4  ;;  %v1899_v32 = vperm.slane %v1891_v30, %v7193_v20  ;;  %v5769_v28 = vld [vmem:[#allocation16] sm:$0xff] }
 0x42b   : > { %v1889_v34 = vsel %vm1228_vm1, %v1888_v29, %v1827_v21  ;;  %v1167_v29 = vld [vmem:[%s999_s20] sm:$0xff]  ;;  %s8504_s20 = smov 24  }
 0x42c   : > { %v1902_v35 = vrot.slane %v1883_v0, 4  ;;  %v1895_v36 = vperm.slane %v1889_v34, %v7193_v20  ;;  %v1912_v37 = vrot.slane %v1899_v32, 4  ;;  %v1915_v38 = vsel %vm1228_vm1, %v1899_v32, %v1914_v31  ;;  %v7437_v32 = vld [vmem:[%s8410_s15] sm:$0xff]  ;;  %s8508_s15 = sld [smem:[#allocation67_spill]] }
 0x42d   : > { %v1923_v39 = vperm.slane %v1915_v38, %v7202_v33  ;;  %2029 = vmatpush.bf16.msrb.mxu1 %v5765_v58  ;;  %v7443_v34 = vpack.c.bf16 %v7437_v32, %v7437_v32 }
 0x42e   : > { %v1900_v40 = vrot.slane %v1895_v36, 4  ;;  %v1903_v41 = vsel %vm1228_vm1, %v1895_v36, %v1902_v35  ;;  %v1913_v42 = vsel %vm1228_vm1, %v1912_v37, %v1887_v26  ;;  %v5770_v26 = vld [vmem:[#allocation16 + $0x8] sm:$0xff] }
 0x42f   : > { %v1911_v43 = vperm.slane %v1903_v41, %v7202_v33  ;;  %v1919_v44 = vperm.slane %v1913_v42, %v7202_v33  ;;  %v1930_v45 = vrot.slane %v1923_v39, 4  ;;  %2263 = vmatpush.bf16.msra.mxu3 %v5770_v26 }
 0x430   : > { %v1901_v46 = vsel %vm1228_vm1, %v1900_v40, %v1883_v0  ;;  %v7430_v0 = vpack.c.bf16 %v1167_v29, %v1167_v29 }
 0x431   : > { %v1907_v47 = vperm.slane %v1901_v46, %v7202_v33  ;;  %v1926_v48 = vrot.slane %v1911_v43, 4  ;;  %v1928_v50 = vrot.slane %v1919_v44, 4  ;;  %v1931_v51 = vsel %vm1228_vm1, 0.0, %v1930_v45  ;;  %v6004_v46 = vld [vmem:[#allocation11] ss:$0 sm:$0xff] }
 0x432   : > { %v1943_v52 = vsel %vm1228_vm1, %v1930_v45, %v1919_v44  ;;  %v1948_v54 = vrot.slane %v1931_v51, 4 }
 0x433   : > { %v1924_v55 = vrot.slane %v1907_v47, 4  ;;  %v1927_v56 = vsel %vm1228_vm1, 0.0, %v1926_v48  ;;  %v1929_v57 = vsel %vm1228_vm1, 0.0, %v1928_v50  ;;  %v1947_v59 = vperm.slane %v1943_v52, %v7193_v20  ;;  %2264 = vmatpush.bf16.msra.mxu3 %v5769_v28 }
 0x434   : > { %v1937_v60 = vrot.slane %v1927_v56, 4  ;;  %v1932_v61 = vsel %vm1228_vm1, %v1926_v48, %v1907_v47  ;;  %v1949_v62 = vsel %vm1228_vm1, %v1948_v54, %v1929_v57 }
 0x435   : > { %v1925_v63 = vsel %vm1228_vm1, 0.0, %v1924_v55  ;;  %v1936_v1 = vperm.slane %v1932_v61, %v7193_v20  ;;  %v1953_v2 = vperm.slane %v1949_v62, %v7193_v20  ;;  %v1968_v3 = vrot.slane %v1947_v59, 4 }
 0x436   : > { %v1938_v6 = vsel %vm1228_vm1, %v1937_v60, %v1925_v63  ;;  %5498 = vmatmul.msk.bf16.vlgmr.msra.gmra.mxu3 %vm1200_vm0, %v7430_v0 }
 0x437   : > { %v1942_v7 = vperm.slane %v1938_v6, %v7193_v20  ;;  %v1956_v8 = vrot.slane %v1936_v1, 4  ;;  %v1969_v9 = vsel %vm1228_vm1, %v1953_v2, %v1968_v3  ;;  %v1966_v10 = vrot.slane %v1953_v2, 4 }
 0x438   : > { %v1977_v11 = vperm.slane %v1969_v9, %v7202_v33 }
 0x439   : > { %v1957_v12 = vsel %vm1228_vm1, %v1942_v7, %v1956_v8  ;;  %v1954_v5 = vrot.slane %v1942_v7, 4  ;;  %v1967_v13 = vsel %vm1228_vm1, %v1966_v10, %v1947_v59 }
 0x43a   : > { %v1965_v14 = vperm.slane %v1957_v12, %v7202_v33  ;;  %v1982_v15 = vrot.slane %v1977_v11, 4  ;;  %v1973_v16 = vperm.slane %v1967_v13, %v7202_v33 }
 0x43b   : > { %v1955_v17 = vsel %vm1228_vm1, %v1954_v5, %v1936_v1 }
 0x43c   : > { %v1983_v18 = vsel %vm1228_vm1, %v1982_v15, %v1965_v14  ;;  %v1984_v19 = vrot.slane %v1965_v14, 4  ;;  %v1961_v49 = vperm.slane %v1955_v17, %v7202_v33  ;;  %v1978_v21 = vrot.slane %v1973_v16, 4 }
 0x43d   : > { %1991 = vrot.lane.b32.xlu0 %v1983_v18, %s8413_s26 }
 0x43e   : > { %v1985_v22 = vsel %vm1228_vm1, %v1977_v11, %v1984_v19  ;;  %v1980_v23 = vrot.slane %v1961_v49, 4  ;;  %v1979_v53 = vsel %vm1228_vm1, %v1978_v21, %v1961_v49 }
 0x43f   : > { %1995 = vrot.lane.b32.xlu2 %v1985_v22, %s8408_s12  ;;  %s8501_s12 = sld [smem:[#allocation59_spill]] }
 0x440   : > { %v1981_v24 = vsel %vm1228_vm1, %v1973_v16, %v1980_v23 }
 0x441   : > { %1987 = vrot.lane.b32.xlu1 %v1981_v24, %s8411_s9  ;;  %v6707_v24 = vmov 32.0  }
 0x442   : > { %6041 = vrcp.f32 %v6707_v24 }
 0x445   : > { %v5768_v30 = vld [vmem:[%s8501_s12 + $0x8] sm:$0xff]  ;;  %v5767_v31 = vld [vmem:[%s8501_s12] sm:$0xff] }
 0x446   : > { %2114 = vmatpush.bf16.msrb.mxu2 %v5768_v30 }
 0x44a   : > { %2115 = vmatpush.bf16.msrb.mxu2 %v5767_v31 }
 0x44d   : > { %5489 = vmatmul.msk.bf16.vlgmr.msrb.gmra.mxu2 %vm1200_vm0, %v7443_v34 }
 0x499   : > { %v1996_v38 = vpop.permute.xlu2 %1995 }
 0x4af   : > { %v1992_v36 = vpop.permute.xlu0 %1991 }
 0x4b3   : > { %v1988_v35 = vpop.permute.xlu1 %1987 }
 0x4b4   : > { %v1998_v37 = vsel %vm1628_vm2, %v1979_v53, %v1988_v35 }
 0x4b5   : > { %v2000_v39 = vsel %vm1999_vm4, %v1998_v37, %v1992_v36  ;;  %v5772_v37 = vld [vmem:[#allocation17 + $0x8] sm:$0xff] }
 0x4b6   : > { %v2002_v40 = vsel %vm2001_vm5, %v2000_v39, %v1996_v38  ;;  %2412 = vmatpush.bf16.msrb.mxu0 %v5772_v37 }
 0x4b7   : > { %v2003_v41 = vpack.c.bf16 %v2002_v40, %v2002_v40 }
 0x4b9   : > { %5480 = vmatmul.msk.bf16.vlgmr.msrb.gmra.mxu1 %vm1200_vm0, %v2003_v41  ;;  %v2266_v42 = vpop.f32.mrf.mxu3 }
 0x4ba   : > { %2271 = vrot.lane.b32.xlu2 %v2266_v42, %s8419_s14  ;;  %v2282_v55 = vrot.slane %v2266_v42, 4 }
 0x4c1   : > { %v2268_v44 = vpop.f32.mrf.mxu3 }
 0x4c2   : > { %2274 = vrot.lane.b32.xlu2 %v2266_v42, %s8417_s13 }
 0x4ca   : > { %2277 = vrot.lane.b32.xlu2 %v2266_v42, %s8415_s24 }
 0x4d0   : > { %v7452_v43 = vpop.f32.mrf.mxu2 }
 0x4d2   : > { %2122 = vrot.lane.b32.xlu2 %v7452_v43, %s8419_s14 }
 0x4d8   : > { %v2119_v45 = vpop.f32.mrf.mxu2 }
 0x4d9   : > { %v5771_v45 = vld [vmem:[#allocation17] sm:$0xff] }
 0x4da   : > { %2125 = vrot.lane.b32.xlu2 %v7452_v43, %s8417_s13  ;;  %2413 = vmatpush.bf16.msrb.mxu0 %v5771_v45 }
 0x514   : > { %v2272_v54 = vpop.permute.xlu2 %2271 }
 0x515   : > { %v2294_v61 = vrot.slane %v2272_v54, 4 }
 0x51c   : > { %v2275_v56 = vpop.permute.xlu2 %2274 }
 0x51d   : > { %v2280_v57 = vrot.slane %v2275_v56, 4  ;;  %v2283_v59 = vsel %vm1228_vm1, %v2275_v56, %v2282_v55 }
 0x51e   : > { %v2291_v60 = vperm.slane %v2283_v59, %v7193_v20 }
 0x520   : > { %v2318_v63 = vrot.slane %v2291_v60, 4 }
 0x524   : > { %v2278_v1 = vpop.permute.xlu2 %2277 }
 0x525   : > { %v2292_v2 = vrot.slane %v2278_v1, 4  ;;  %v2295_v3 = vsel %vm1228_vm1, %v2278_v1, %v2294_v61 }
 0x526   : > { %v2303_v7 = vperm.slane %v2295_v3, %v7193_v20 }
 0x527   : > { %v2293_v8 = vsel %vm1228_vm1, %v2292_v2, %v2272_v54 }
 0x528   : > { %v2299_v9 = vperm.slane %v2293_v8, %v7193_v20  ;;  %v2316_v10 = vrot.slane %v2303_v7, 4  ;;  %v2319_v11 = vsel %vm1228_vm1, %v2303_v7, %v2318_v63 }
 0x529   : > { %v2327_v12 = vperm.slane %v2319_v11, %v7202_v33 }
 0x52a   : > { %v2304_v5 = vrot.slane %v2299_v9, 4  ;;  %v2317_v14 = vsel %vm1228_vm1, %v2316_v10, %v2291_v60 }
 0x52b   : > { %v2323_v16 = vperm.slane %v2317_v14, %v7202_v33  ;;  %v2334_v17 = vrot.slane %v2327_v12, 4 }
 0x52c   : > { %v2123_v11 = vpop.permute.xlu2 %2122 }
 0x52d   : > { %v2332_v21 = vrot.slane %v2323_v16, 4  ;;  %v2335_v22 = vsel %vm1228_vm1, 0.0, %v2334_v17  ;;  %v2347_v23 = vsel %vm1228_vm1, %v2334_v17, %v2323_v16  ;;  %v2133_v17 = vrot.slane %v7452_v43, 4 }
 0x52e   : > { %v2352_v53 = vrot.slane %v2335_v22, 4  ;;  %v2351_v28 = vperm.slane %v2347_v23, %v7193_v20 }
 0x52f   : > { %v2333_v58 = vsel %vm1228_vm1, 0.0, %v2332_v21 }
 0x530   : > { %v2353_v30 = vsel %vm1228_vm1, %v2352_v53, %v2333_v58  ;;  %v2372_v36 = vrot.slane %v2351_v28, 4 }
 0x531   : > { %v2357_v35 = vperm.slane %v2353_v30, %v7193_v20 }
 0x533   : > { %v2373_v44 = vsel %vm1228_vm1, %v2357_v35, %v2372_v36 }
 0x534   : > { %v2126_v16 = vpop.permute.xlu2 %2125 }
 0x536   : > { %v2031_v47 = vpop.f32.mrf.mxu1 }
 0x537   : > { %v2032_v48 = vadd.f32 %v6004_v46, %v2031_v47  ;;  %v6042_v46 = vpop.eup %6041  ;;  %v2381_v47 = vperm.slane %v2373_v44, %v7202_v33 }
 0x538   : > { %v2042_v55 = vmul.f32 32.0, %v6042_v46  ;;  %vm2046_vm6 = vweird.f32 %v6042_v46 }
 0x539   : > { %v7459_v50 = vadd.f32 %v2032_v48, %v7176_v4  ;;  %v2281_v4 = vsel %vm1228_vm1, %v2280_v57, %v2266_v42  ;;  %v2370_v42 = vrot.slane %v2357_v35, 4 }
 0x53a   : > { %v2287_v62 = vperm.slane %v2281_v4, %v7193_v20  ;;  %v2386_v4 = vrot.slane %v2381_v47, 4  ;;  %v2043_v1 = vsub.f32 1.0, %v2042_v55 }
 0x53b   : > { %v2038_v51 = vsel %vm1200_vm0, %v7459_v50, 0.0 }
 0x53c   : > { %2039 = vadd.xlane.f32.xlu0 %v2038_v51  ;;  %v2306_v6 = vrot.slane %v2287_v62, 4  ;;  %v2305_v18 = vsel %vm1228_vm1, %v2304_v5, %v2287_v62  ;;  %v2371_v51 = vsel %vm1228_vm1, %v2370_v42, %v2351_v28 }
 0x53d   : > { %v2311_v19 = vperm.slane %v2305_v18, %v7202_v33  ;;  %v2131_v18 = vrot.slane %v2126_v16, 4 }
 0x53e   : > { %v2033_v52 = vpop.f32.mrf.mxu1  ;;  %v2307_v13 = vsel %vm1228_vm1, %v2299_v9, %v2306_v6  ;;  %v2044_v6 = vmul.f32 %v6042_v46, %v2043_v1 }
 0x53f   : > { %v2315_v15 = vperm.slane %v2307_v13, %v7202_v33  ;;  %v2328_v25 = vrot.slane %v2311_v19, 4  ;;  %v2377_v52 = vperm.slane %v2371_v51, %v7202_v33  ;;  %v2132_v21 = vsel %vm1228_vm1, %v2131_v18, %v7452_v43 }
 0x540   : > { %v2045_v8 = vadd.f32 %v6042_v46, %v2044_v6 }
 0x541   : > { %v2330_v49 = vrot.slane %v2315_v15, 4  ;;  %v2329_v31 = vsel %vm1228_vm1, 0.0, %v2328_v25  ;;  %v2382_v59 = vrot.slane %v2377_v52, 4 }
 0x542   : > { %v7511_v10 = vsel %vm2046_vm6, %v6042_v46, %v2045_v8 }
 0x543   : > { %v2331_v26 = vsel %vm1228_vm1, 0.0, %v2330_v49  ;;  %v2336_v38 = vsel %vm1228_vm1, %v2330_v49, %v2311_v19  ;;  %v2134_v19 = vsel %vm1228_vm1, %v2126_v16, %v2133_v17  ;;  %v2145_v49 = vrot.slane %v2123_v11, 4 }
 0x544   : > { %v2341_v29 = vrot.slane %v2331_v26, 4  ;;  %v2340_v40 = vperm.slane %v2336_v38, %v7193_v20  ;;  %v2142_v22 = vperm.slane %v2134_v19, %v7193_v20 }
 0x546   : > { %v2342_v39 = vsel %vm1228_vm1, %v2341_v29, %v2329_v31  ;;  %v2360_v54 = vrot.slane %v2340_v40, 4  ;;  %v2169_v25 = vrot.slane %v2142_v22, 4 }
 0x547   : > { %v2346_v41 = vperm.slane %v2342_v39, %v7193_v20 }
 0x549   : > { %v2358_v48 = vrot.slane %v2346_v41, 4  ;;  %v2361_v60 = vsel %vm1228_vm1, %v2346_v41, %v2360_v54 }
 0x54a   : > { %v2369_v63 = vperm.slane %v2361_v60, %v7202_v33 }
 0x54b   : > { %v2359_v56 = vsel %vm1228_vm1, %v2358_v48, %v2340_v40 }
 0x54c   : > { %v2365_v57 = vperm.slane %v2359_v56, %v7202_v33  ;;  %v2387_v3 = vsel %vm1228_vm1, %v2386_v4, %v2369_v63  ;;  %v2388_v7 = vrot.slane %v2369_v63, 4 }
 0x54d   : > { %5512 = vmatpush.xpose.msk.msrb.mxu3 %vm1628_vm2, %v2387_v3 }
 0x54e   : > { %v2383_v61 = vsel %vm1228_vm1, %v2382_v59, %v2365_v57  ;;  %v2384_v62 = vrot.slane %v2365_v57, 4  ;;  %v2389_v9 = vsel %vm1228_vm1, %v2381_v47, %v2388_v7 }
 0x54f   : > { %5508 = vmatpush.xpose.msk.msra.mxu1 %vm1628_vm2, %v2383_v61  ;;  %5514 = vmatpush.xpose.msk.msra.mxu0 %vm1628_vm2, %v2389_v9 }
 0x550   : > { %2128 = vrot.lane.b32.xlu0 %v7452_v43, %s8415_s24  ;;  %v2385_v2 = vsel %vm1228_vm1, %v2377_v52, %v2384_v62 }
 0x551   : > { %5510 = vmatpush.xpose.msk.msra.mxu2 %vm1628_vm2, %v2385_v2 }
 0x5af   : > { %v2040_v12 = vpop.xlane.xlu0 %2039 }
 0x5b0   : > { %v2048_v5 = vmul.f32 %v7511_v10, %v2040_v12 }
 0x5b2   : > { %v7515_v13 = vsub.f32 %v7459_v50, %v2048_v5  ;;  %v2138_v50 = vperm.slane %v2132_v21, %v7193_v20 }
 0x5b4   : > { %v2050_v14 = vmul.f32 %v7515_v13, %v7515_v13  ;;  %v2157_v28 = vrot.slane %v2138_v50, 4 }
 0x5b6   : > { %v2051_v15 = vsel %vm1200_vm0, %v2050_v14, 0.0 }
 0x5b7   : > { %2052 = vadd.xlane.f32.xlu1 %v2051_v15 }
 0x5c2   : > { %v2129_v23 = vpop.permute.xlu0 %2128 }
 0x5c3   : > { %v2143_v53 = vrot.slane %v2129_v23, 4  ;;  %v2146_v24 = vsel %vm1228_vm1, %v2129_v23, %v2145_v49 }
 0x5c4   : > { %v2154_v26 = vperm.slane %v2146_v24, %v7193_v20 }
 0x5c5   : > { %v2144_v58 = vsel %vm1228_vm1, %v2143_v53, %v2123_v11 }
 0x5c6   : > { %v2150_v29 = vperm.slane %v2144_v58, %v7193_v20  ;;  %v2167_v30 = vrot.slane %v2154_v26, 4  ;;  %v2170_v31 = vsel %vm1228_vm1, %v2154_v26, %v2169_v25 }
 0x5c7   : > { %v2178_v43 = vperm.slane %v2170_v31, %v7202_v33  ;;  %v6005_v31 = vld [vmem:[#allocation13] ss:$0 sm:$0xff] }
 0x5c8   : > { %v2155_v35 = vrot.slane %v2150_v29, 4  ;;  %v2158_v36 = vsel %vm1228_vm1, %v2150_v29, %v2157_v28  ;;  %v2168_v37 = vsel %vm1228_vm1, %v2167_v30, %v2142_v22 }
 0x5c9   : > { %v2166_v38 = vperm.slane %v2158_v36, %v7202_v33  ;;  %v2174_v39 = vperm.slane %v2168_v37, %v7202_v33  ;;  %v2185_v40 = vrot.slane %v2178_v43, 4  ;;  %v6006_v36 = vld [vmem:[#allocation14] ss:$0 sm:$0xff] }
 0x5ca   : > { %v2156_v41 = vsel %vm1228_vm1, %v2155_v35, %v2138_v50 }
 0x5cb   : > { %v2162_v42 = vperm.slane %v2156_v41, %v7202_v33  ;;  %v2181_v44 = vrot.slane %v2166_v38, 4  ;;  %v2183_v45 = vrot.slane %v2174_v39, 4  ;;  %v2186_v46 = vsel %vm1228_vm1, 0.0, %v2185_v40 }
 0x5cc   : > { %v2198_v47 = vsel %vm1228_vm1, %v2185_v40, %v2174_v39  ;;  %v2203_v48 = vrot.slane %v2186_v46, 4  ;;  %v1169_v40 = vld [vmem:[%s1018_s22] sm:$0x1]  ;;  %v6708_v41 = vmov 0   ;;  %s8512_s22 = smov 16  }
 0x5cd   : > { %v2179_v51 = vrot.slane %v2162_v42, 4  ;;  %v2182_v52 = vsel %vm1228_vm1, 0.0, %v2181_v44  ;;  %v2184_v54 = vsel %vm1228_vm1, 0.0, %v2183_v45  ;;  %v2187_v55 = vsel %vm1228_vm1, %v2181_v44, %v2162_v42 }
 0x5ce   : > { %v2192_v56 = vrot.slane %v2182_v52, 4  ;;  %v2202_v57 = vperm.slane %v2198_v47, %v7193_v20  ;;  %v2204_v59 = vsel %vm1228_vm1, %v2203_v48, %v2184_v54  ;;  %v2191_v4 = vperm.slane %v2187_v55, %v7193_v20 }
 0x5cf   : > { %v2180_v60 = vsel %vm1228_vm1, 0.0, %v2179_v51  ;;  %v2208_v61 = vperm.slane %v2204_v59, %v7193_v20  ;;  %vm2643_vm10 = vcmp.eq.f32.partialorder %v1169_v40, 0.0 }
 0x5d0   : > { %v2223_v62 = vrot.slane %v2202_v57, 4  ;;  %v2193_v63 = vsel %vm1228_vm1, %v2192_v56, %v2180_v60  ;;  %v2211_v1 = vrot.slane %v2191_v4, 4  ;;  %v2644_v42 = vsel %vm2643_vm10, 1, %v6708_v41 }
 0x5d1   : > { %v2197_v2 = vperm.slane %v2193_v63, %v7193_v20  ;;  %v2221_v3 = vrot.slane %v2208_v61, 4  ;;  %v2645_v44 = vperm.slane %v2644_v42, 0 }
 0x5d2   : > { %v2224_v6 = vsel %vm1228_vm1, %v2208_v61, %v2223_v62 }
 0x5d3   : > { %v2212_v7 = vsel %vm1228_vm1, %v2197_v2, %v2211_v1  ;;  %v2232_v8 = vperm.slane %v2224_v6, %v7202_v33  ;;  %v2209_v9 = vrot.slane %v2197_v2, 4  ;;  %v2222_v11 = vsel %vm1228_vm1, %v2221_v3, %v2202_v57 }
 0x5d4   : > { %v2220_v12 = vperm.slane %v2212_v7, %v7202_v33  ;;  %v2228_v5 = vperm.slane %v2222_v11, %v7202_v33  ;;  %vm7571_vm11 = vcmp.eq.s32.totalorder %v2645_v44, 1 }
 0x5d5   : > { %v2237_v14 = vrot.slane %v2232_v8, 4  ;;  %v2210_v15 = vsel %vm1228_vm1, %v2209_v9, %v2191_v4 }
 0x5d6   : > { %v2216_v16 = vperm.slane %v2210_v15, %v7202_v33  ;;  %v2233_v17 = vrot.slane %v2228_v5, 4  ;;  %v2239_v18 = vrot.slane %v2220_v12, 4 }
 0x5d7   : > { %v2238_v19 = vsel %vm1228_vm1, %v2237_v14, %v2220_v12 }
 0x5d8   : > { %5513 = vmatmul.msk.f32.vlgmr.msrb.gmra.mxu3 %vm1628_vm2, %v2238_v19  ;;  %v2234_v49 = vsel %vm1228_vm1, %v2233_v17, %v2216_v16  ;;  %v2235_v21 = vrot.slane %v2216_v16, 4  ;;  %v2240_v22 = vsel %vm1228_vm1, %v2232_v8, %v2239_v18 }
 0x5d9   : > { %5509 = vmatmul.msk.f32.vlgmr.msra.gmra.mxu1 %vm1628_vm2, %v2234_v49 }
 0x5da   : > { %v2236_v50 = vsel %vm1228_vm1, %v2228_v5, %v2235_v21 }
 0x5db   : > { %5511 = vmatmul.msk.f32.vlgmr.msra.gmra.mxu2 %vm1628_vm2, %v2236_v50 }
 0x62a   : > { %v2053_v23 = vpop.xlane.xlu1 %2052 }
 0x62b   : > { %v2054_v53 = vmul.f32 %v2053_v23, %v7511_v10 }
 0x62d   : > { %v2055_v24 = vadd.f32 1e-05, %v2054_v53 }
 0x62f   : > { %6043 = vrsqrt.f32 %v2055_v24  ;;  %vm2062_vm8 = vweird.f32 %v2055_v24 }
 0x635   : > { %v6044_v25 = vpop.eup %6043 }
 0x636   : > { %v2057_v26 = vmul.f32 %v6044_v25, %v2055_v24  ;;  %vm2063_vm7 = vweird.f32 %v6044_v25 }
 0x637   : > { %vm2064_vm9 = vmor %vm2062_vm8, %vm2063_vm7 }
 0x638   : > { %v2058_v58 = vmul.f32 %v6044_v25, %v2057_v26 }
 0x63a   : > { %v2059_v28 = vmul.f32 0.5, %v2058_v58 }
 0x63c   : > { %v2060_v29 = vsub.f32 1.5, %v2059_v28 }
 0x63e   : > { %v2061_v30 = vmul.f32 %v6044_v25, %v2060_v29 }
 0x640   : > { %v2065_v43 = vsel %vm2064_vm9, %v6044_v25, %v2061_v30 }
 0x641   : > { %v2066_v35 = vmul.f32 %v2065_v43, %v7515_v13 }
 0x643   : > { %v2070_v37 = vmul.f32 %v6005_v31, %v2066_v35 }
 0x645   : > { %v2074_v38 = vadd.f32 %v6006_v36, %v2070_v37 }
 0x647   : > { %v2390_v39 = vpack.c.bf16 %v2074_v38, %v2074_v38 }
 0x649   : > { %5507 = vmatmul.msk.bf16.vlgmr.msrb.gmra.mxu0 %vm1200_vm0, %v2390_v39 }
 0x656   : > { %v2562_v51 = vpop.f32.mrf.mxu1 }
 0x657   : > { %v2647_v55 = vsel %vm7571_vm11, -1e+20, %v2562_v51 }
 0x658   : > { %v2651_v56 = vsel %vm1628_vm2, %v2647_v55, -inf }
 0x659   : > { %5515 = vmatmul.msk.f32.vlgmr.msra.gmra.mxu0 %vm1628_vm2, %v2240_v22 }
 0x65b   : > { %v2614_v46 = vpop.f32.mrf.mxu3 }
 0x65c   : > { %v2649_v13 = vsel %vm7571_vm11, -1e+20, %v2614_v46 }
 0x65d   : > { %v2657_v47 = vsel %vm1628_vm2, %v2649_v13, -inf }
 0x65e   : > { %2658 = vmax.xlane.f32.xlu1 %v2657_v47  ;;  %v2588_v48 = vpop.f32.mrf.mxu2 }
 0x65f   : > { %v2648_v52 = vsel %vm7571_vm11, -1e+20, %v2588_v48 }
 0x660   : > { %v2654_v54 = vsel %vm1628_vm2, %v2648_v52, -inf }
 0x661   : > { %2655 = vmax.xlane.f32.xlu2 %v2654_v54 }
 0x666   : > { %2652 = vmax.xlane.f32.xlu1 %v2651_v56 }
 0x6c6   : > { %v2415_v57 = vpop.f32.mrf.mxu0 }
 0x6c7   : > { %2420 = vrot.lane.b32.xlu0 %v2415_v57, %s8419_s14  ;;  %v2431_v58 = vrot.slane %v2415_v57, 4 }
 0x6ce   : > { %v2417_v59 = vpop.f32.mrf.mxu0 }
 0x6cf   : > { %2426 = vrot.lane.b32.xlu0 %v2415_v57, %s8415_s24  ;;  %s8516_s24 = sld [smem:[#allocation69_spill]] }
 0x6d1   : > { %v2659_v6 = vpop.xlane.xlu1 %2658 }
 0x6d2   : > { %v2665_v7 = vsub.f32 %v2649_v13, %v2659_v6 }
 0x6d4   : > { %v2656_v4 = vpop.xlane.xlu2 %2655  ;;  %v2671_v8 = vmul.f32 1.442695, %v2665_v7 }
 0x6d5   : > { %v2664_v60 = vsub.f32 %v2648_v52, %v2656_v4 }
 0x6d6   : > { %v2640_v61 = vpop.f32.mrf.mxu0 }
 0x6d7   : > { %v2669_v62 = vmul.f32 1.442695, %v2664_v60  ;;  %v2650_v63 = vsel %vm7571_vm11, -1e+20, %v2640_v61 }
 0x6d8   : > { %v2660_v1 = vsel %vm1628_vm2, %v2650_v63, -inf }
 0x6d9   : > { %6045 = vpow2.f32 %v2669_v62  ;;  %2661 = vmax.xlane.f32.xlu1 %v2660_v1  ;;  %v2653_v12 = vpop.xlane.xlu1 %2652 }
 0x6da   : > { %6047 = vpow2.f32 %v2671_v8  ;;  %v2663_v5 = vsub.f32 %v2647_v55, %v2653_v12 }
 0x6dc   : > { %v2667_v14 = vmul.f32 1.442695, %v2663_v5 }
 0x6de   : > { %6049 = vpow2.f32 %v2667_v14 }
 0x6df   : > { %v7589_v2 = vpop.eup %6045 }
 0x6e0   : > { %v2678_v3 = vsel %vm1628_vm2, %v7589_v2, 0.0  ;;  %v7594_v9 = vpop.eup %6047 }
 0x6e1   : > { %2679 = vadd.xlane.f32.xlu2 %v2678_v3  ;;  %v2681_v11 = vsel %vm1628_vm2, %v7594_v9, 0.0 }
 0x6e4   : > { %v7598_v15 = vpop.eup %6049 }
 0x6e5   : > { %v2675_v16 = vsel %vm1628_vm2, %v7598_v15, 0.0 }
 0x6f2   : > { %2423 = vrot.lane.b32.xlu1 %v2415_v57, %s8417_s13  ;;  %s8519_s13 = sld [smem:[#allocation70_spill]] }
 0x6f9   : > { %2682 = vadd.xlane.f32.xlu0 %v2681_v11 }
 0x71c   : > { %2676 = vadd.xlane.f32.xlu1 %v2675_v16 }
 0x739   : > { %v2421_v49 = vpop.permute.xlu0 %2420 }
 0x73a   : > { %v2443_v23 = vrot.slane %v2421_v49, 4 }
 0x741   : > { %v2427_v50 = vpop.permute.xlu0 %2426 }
 0x742   : > { %v2441_v53 = vrot.slane %v2427_v50, 4  ;;  %v2444_v24 = vsel %vm1228_vm1, %v2427_v50, %v2443_v23 }
 0x743   : > { %v2452_v26 = vperm.slane %v2444_v24, %v7193_v20 }
 0x744   : > { %v2442_v25 = vsel %vm1228_vm1, %v2441_v53, %v2421_v49 }
 0x745   : > { %v2448_v28 = vperm.slane %v2442_v25, %v7193_v20  ;;  %v2465_v43 = vrot.slane %v2452_v26, 4 }
 0x747   : > { %v2453_v37 = vrot.slane %v2448_v28, 4 }
 0x74c   : > { %v2662_v17 = vpop.xlane.xlu1 %2661 }
 0x74d   : > { %v2666_v18 = vsub.f32 %v2650_v63, %v2662_v17 }
 0x74f   : > { %v2673_v19 = vmul.f32 1.442695, %v2666_v18 }
 0x751   : > { %6051 = vpow2.f32 %v2673_v19 }
 0x754   : > { %v2680_v3 = vpop.xlane.xlu2 %2679 }
 0x757   : > { %v7602_v21 = vpop.eup %6051 }
 0x758   : > { %v2684_v22 = vsel %vm1628_vm2, %v7602_v21, 0.0 }
 0x759   : > { %2685 = vadd.xlane.f32.xlu2 %v2684_v22 }
 0x764   : > { %v2424_v29 = vpop.permute.xlu1 %2423 }
 0x765   : > { %v2429_v30 = vrot.slane %v2424_v29, 4  ;;  %v2432_v31 = vsel %vm1228_vm1, %v2424_v29, %v2431_v58 }
 0x766   : > { %v2440_v35 = vperm.slane %v2432_v31, %v7193_v20 }
 0x767   : > { %v2430_v36 = vsel %vm1228_vm1, %v2429_v30, %v2415_v57 }
 0x768   : > { %v2436_v38 = vperm.slane %v2430_v36, %v7193_v20  ;;  %v2466_v39 = vsel %vm1228_vm1, %v2465_v43, %v2440_v35  ;;  %v2467_v40 = vrot.slane %v2440_v35, 4 }
 0x769   : > { %v2472_v41 = vperm.slane %v2466_v39, %v7202_v33 }
 0x76a   : > { %v2454_v42 = vsel %vm1228_vm1, %v2453_v37, %v2436_v38  ;;  %v2455_v44 = vrot.slane %v2436_v38, 4  ;;  %v2468_v46 = vsel %vm1228_vm1, %v2452_v26, %v2467_v40 }
 0x76b   : > { %v2460_v13 = vperm.slane %v2454_v42, %v7202_v33  ;;  %v2476_v47 = vperm.slane %v2468_v46, %v7202_v33  ;;  %v2481_v52 = vrot.slane %v2472_v41, 4 }
 0x76c   : > { %v2456_v48 = vsel %vm1228_vm1, %v2448_v28, %v2455_v44  ;;  %v2683_v55 = vpop.xlane.xlu0 %2682 }
 0x76d   : > { %v2464_v51 = vperm.slane %v2456_v48, %v7202_v33  ;;  %v2483_v54 = vrot.slane %v2476_v47, 4  ;;  %v2477_v56 = vrot.slane %v2460_v13, 4  ;;  %6053 = vrcp.f32 %v2683_v55 }
 0x76e   : > { %v2482_v63 = vsel %vm1228_vm1, 0.0, %v2481_v52  ;;  %6055 = vrcp.f32 %v2680_v3 }
 0x76f   : > { %v2479_v57 = vrot.slane %v2464_v51, 4  ;;  %v2484_v59 = vsel %vm1228_vm1, 0.0, %v2483_v54  ;;  %v2496_v4 = vsel %vm1228_vm1, %v2483_v54, %v2472_v41  ;;  %v2478_v12 = vsel %vm1228_vm1, 0.0, %v2477_v56 }
 0x770   : > { %v2500_v60 = vperm.slane %v2496_v4, %v7193_v20  ;;  %v2501_v61 = vrot.slane %v2484_v59, 4 }
 0x771   : > { %v2480_v62 = vsel %vm1228_vm1, 0.0, %v2479_v57  ;;  %v2485_v1 = vsel %vm1228_vm1, %v2479_v57, %v2460_v13 }
 0x772   : > { %v2490_v6 = vrot.slane %v2480_v62, 4  ;;  %v2502_v7 = vsel %vm1228_vm1, %v2501_v61, %v2482_v63  ;;  %v2489_v8 = vperm.slane %v2485_v1, %v7193_v20  ;;  %v2521_v11 = vrot.slane %v2500_v60, 4 }
 0x773   : > { %v2506_v5 = vperm.slane %v2502_v7, %v7193_v20  ;;  %v6054_v49 = vpop.eup %6053 }
 0x774   : > { %v2491_v14 = vsel %vm1228_vm1, %v2490_v6, %v2478_v12  ;;  %v2509_v16 = vrot.slane %v2489_v8, 4  ;;  %v2693_v58 = vmul.f32 %v6054_v49, %v7594_v9  ;;  %v6056_v35 = vpop.eup %6055 }
 0x775   : > { %v2495_v17 = vperm.slane %v2491_v14, %v7193_v20  ;;  %v2522_v18 = vsel %vm1228_vm1, %v2506_v5, %v2521_v11  ;;  %v2519_v19 = vrot.slane %v2506_v5, 4  ;;  %v2692_v9 = vmul.f32 %v6056_v35, %v7589_v2 }
 0x776   : > { %v2530_v22 = vperm.slane %v2522_v18, %v7202_v33 }
 0x777   : > { %v2510_v50 = vsel %vm1228_vm1, %v2495_v17, %v2509_v16  ;;  %v2507_v23 = vrot.slane %v2495_v17, 4  ;;  %v2520_v53 = vsel %vm1228_vm1, %v2519_v19, %v2500_v60 }
 0x778   : > { %v2518_v24 = vperm.slane %v2510_v50, %v7202_v33  ;;  %v2535_v25 = vrot.slane %v2530_v22, 4  ;;  %v2526_v26 = vperm.slane %v2520_v53, %v7202_v33 }
 0x779   : > { %v2508_v28 = vsel %vm1228_vm1, %v2507_v23, %v2489_v8 }
 0x77a   : > { %v2536_v29 = vsel %vm1228_vm1, %v2535_v25, %v2518_v24  ;;  %v2514_v30 = vperm.slane %v2508_v28, %v7202_v33  ;;  %v2531_v31 = vrot.slane %v2526_v26, 4  ;;  %v2537_v43 = vrot.slane %v2518_v24, 4 }
 0x77b   : > { %2759 = vmatpush.msra.mxu3 %v2536_v29 }
 0x77c   : > { %5518 = vmatmul.msk.f32.vlgmr.msra.gmra.mxu3 %vm1628_vm2, %v2693_v58  ;;  %v2532_v36 = vsel %vm1228_vm1, %v2531_v31, %v2514_v30  ;;  %v2538_v37 = vsel %vm1228_vm1, %v2530_v22, %v2537_v43  ;;  %v2533_v38 = vrot.slane %v2514_v30, 4 }
 0x77d   : > { %2713 = vmatpush.msrb.mxu1 %v2532_v36  ;;  %2782 = vmatpush.msrb.mxu0 %v2538_v37 }
 0x77e   : > { %v2534_v39 = vsel %vm1228_vm1, %v2526_v26, %v2533_v38 }
 0x77f   : > { %2736 = vmatpush.msrb.mxu2 %v2534_v39 }
 0x780   : > { %5517 = vmatmul.msk.f32.vlgmr.msrb.gmra.mxu2 %vm1628_vm2, %v2692_v9 }
 0x78f   : > { %v2677_v40 = vpop.xlane.xlu1 %2676 }
 0x790   : > { %6057 = vrcp.f32 %v2677_v40 }
 0x796   : > { %v6058_v41 = vpop.eup %6057 }
 0x797   : > { %v2691_v42 = vmul.f32 %v6058_v41, %v7598_v15 }
 0x799   : > { %5516 = vmatmul.msk.f32.vlgmr.msrb.gmra.mxu1 %vm1628_vm2, %v2691_v42 }
 0x7cc   : > { %v2686_v44 = vpop.xlane.xlu2 %2685 }
 0x7cd   : > { %6059 = vrcp.f32 %v2686_v44 }
 0x7d3   : > { %v6060_v46 = vpop.eup %6059 }
 0x7d4   : > { %v2694_v13 = vmul.f32 %v6060_v46, %v7602_v21 }
 0x7d6   : > { %5519 = vmatmul.msk.f32.vlgmr.msrb.gmra.mxu0 %vm1628_vm2, %v2694_v13 }
 0x7ff   : > { %v2761_v48 = vpop.f32.mrf.mxu3 }
 0x800   : > { %v2787_v51 = vrot.slane %v2761_v48, 4 }
 0x803   : > { %v2738_v54 = vpop.f32.mrf.mxu2 }
 0x804   : > { %v2801_v56 = vrot.slane %v2738_v54, 4 }
 0x816   : > { %v2715_v2 = vpop.f32.mrf.mxu1 }
 0x817   : > { %v2789_v47 = vrot.slane %v2715_v2, 4  ;;  %v2788_v55 = vsel %vm1228_vm1, %v2787_v51, %v2715_v2 }
 0x818   : > { %v2794_v57 = vperm.slane %v2788_v55, %v7193_v20 }
 0x819   : > { %v2790_v52 = vsel %vm1228_vm1, %v2761_v48, %v2789_v47 }
 0x81a   : > { %v2798_v15 = vperm.slane %v2790_v52, %v7193_v20  ;;  %v2813_v63 = vrot.slane %v2794_v57, 4 }
 0x81c   : > { %v2825_v60 = vrot.slane %v2798_v15, 4 }
 0x853   : > { %v2784_v59 = vpop.f32.mrf.mxu0 }
 0x854   : > { %v2799_v4 = vrot.slane %v2784_v59, 4  ;;  %v2802_v21 = vsel %vm1228_vm1, %v2784_v59, %v2801_v56  ;;  %v5774_v59 = vld [vmem:[#allocation19 + $0x8] sm:$0xff] }
 0x855   : > { %v2810_v61 = vperm.slane %v2802_v21, %v7193_v20  ;;  %2937 = vmatpush.bf16.msra.mxu1 %v5774_v59 }
 0x856   : > { %v2800_v62 = vsel %vm1228_vm1, %v2799_v4, %v2738_v54  ;;  %v5773_v4 = vld [vmem:[#allocation19] sm:$0xff] }
 0x857   : > { %v2806_v1 = vperm.slane %v2800_v62, %v7193_v20  ;;  %v2823_v3 = vrot.slane %v2810_v61, 4  ;;  %v2826_v6 = vsel %vm1228_vm1, %v2810_v61, %v2825_v60 }
 0x858   : > { %v2834_v7 = vperm.slane %v2826_v6, %v7202_v33  ;;  %v6007_v6 = vld [vmem:[#allocation20] ss:$0 sm:$0xff] }
 0x859   : > { %v2811_v8 = vrot.slane %v2806_v1, 4  ;;  %v2814_v11 = vsel %vm1228_vm1, %v2806_v1, %v2813_v63  ;;  %v2824_v12 = vsel %vm1228_vm1, %v2823_v3, %v2798_v15  ;;  %2938 = vmatpush.bf16.msra.mxu1 %v5773_v4 }
 0x85a   : > { %v2822_v5 = vperm.slane %v2814_v11, %v7202_v33  ;;  %v2830_v14 = vperm.slane %v2824_v12, %v7202_v33  ;;  %v2841_v16 = vrot.slane %v2834_v7, 4 }
 0x85b   : > { %v2812_v17 = vsel %vm1228_vm1, %v2811_v8, %v2794_v57 }
 0x85c   : > { %v2818_v18 = vperm.slane %v2812_v17, %v7202_v33  ;;  %v2837_v19 = vrot.slane %v2822_v5, 4  ;;  %v2839_v49 = vrot.slane %v2830_v14, 4  ;;  %v2842_v22 = vsel %vm1228_vm1, 0.0, %v2841_v16 }
 0x85d   : > { %v2854_v50 = vsel %vm1228_vm1, %v2841_v16, %v2830_v14  ;;  %v2859_v23 = vrot.slane %v2842_v22, 4  ;;  %v5775_v22 = vld [vmem:[#allocation25] sm:$0xff] }
 0x85e   : > { %v2835_v53 = vrot.slane %v2818_v18, 4  ;;  %v2838_v24 = vsel %vm1228_vm1, 0.0, %v2837_v19  ;;  %v2840_v25 = vsel %vm1228_vm1, 0.0, %v2839_v49  ;;  %v2858_v26 = vperm.slane %v2854_v50, %v7193_v20  ;;  %v5776_v49 = vld [vmem:[#allocation25 + $0x8] sm:$0xff] }
 0x85f   : > { %v2848_v58 = vrot.slane %v2838_v24, 4  ;;  %v2843_v28 = vsel %vm1228_vm1, %v2837_v19, %v2818_v18  ;;  %v2860_v29 = vsel %vm1228_vm1, %v2859_v23, %v2840_v25  ;;  %3007 = vmatpush.bf16.msra.mxu2 %v5776_v49  ;;  %v5784_v50 = vld [vmem:[%s8505_s29 + $0x38] sm:$0xff]  ;;  %v5782_v25 = vld [vmem:[%s8505_s29 + $0x28] sm:$0xff] }
 0x860   : > { %v2836_v30 = vsel %vm1228_vm1, 0.0, %v2835_v53  ;;  %v2847_v31 = vperm.slane %v2843_v28, %v7193_v20  ;;  %v2864_v43 = vperm.slane %v2860_v29, %v7193_v20  ;;  %v2879_v35 = vrot.slane %v2858_v26, 4  ;;  %3084 = vmatpush.bf16.msrb.mxu3 %v5784_v50  ;;  %v5783_v53 = vld [vmem:[%s8505_s29 + $0x30] sm:$0xff]  ;;  %v5780_v29 = vld [vmem:[%s8505_s29 + $0x18] sm:$0xff] }
 0x861   : > { %v2849_v36 = vsel %vm1228_vm1, %v2848_v58, %v2836_v30 }
 0x862   : > { %v2853_v37 = vperm.slane %v2849_v36, %v7193_v20  ;;  %v2867_v38 = vrot.slane %v2847_v31, 4  ;;  %v2880_v9 = vsel %vm1228_vm1, %v2864_v43, %v2879_v35  ;;  %v2877_v39 = vrot.slane %v2864_v43, 4  ;;  %v5779_v43 = vld [vmem:[%s8505_s29 + $0x10] sm:$0xff] }
 0x863   : > { %v2888_v40 = vperm.slane %v2880_v9, %v7202_v33  ;;  %3008 = vmatpush.bf16.msra.mxu2 %v5775_v22  ;;  %v6009_v9 = vld [vmem:[#allocation23] ss:$0 sm:$0xff]  ;;  %v6012_v22 = vld [vmem:[#allocation26] ss:$0 sm:$0xff] }
 0x864   : > { %v2868_v41 = vsel %vm1228_vm1, %v2853_v37, %v2867_v38  ;;  %v2865_v42 = vrot.slane %v2853_v37, 4  ;;  %v2878_v44 = vsel %vm1228_vm1, %v2877_v39, %v2858_v26  ;;  %3085 = vmatpush.bf16.msrb.mxu3 %v5783_v53  ;;  %v5781_v26 = vld [vmem:[%s8505_s29 + $0x20] sm:$0xff]  ;;  %v6008_v37 = vld [vmem:[#allocation22] ss:$0 sm:$0xff] }
 0x865   : > { %v2876_v46 = vperm.slane %v2868_v41, %v7202_v33  ;;  %v2893_v13 = vrot.slane %v2888_v40, 4  ;;  %v2884_v2 = vperm.slane %v2878_v44, %v7202_v33  ;;  %v5778_v44 = vld [vmem:[%s8505_s29 + $0x8] sm:$0xff] }
 0x866   : > { %v2866_v47 = vsel %vm1228_vm1, %v2865_v42, %v2847_v31 }
 0x867   : > { %v2894_v48 = vsel %vm1228_vm1, %v2893_v13, %v2876_v46  ;;  %v2872_v51 = vperm.slane %v2866_v47, %v7202_v33  ;;  %v2889_v52 = vrot.slane %v2884_v2, 4  ;;  %v2895_v56 = vrot.slane %v2876_v46, 4  ;;  %v5777_v46 = vld [vmem:[%s8505_s29] sm:$0xff] }
 0x868   : > { %2902 = vrot.lane.b32.xlu0 %v2894_v48, %s8413_s26  ;;  %3086 = vmatpush.bf16.msrb.mxu3 %v5782_v25  ;;  %v6010_v13 = vld [vmem:[%s8506_s7] ss:$0 sm:$0xff]  ;;  %s8509_s26 = sld [smem:[#allocation68_spill]] }
 0x869   : > { %v2891_v54 = vrot.slane %v2872_v51, 4  ;;  %v2890_v55 = vsel %vm1228_vm1, %v2889_v52, %v2872_v51  ;;  %v2896_v57 = vsel %vm1228_vm1, %v2888_v40, %v2895_v56 }
 0x86b   : > { %v2892_v15 = vsel %vm1228_vm1, %v2884_v2, %v2891_v54  ;;  %v6011_v54 = vld [vmem:[%s8508_s15] ss:$0 sm:$0xff] }
 0x86c   : > { %2898 = vrot.lane.b32.xlu2 %v2892_v15, %s8411_s9  ;;  %3087 = vmatpush.bf16.msrb.mxu3 %v5781_v26  ;;  %s8510_s9 = smov 112  }
 0x870   : > { %3088 = vmatpush.bf16.msrb.mxu3 %v5780_v29 }
 0x874   : > { %2906 = vrot.lane.b32.xlu2 %v2896_v57, %s8504_s20  ;;  %3089 = vmatpush.bf16.msrb.mxu3 %v5779_v43 }
 0x878   : > { %3090 = vmatpush.bf16.msrb.mxu3 %v5778_v44 }
 0x87c   : > { %3091 = vmatpush.bf16.msrb.mxu3 %v5777_v46 }
 0x8c6   : > { %v2899_v21 = vpop.permute.xlu2 %2898 }
 0x8c7   : > { %v2909_v60 = vsel %vm1628_vm2, %v2890_v55, %v2899_v21 }
 0x8ce   : > { %v2907_v62 = vpop.permute.xlu2 %2906 }
 0x8da   : > { %v2903_v61 = vpop.permute.xlu0 %2902 }
 0x8db   : > { %v2910_v63 = vsel %vm1999_vm4, %v2909_v60, %v2903_v61 }
 0x8dc   : > { %v2911_v1 = vsel %vm2001_vm5, %v2910_v63, %v2907_v62  ;;  %v5788_v63 = vld [vmem:[%s8497_s6 + $0x18] sm:$0xff] }
 0x8dd   : > { %v2912_v3 = vpack.c.bf16 %v2911_v1, %v2911_v1  ;;  %v5786_v1 = vld [vmem:[%s8496_s1 + $0x18] sm:$0xff]  ;;  %3319 = vmatpush.bf16.msrb.mxu1 %v5788_v63 }
 0x8de   : > { %3174 = vmatpush.bf16.msra.mxu0 %v5786_v1 }
 0x8df   : > { %5528 = vmatmul.msk.bf16.vlgmr.msra.gmra.mxu1 %vm1200_vm0, %v2912_v3  ;;  %v5790_v3 = vld [vmem:[%s8498_s2 + $0x18] sm:$0xff] }
 0x8e0   : > { %3464 = vmatpush.bf16.msrb.mxu2 %v5790_v3 }
 0x95c   : > { %v2940_v7 = vpop.f32.mrf.mxu1 }
 0x95d   : > { %v2941_v8 = vadd.f32 %v6007_v6, %v2940_v7  ;;  %v5787_v6 = vld [vmem:[%s8497_s6 + $0x10] sm:$0xff] }
 0x95e   : > { %v5785_v7 = vld [vmem:[%s8496_s1 + $0x10] sm:$0xff]  ;;  %3320 = vmatpush.bf16.msrb.mxu1 %v5787_v6  ;;  %s8514_s1 = smov 120  }
 0x95f   : > { %v2944_v11 = vadd.f32 %v2941_v8, %v7437_v32  ;;  %v5789_v8 = vld [vmem:[%s8498_s2 + $0x10] sm:$0xff]  ;;  %3175 = vmatpush.bf16.msra.mxu0 %v5785_v7  ;;  %s5122_s2 = scalar_lea.sflag [#allocation4], %s7114_s25 }
 0x960   : > { %3465 = vmatpush.bf16.msrb.mxu2 %v5789_v8 }
 0x961   : > { %v2947_v12 = vsel %vm1200_vm0, %v2944_v11, 0.0 }
 0x962   : > { %2948 = vadd.xlane.f32.xlu1 %v2947_v12 }
 0x964   : > { %v2942_v5 = vpop.f32.mrf.mxu1 }
 0x9d5   : > { %v2949_v14 = vpop.xlane.xlu1 %2948 }
 0x9d6   : > { %v2950_v16 = vmul.f32 %v2949_v14, %v7511_v10 }
 0x9d8   : > { %v2951_v17 = vsub.f32 %v2944_v11, %v2950_v16 }
 0x9da   : > { %v2952_v18 = vmul.f32 %v2951_v17, %v2951_v17 }
 0x9dc   : > { %v2953_v19 = vsel %vm1200_vm0, %v2952_v18, 0.0 }
 0x9dd   : > { %2954 = vadd.xlane.f32.xlu2 %v2953_v19 }
 0xa50   : > { %v2955_v32 = vpop.xlane.xlu2 %2954 }
 0xa51   : > { %v2956_v23 = vmul.f32 %v2955_v32, %v7511_v10  ;;  %v6013_v32 = vld [vmem:[%s8509_s26] ss:$0 sm:$0xff] }
 0xa53   : > { %v2957_v24 = vadd.f32 1e-05, %v2956_v23 }
 0xa55   : > { %6061 = vrsqrt.f32 %v2957_v24  ;;  %vm2964_vm13 = vweird.f32 %v2957_v24 }
 0xa5b   : > { %v6062_v58 = vpop.eup %6061 }
 0xa5c   : > { %v2959_v28 = vmul.f32 %v6062_v58, %v2957_v24  ;;  %vm2965_vm12 = vweird.f32 %v6062_v58 }
 0xa5d   : > { %vm2966_vm14 = vmor %vm2964_vm13, %vm2965_vm12 }
 0xa5e   : > { %v2960_v30 = vmul.f32 %v6062_v58, %v2959_v28 }
 0xa60   : > { %v2961_v31 = vmul.f32 0.5, %v2960_v30 }
 0xa62   : > { %v2962_v35 = vsub.f32 1.5, %v2961_v31 }
 0xa64   : > { %v2963_v36 = vmul.f32 %v6062_v58, %v2962_v35 }
 0xa66   : > { %v2967_v38 = vsel %vm2966_vm14, %v6062_v58, %v2963_v36 }
 0xa67   : > { %v2968_v39 = vmul.f32 %v2967_v38, %v2951_v17 }
 0xa69   : > { %v2972_v40 = vmul.f32 %v6008_v37, %v2968_v39 }
 0xa6b   : > { %v2976_v41 = vadd.f32 %v6009_v9, %v2972_v40 }
 0xa6d   : > { %v2977_v42 = vpack.c.bf16 %v2976_v41, %v2976_v41 }
 0xa6f   : > { %5537 = vmatmul.msk.bf16.vlgmr.msra.gmra.mxu2 %vm1200_vm0, %v2977_v42 }
 0xaf2   : > { %v3010_v2 = vpop.f32.mrf.mxu2 }
 0xaf3   : > { %v3011_v47 = vadd.f32 %v6010_v13, %v3010_v2 }
 0xaf5   : > { %v3014_v48 = vmax.f32 %v3011_v47, 0.0 }
 0xaf7   : > { %v3015_v51 = vpack.c.bf16 %v3014_v48, %v3014_v48 }
 0xaf9   : > { %3092 = vmatmul.bf16.vlgmr.msrb.gmra.mxu3 %v3015_v51 }
 0xafa   : > { %v3012_v52 = vpop.f32.mrf.mxu2 }
 0xb7c   : > { %v3093_v55 = vpop.f32.mrf.mxu3 }
 0xb7d   : > { %v3094_v15 = vadd.f32 %v6011_v54, %v3093_v55 }
 0xb7f   : > { %v3097_v56 = vadd.f32 %v3094_v15, %v2976_v41 }
 0xb81   : > { %v3100_v57 = vsel %vm1200_vm0, %v3097_v56, 0.0 }
 0xb82   : > { %3101 = vadd.xlane.f32.xlu0 %v3100_v57 }
 0xb84   : > { %v3095_v59 = vpop.f32.mrf.mxu3 }
 0xbf5   : > { %v3102_v4 = vpop.xlane.xlu0 %3101 }
 0xbf6   : > { %v3103_v21 = vmul.f32 %v3102_v4, %v7511_v10 }
 0xbf8   : > { %v3104_v60 = vsub.f32 %v3097_v56, %v3103_v21 }
 0xbfa   : > { %v3105_v61 = vmul.f32 %v3104_v60, %v3104_v60 }
 0xbfc   : > { %v3106_v62 = vsel %vm1200_vm0, %v3105_v61, 0.0 }
 0xbfd   : > { %3107 = vadd.xlane.f32.xlu1 %v3106_v62 }
 0xc70   : > { %v3108_v11 = vpop.xlane.xlu1 %3107 }
 0xc71   : > { %v3109_v12 = vmul.f32 %v3108_v11, %v7511_v10 }
 0xc73   : > { %v3110_v5 = vadd.f32 1e-05, %v3109_v12 }
 0xc75   : > { %6063 = vrsqrt.f32 %v3110_v5  ;;  %vm3117_vm6 = vweird.f32 %v3110_v5 }
 0xc7b   : > { %v6064_v14 = vpop.eup %6063 }
 0xc7c   : > { %v3112_v16 = vmul.f32 %v6064_v14, %v3110_v5  ;;  %vm3118_vm15 = vweird.f32 %v6064_v14 }
 0xc7d   : > { %vm3119_vm7 = vmor %vm3117_vm6, %vm3118_vm15 }
 0xc7e   : > { %v3113_v17 = vmul.f32 %v6064_v14, %v3112_v16 }
 0xc80   : > { %v3114_v18 = vmul.f32 0.5, %v3113_v17 }
 0xc82   : > { %v3115_v19 = vsub.f32 1.5, %v3114_v18 }
 0xc84   : > { %v3116_v49 = vmul.f32 %v6064_v14, %v3115_v19 }
 0xc86   : > { %v3120_v50 = vsel %vm3119_vm7, %v6064_v14, %v3116_v49 }
 0xc87   : > { %v3121_v23 = vmul.f32 %v3120_v50, %v3104_v60 }
 0xc89   : > { %v3125_v53 = vmul.f32 %v6012_v22, %v3121_v23 }
 0xc8b   : > { %v7762_v24 = vadd.f32 %v6013_v32, %v3125_v53 }
 0xc8d   : > { %v3152_v25 = vpack.c.bf16 %v7762_v24, %v7762_v24 }
 0xc8f   : > { %5594 = vmatmul.msk.bf16.vlgmr.msra.gmra.mxu0 %vm1200_vm0, %v3152_v25  ;;  %5603 = vmatmul.msk.bf16.vlgmr.msrb.gmra.mxu1 %vm1200_vm0, %v3152_v25 }
 0xc90   : > { %5612 = vmatmul.msk.bf16.vlgmr.msrb.gmra.mxu2 %vm1200_vm0, %v3152_v25 }
 0xd0c   : > { %v3177_v26 = vpop.f32.mrf.mxu0  ;;  %v3322_v58 = vpop.f32.mrf.mxu1 }
 0xd0d   : > { %3327 = vrot.lane.b32.xlu0 %v3322_v58, %s8419_s14  ;;  %3330 = vrot.lane.b32.xlu1 %v3322_v58, %s8510_s9  ;;  %v3338_v36 = vrot.slane %v3322_v58, 4  ;;  %v3193_v63 = vrot.slane %v3177_v26, 4 }
 0xd0e   : > { %3185 = vrot.lane.b32.xlu2 %v3177_v26, %s8510_s9 }
 0xd13   : > { %v7772_v28 = vpop.f32.mrf.mxu2 }
 0xd14   : > { %v3179_v29 = vpop.f32.mrf.mxu0  ;;  %v3324_v30 = vpop.f32.mrf.mxu1 }
 0xd15   : > { %3333 = vrot.lane.b32.xlu1 %v3322_v58, %s8511_s0 }
 0xd1b   : > { %v3469_v31 = vpop.f32.mrf.mxu2 }
 0xd1d   : > { %3188 = vrot.lane.b32.xlu1 %v3177_v26, %s8511_s0 }
 0xd25   : > { %3182 = vrot.lane.b32.xlu1 %v3177_v26, %s8419_s14 }
 0xd68   : > { %v3186_v41 = vpop.permute.xlu2 %3185 }
 0xd69   : > { %v3191_v48 = vrot.slane %v3186_v41, 4  ;;  %v3194_v12 = vsel %vm1228_vm1, %v3186_v41, %v3193_v63 }
 0xd6a   : > { %v3202_v30 = vperm.slane %v3194_v12, %v7193_v20 }
 0xd6b   : > { %v3192_v21 = vsel %vm1228_vm1, %v3191_v48, %v3177_v26 }
 0xd6c   : > { %v3198_v5 = vperm.slane %v3192_v21, %v7193_v20 }
 0xd7f   : > { %v3331_v43 = vpop.permute.xlu1 %3330  ;;  %v3328_v38 = vpop.permute.xlu0 %3327 }
 0xd80   : > { %v3336_v35 = vrot.slane %v3331_v43, 4  ;;  %v3339_v37 = vsel %vm1228_vm1, %v3331_v43, %v3338_v36  ;;  %v3350_v40 = vrot.slane %v3328_v38, 4  ;;  %v3217_v36 = vrot.slane %v3198_v5, 4 }
 0xd81   : > { %v3347_v39 = vperm.slane %v3339_v37, %v7193_v20 }
 0xd82   : > { %v3337_v9 = vsel %vm1228_vm1, %v3336_v35, %v3322_v58 }
 0xd83   : > { %v3343_v42 = vperm.slane %v3337_v9, %v7193_v20  ;;  %v3374_v2 = vrot.slane %v3347_v39, 4 }
 0xd85   : > { %v3362_v52 = vrot.slane %v3343_v42, 4 }
 0xd87   : > { %v3334_v44 = vpop.permute.xlu1 %3333 }
 0xd88   : > { %v3348_v46 = vrot.slane %v3334_v44, 4  ;;  %v3351_v13 = vsel %vm1228_vm1, %v3334_v44, %v3350_v40 }
 0xd89   : > { %v3359_v47 = vperm.slane %v3351_v13, %v7193_v20 }
 0xd8a   : > { %v3349_v51 = vsel %vm1228_vm1, %v3348_v46, %v3328_v38 }
 0xd8b   : > { %v3355_v54 = vperm.slane %v3349_v51, %v7193_v20  ;;  %v3372_v55 = vrot.slane %v3359_v47, 4  ;;  %v3375_v15 = vsel %vm1228_vm1, %v3359_v47, %v3374_v2  ;;  %v3229_v2 = vrot.slane %v3202_v30, 4 }
 0xd8c   : > { %v3383_v56 = vperm.slane %v3375_v15, %v7202_v33 }
 0xd8d   : > { %v3360_v57 = vrot.slane %v3355_v54, 4  ;;  %v3363_v59 = vsel %vm1228_vm1, %v3355_v54, %v3362_v52  ;;  %v3373_v4 = vsel %vm1228_vm1, %v3372_v55, %v3347_v39 }
 0xd8e   : > { %v3371_v60 = vperm.slane %v3363_v59, %v7202_v33  ;;  %v3379_v61 = vperm.slane %v3373_v4, %v7202_v33  ;;  %v3390_v62 = vrot.slane %v3383_v56, 4 }
 0xd8f   : > { %v3361_v1 = vsel %vm1228_vm1, %v3360_v57, %v3343_v42  ;;  %v3189_v3 = vpop.permute.xlu1 %3188 }
 0xd90   : > { %v3367_v6 = vperm.slane %v3361_v1, %v7202_v33  ;;  %v3386_v7 = vrot.slane %v3371_v60, 4  ;;  %v3388_v8 = vrot.slane %v3379_v61, 4  ;;  %v3391_v11 = vsel %vm1228_vm1, 0.0, %v3390_v62 }
 0xd91   : > { %v3403_v14 = vsel %vm1228_vm1, %v3390_v62, %v3379_v61  ;;  %v3408_v16 = vrot.slane %v3391_v11, 4  ;;  %v3203_v31 = vrot.slane %v3189_v3, 4 }
 0xd92   : > { %v3384_v17 = vrot.slane %v3367_v6, 4  ;;  %v3387_v18 = vsel %vm1228_vm1, 0.0, %v3386_v7  ;;  %v3389_v19 = vsel %vm1228_vm1, 0.0, %v3388_v8  ;;  %v3392_v49 = vsel %vm1228_vm1, %v3386_v7, %v3367_v6 }
 0xd93   : > { %v3397_v22 = vrot.slane %v3387_v18, 4  ;;  %v3407_v50 = vperm.slane %v3403_v14, %v7193_v20  ;;  %v3409_v32 = vsel %vm1228_vm1, %v3408_v16, %v3389_v19  ;;  %v3396_v23 = vperm.slane %v3392_v49, %v7193_v20 }
 0xd94   : > { %v3385_v53 = vsel %vm1228_vm1, 0.0, %v3384_v17  ;;  %v3413_v25 = vperm.slane %v3409_v32, %v7193_v20 }
 0xd95   : > { %v3428_v26 = vrot.slane %v3407_v50, 4  ;;  %v3398_v58 = vsel %vm1228_vm1, %v3397_v22, %v3385_v53  ;;  %v3416_v29 = vrot.slane %v3396_v23, 4 }
 0xd96   : > { %v3402_v43 = vperm.slane %v3398_v58, %v7193_v20  ;;  %v3426_v35 = vrot.slane %v3413_v25, 4 }
 0xd97   : > { %v3183_v37 = vpop.permute.xlu1 %3182  ;;  %v3429_v38 = vsel %vm1228_vm1, %v3413_v25, %v3428_v26 }
 0xd98   : > { %v3204_v9 = vsel %vm1228_vm1, %v3203_v31, %v3183_v37  ;;  %v3205_v39 = vrot.slane %v3183_v37, 4  ;;  %v3417_v40 = vsel %vm1228_vm1, %v3402_v43, %v3416_v29  ;;  %v3437_v41 = vperm.slane %v3429_v38, %v7202_v33 }
 0xd99   : > { %v3210_v42 = vperm.slane %v3204_v9, %v7193_v20  ;;  %v3425_v44 = vperm.slane %v3417_v40, %v7202_v33  ;;  %v3414_v46 = vrot.slane %v3402_v43, 4  ;;  %v3427_v13 = vsel %vm1228_vm1, %v3426_v35, %v3407_v50 }
 0xd9a   : > { %v3206_v47 = vsel %vm1228_vm1, %v3189_v3, %v3205_v39  ;;  %v3442_v48 = vrot.slane %v3437_v41, 4  ;;  %v3433_v51 = vperm.slane %v3427_v13, %v7202_v33 }
 0xd9b   : > { %v3214_v52 = vperm.slane %v3206_v47, %v7193_v20  ;;  %v3215_v54 = vrot.slane %v3210_v42, 4  ;;  %v3218_v55 = vsel %vm1228_vm1, %v3210_v42, %v3217_v36  ;;  %v3415_v15 = vsel %vm1228_vm1, %v3414_v46, %v3396_v23 }
 0xd9c   : > { %v3226_v56 = vperm.slane %v3218_v55, %v7202_v33  ;;  %v3443_v57 = vsel %vm1228_vm1, %v3442_v48, %v3425_v44  ;;  %v3421_v59 = vperm.slane %v3415_v15, %v7202_v33  ;;  %v3438_v4 = vrot.slane %v3433_v51, 4 }
 0xd9d   : > { %v3216_v21 = vsel %vm1228_vm1, %v3215_v54, %v3198_v5  ;;  %v3227_v60 = vrot.slane %v3214_v52, 4  ;;  %v3230_v61 = vsel %vm1228_vm1, %v3214_v52, %v3229_v2  ;;  %5617 = vmatpush.xpose.msk.msra.mxu1 %vm1628_vm2, %v3443_v57  ;;  %v3444_v62 = vrot.slane %v3425_v44, 4 }
 0xd9e   : > { %v3222_v63 = vperm.slane %v3216_v21, %v7202_v33  ;;  %v3238_v1 = vperm.slane %v3230_v61, %v7202_v33  ;;  %v3241_v3 = vrot.slane %v3226_v56, 4  ;;  %v3439_v6 = vsel %vm1228_vm1, %v3438_v4, %v3421_v59 }
 0xd9f   : > { %v3228_v7 = vsel %vm1228_vm1, %v3227_v60, %v3202_v30  ;;  %5613 = vmatpush.xpose.msk.msrb.mxu0 %vm1628_vm2, %v3439_v6  ;;  %v3445_v8 = vsel %vm1228_vm1, %v3437_v41, %v3444_v62  ;;  %v3440_v11 = vrot.slane %v3421_v59, 4 }
 0xda0   : > { %v3234_v12 = vperm.slane %v3228_v7, %v7202_v33  ;;  %v3239_v5 = vrot.slane %v3222_v63, 4  ;;  %v3242_v14 = vsel %vm1228_vm1, 0.0, %v3241_v3  ;;  %v3245_v16 = vrot.slane %v3238_v1, 4  ;;  %5619 = vmatpush.xpose.msk.msra.mxu2 %vm1628_vm2, %v3445_v8 }
 0xda1   : > { %v3247_v17 = vsel %vm1228_vm1, %v3241_v3, %v3222_v63  ;;  %v3252_v18 = vrot.slane %v3242_v14, 4  ;;  %v3441_v19 = vsel %vm1228_vm1, %v3433_v51, %v3440_v11 }
 0xda2   : > { %v3240_v49 = vsel %vm1228_vm1, 0.0, %v3239_v5  ;;  %v3243_v22 = vrot.slane %v3234_v12, 4  ;;  %v3246_v50 = vsel %vm1228_vm1, 0.0, %v3245_v16  ;;  %v3251_v32 = vperm.slane %v3247_v17, %v7193_v20 }
 0xda3   : > { %5615 = vmatpush.xpose.msk.msra.mxu0 %vm1628_vm2, %v3441_v19  ;;  %v3253_v23 = vsel %vm1228_vm1, %v3252_v18, %v3240_v49  ;;  %v3258_v53 = vsel %vm1228_vm1, %v3245_v16, %v3234_v12  ;;  %v3263_v25 = vrot.slane %v3246_v50, 4 }
 0xda4   : > { %v3244_v26 = vsel %vm1228_vm1, 0.0, %v3243_v22  ;;  %v3257_v58 = vperm.slane %v3253_v23, %v7193_v20  ;;  %v3271_v29 = vrot.slane %v3251_v32, 4  ;;  %v3262_v30 = vperm.slane %v3258_v53, %v7193_v20 }
 0xda5   : > { %v3264_v31 = vsel %vm1228_vm1, %v3263_v25, %v3244_v26  ;;  %v3483_v26 = vrot.slane %v7772_v28, 4 }
 0xda6   : > { %v3268_v43 = vperm.slane %v3264_v31, %v7193_v20  ;;  %v3272_v35 = vsel %vm1228_vm1, %v3257_v58, %v3271_v29  ;;  %v3283_v36 = vrot.slane %v3262_v30, 4  ;;  %v3269_v37 = vrot.slane %v3257_v58, 4 }
 0xda7   : > { %v3280_v38 = vperm.slane %v3272_v35, %v7202_v33 }
 0xda8   : > { %v3284_v9 = vsel %vm1228_vm1, %v3268_v43, %v3283_v36  ;;  %v3281_v39 = vrot.slane %v3268_v43, 4  ;;  %v3270_v42 = vsel %vm1228_vm1, %v3269_v37, %v3251_v32 }
 0xda9   : > { %v3292_v40 = vperm.slane %v3284_v9, %v7202_v33  ;;  %v3299_v41 = vrot.slane %v3280_v38, 4  ;;  %v3276_v48 = vperm.slane %v3270_v42, %v7202_v33 }
 0xdaa   : > { %v3282_v44 = vsel %vm1228_vm1, %v3281_v39, %v3262_v30 }
 0xdab   : > { %v3300_v46 = vsel %vm1228_vm1, %v3292_v40, %v3299_v41  ;;  %v3297_v13 = vrot.slane %v3292_v40, 4  ;;  %v3288_v2 = vperm.slane %v3282_v44, %v7202_v33  ;;  %v3295_v54 = vrot.slane %v3276_v48, 4 }
 0xdac   : > { %5620 = vmatmul.msk.f32.vlgmr.msra.gmra.mxu2 %vm1628_vm2, %v3300_v46 }
 0xdad   : > { %v3298_v47 = vsel %vm1228_vm1, %v3297_v13, %v3280_v38  ;;  %v3293_v51 = vrot.slane %v3288_v2, 4  ;;  %v3296_v55 = vsel %vm1228_vm1, %v3288_v2, %v3295_v54 }
 0xdae   : > { %5618 = vmatmul.msk.f32.vlgmr.msra.gmra.mxu1 %vm1628_vm2, %v3298_v47 }
 0xdaf   : > { %v3294_v52 = vsel %vm1228_vm1, %v3293_v51, %v3276_v48 }
 0xdb0   : > { %5614 = vmatmul.msk.f32.vlgmr.msrb.gmra.mxu0 %vm1628_vm2, %v3294_v52 }
 0xdb8   : > { %5616 = vmatmul.msk.f32.vlgmr.msra.gmra.mxu0 %vm1628_vm2, %v3296_v55 }
 0xe2b   : > { %v3666_v15 = vpop.f32.mrf.mxu1 }
 0xe2c   : > { %v3697_v56 = vsel %vm1733_vm3, -1e+20, %v3666_v15 }
 0xe2d   : > { %v3614_v57 = vpop.f32.mrf.mxu0  ;;  %v3705_v59 = vsel %vm1628_vm2, %v3697_v56, -inf }
 0xe2e   : > { %v3695_v4 = vsel %vm1733_vm3, -1e+20, %v3614_v57  ;;  %3706 = vmax.xlane.f32.xlu1 %v3705_v59 }
 0xe2f   : > { %v3692_v21 = vpop.f32.mrf.mxu2  ;;  %v3699_v60 = vsel %vm1628_vm2, %v3695_v4, -inf }
 0xe30   : > { %v3698_v61 = vsel %vm1733_vm3, -1e+20, %v3692_v21  ;;  %3700 = vmax.xlane.f32.xlu0 %v3699_v60 }
 0xe31   : > { %v3708_v62 = vsel %vm1628_vm2, %v3698_v61, -inf }
 0xe32   : > { %3709 = vmax.xlane.f32.xlu2 %v3708_v62 }
 0xe35   : > { %v3640_v63 = vpop.f32.mrf.mxu0 }
 0xe36   : > { %v3696_v1 = vsel %vm1733_vm3, -1e+20, %v3640_v63 }
 0xe37   : > { %v3702_v3 = vsel %vm1628_vm2, %v3696_v1, -inf }
 0xe3a   : > { %3703 = vmax.xlane.f32.xlu2 %v3702_v3 }
 0xe44   : > { %3475 = vrot.lane.b32.xlu0 %v7772_v28, %s8510_s9 }
 0xe47   : > { %3472 = vrot.lane.b32.xlu1 %v7772_v28, %s8419_s14  ;;  %s8515_s14 = scalar_lea.vmem [#allocation5], %s7117_s5 }
 0xe52   : > { %3478 = vrot.lane.b32.xlu2 %v7772_v28, %s8511_s0 }
 0xea1   : > { %v3707_v6 = vpop.xlane.xlu1 %3706 }
 0xea2   : > { %v3713_v7 = vsub.f32 %v3697_v56, %v3707_v6 }
 0xea3   : > { %v3701_v8 = vpop.xlane.xlu0 %3700 }
 0xea4   : > { %v3719_v11 = vmul.f32 1.442695, %v3713_v7  ;;  %v3711_v12 = vsub.f32 %v3695_v4, %v3701_v8 }
 0xea5   : > { %v3710_v5 = vpop.xlane.xlu2 %3709 }
 0xea6   : > { %6065 = vpow2.f32 %v3719_v11  ;;  %v3715_v27 = vmul.f32 1.442695, %v3711_v12  ;;  %v3714_v14 = vsub.f32 %v3698_v61, %v3710_v5 }
 0xea8   : > { %6067 = vpow2.f32 %v3715_v27  ;;  %v3721_v16 = vmul.f32 1.442695, %v3714_v14 }
 0xeaa   : > { %6069 = vpow2.f32 %v3721_v16 }
 0xeac   : > { %v7883_v17 = vpop.eup %6065 }
 0xead   : > { %v3704_v18 = vpop.xlane.xlu2 %3703  ;;  %v3729_v19 = vsel %vm1628_vm2, %v7883_v17, 0.0 }
 0xeae   : > { %v7887_v49 = vpop.eup %6067  ;;  %v3712_v22 = vsub.f32 %v3696_v1, %v3704_v18  ;;  %3730 = vadd.xlane.f32.xlu0 %v3729_v19 }
 0xeaf   : > { %v3723_v50 = vsel %vm1628_vm2, %v7887_v49, 0.0 }
 0xeb0   : > { %v7891_v32 = vpop.eup %6069  ;;  %v3717_v23 = vmul.f32 1.442695, %v3712_v22  ;;  %3724 = vadd.xlane.f32.xlu2 %v3723_v50 }
 0xeb1   : > { %v3732_v53 = vsel %vm1628_vm2, %v7891_v32, 0.0 }
 0xeb2   : > { %6071 = vpow2.f32 %v3717_v23  ;;  %3733 = vadd.xlane.f32.xlu1 %v3732_v53 }
 0xeb5   : > { %v3479_v25 = vpop.permute.xlu2 %3478 }
 0xeb6   : > { %v3476_v58 = vpop.permute.xlu0 %3475  ;;  %v3493_v43 = vrot.slane %v3479_v25, 4 }
 0xeb7   : > { %v3481_v29 = vrot.slane %v3476_v58, 4  ;;  %v3484_v30 = vsel %vm1228_vm1, %v3476_v58, %v3483_v26 }
 0xeb8   : > { %v7897_v31 = vpop.eup %6071  ;;  %v3492_v36 = vperm.slane %v3484_v30, %v7193_v20 }
 0xeb9   : > { %v3482_v35 = vsel %vm1228_vm1, %v3481_v29, %v7772_v28  ;;  %v3473_v37 = vpop.permute.xlu1 %3472  ;;  %v3726_v38 = vsel %vm1628_vm2, %v7897_v31, 0.0 }
 0xeba   : > { %v3488_v9 = vperm.slane %v3482_v35, %v7193_v20  ;;  %v3494_v39 = vsel %vm1228_vm1, %v3493_v43, %v3473_v37  ;;  %v3495_v40 = vrot.slane %v3473_v37, 4  ;;  %3727 = vadd.xlane.f32.xlu0 %v3726_v38  ;;  %v3519_v46 = vrot.slane %v3492_v36, 4 }
 0xebb   : > { %v3500_v41 = vperm.slane %v3494_v39, %v7193_v20 }
 0xebc   : > { %v3507_v42 = vrot.slane %v3488_v9, 4  ;;  %v3496_v44 = vsel %vm1228_vm1, %v3479_v25, %v3495_v40 }
 0xebd   : > { %v3504_v28 = vperm.slane %v3496_v44, %v7193_v20  ;;  %v3505_v13 = vrot.slane %v3500_v41, 4 }
 0xebe   : > { %v3508_v2 = vsel %vm1228_vm1, %v3500_v41, %v3507_v42 }
 0xebf   : > { %v3506_v47 = vsel %vm1228_vm1, %v3505_v13, %v3488_v9  ;;  %v3516_v48 = vperm.slane %v3508_v2, %v7202_v33  ;;  %v3517_v51 = vrot.slane %v3504_v28, 4  ;;  %v3520_v52 = vsel %vm1228_vm1, %v3504_v28, %v3519_v46 }
 0xec0   : > { %v3512_v54 = vperm.slane %v3506_v47, %v7202_v33  ;;  %v3528_v55 = vperm.slane %v3520_v52, %v7202_v33 }
 0xec1   : > { %v3518_v15 = vsel %vm1228_vm1, %v3517_v51, %v3492_v36  ;;  %v3531_v56 = vrot.slane %v3516_v48, 4 }
 0xec2   : > { %v3524_v57 = vperm.slane %v3518_v15, %v7202_v33  ;;  %v3529_v59 = vrot.slane %v3512_v54, 4  ;;  %v3535_v4 = vrot.slane %v3528_v55, 4 }
 0xec3   : > { %v3532_v21 = vsel %vm1228_vm1, 0.0, %v3531_v56  ;;  %v3537_v60 = vsel %vm1228_vm1, %v3531_v56, %v3512_v54 }
 0xec4   : > { %v3530_v61 = vsel %vm1228_vm1, 0.0, %v3529_v59  ;;  %v3533_v62 = vrot.slane %v3524_v57, 4  ;;  %v3536_v63 = vsel %vm1228_vm1, 0.0, %v3535_v4  ;;  %v3541_v1 = vperm.slane %v3537_v60, %v7193_v20 }
 0xec5   : > { %v3542_v3 = vrot.slane %v3532_v21, 4  ;;  %v3553_v6 = vrot.slane %v3536_v63, 4  ;;  %v3548_v7 = vsel %vm1228_vm1, %v3535_v4, %v3524_v57 }
 0xec6   : > { %v3534_v8 = vsel %vm1228_vm1, 0.0, %v3533_v62  ;;  %v3552_v11 = vperm.slane %v3548_v7, %v7193_v20  ;;  %v3561_v12 = vrot.slane %v3541_v1, 4 }
 0xec7   : > { %v3543_v5 = vsel %vm1228_vm1, %v3542_v3, %v3530_v61  ;;  %v3554_v27 = vsel %vm1228_vm1, %v3553_v6, %v3534_v8 }
 0xec8   : > { %v3547_v14 = vperm.slane %v3543_v5, %v7193_v20  ;;  %v3558_v16 = vperm.slane %v3554_v27, %v7193_v20  ;;  %v3573_v18 = vrot.slane %v3552_v11, 4 }
 0xeca   : > { %v3562_v19 = vsel %vm1228_vm1, %v3547_v14, %v3561_v12  ;;  %v3574_v22 = vsel %vm1228_vm1, %v3558_v16, %v3573_v18  ;;  %v3559_v50 = vrot.slane %v3547_v14, 4  ;;  %v3571_v23 = vrot.slane %v3558_v16, 4 }
 0xecb   : > { %v3570_v53 = vperm.slane %v3562_v19, %v7202_v33  ;;  %v3582_v25 = vperm.slane %v3574_v22, %v7202_v33 }
 0xecc   : > { %v3560_v26 = vsel %vm1228_vm1, %v3559_v50, %v3541_v1  ;;  %v3572_v58 = vsel %vm1228_vm1, %v3571_v23, %v3552_v11 }
 0xecd   : > { %v3589_v29 = vrot.slane %v3570_v53, 4  ;;  %v3587_v30 = vrot.slane %v3582_v25, 4  ;;  %v3566_v43 = vperm.slane %v3560_v26, %v7202_v33  ;;  %v3578_v35 = vperm.slane %v3572_v58, %v7202_v33 }
 0xecf   : > { %v3590_v36 = vsel %vm1228_vm1, %v3582_v25, %v3589_v29  ;;  %v3588_v37 = vsel %vm1228_vm1, %v3587_v30, %v3570_v53  ;;  %v3585_v38 = vrot.slane %v3566_v43, 4  ;;  %v3583_v9 = vrot.slane %v3578_v35, 4 }
 0xed0   : > { %3830 = vmatpush.msra.mxu3 %v3590_v36  ;;  %3807 = vmatpush.msrb.mxu2 %v3588_v37 }
 0xed1   : > { %v3586_v39 = vsel %vm1228_vm1, %v3578_v35, %v3585_v38  ;;  %v3584_v40 = vsel %vm1228_vm1, %v3583_v9, %v3566_v43 }
 0xed2   : > { %3784 = vmatpush.msrb.mxu1 %v3586_v39  ;;  %3761 = vmatpush.msrb.mxu0 %v3584_v40 }
 0xf21   : > { %v3731_v41 = vpop.xlane.xlu0 %3730 }
 0xf22   : > { %6073 = vrcp.f32 %v3731_v41 }
 0xf23   : > { %v3725_v42 = vpop.xlane.xlu2 %3724 }
 0xf24   : > { %6075 = vrcp.f32 %v3725_v42 }
 0xf25   : > { %v3734_v44 = vpop.xlane.xlu1 %3733 }
 0xf26   : > { %6077 = vrcp.f32 %v3734_v44 }
 0xf28   : > { %v6074_v46 = vpop.eup %6073 }
 0xf29   : > { %v3741_v28 = vmul.f32 %v6074_v46, %v7883_v17 }
 0xf2a   : > { %v6076_v13 = vpop.eup %6075 }
 0xf2b   : > { %v3739_v2 = vmul.f32 %v6076_v13, %v7887_v49  ;;  %5623 = vmatmul.msk.f32.vlgmr.msrb.gmra.mxu2 %vm1628_vm2, %v3741_v28 }
 0xf2c   : > { %v6078_v47 = vpop.eup %6077 }
 0xf2d   : > { %v3742_v48 = vmul.f32 %v6078_v47, %v7891_v32  ;;  %v3728_v51 = vpop.xlane.xlu0 %3727  ;;  %5621 = vmatmul.msk.f32.vlgmr.msrb.gmra.mxu0 %vm1628_vm2, %v3739_v2 }
 0xf2e   : > { %6079 = vrcp.f32 %v3728_v51 }
 0xf2f   : > { %5624 = vmatmul.msk.f32.vlgmr.msra.gmra.mxu3 %vm1628_vm2, %v3742_v48 }
 0xf34   : > { %v6080_v52 = vpop.eup %6079 }
 0xf35   : > { %v3740_v54 = vmul.f32 %v6080_v52, %v7897_v31 }
 0xf37   : > { %5622 = vmatmul.msk.f32.vlgmr.msrb.gmra.mxu1 %vm1628_vm2, %v3740_v54 }
 0xfaa   : > { %v3763_v17 = vpop.f32.mrf.mxu0 }
 0xfab   : > { %v3837_v15 = vrot.slane %v3763_v17, 4 }
 0xfae   : > { %v3809_v55 = vpop.f32.mrf.mxu2 }
 0xfaf   : > { %v3835_v49 = vrot.slane %v3809_v55, 4  ;;  %v3838_v57 = vsel %vm1228_vm1, %v3809_v55, %v3837_v15 }
 0xfb0   : > { %v3846_v21 = vperm.slane %v3838_v57, %v7193_v20 }
 0xfb1   : > { %v3836_v56 = vsel %vm1228_vm1, %v3835_v49, %v3763_v17 }
 0xfb2   : > { %v3842_v32 = vperm.slane %v3836_v56, %v7193_v20  ;;  %v3832_v59 = vpop.f32.mrf.mxu3  ;;  %v3873_v3 = vrot.slane %v3846_v21, 4 }
 0xfb3   : > { %v3847_v4 = vrot.slane %v3832_v59, 4 }
 0xfb4   : > { %v3786_v60 = vpop.f32.mrf.mxu1  ;;  %v3861_v62 = vrot.slane %v3842_v32, 4 }
 0xfb5   : > { %v3848_v61 = vsel %vm1228_vm1, %v3847_v4, %v3786_v60  ;;  %v3849_v31 = vrot.slane %v3786_v60, 4  ;;  %v5791_v60 = vld [vmem:[%s8500_s28 + $0x10] sm:$0xff] }
 0xfb6   : > { %v3854_v63 = vperm.slane %v3848_v61, %v7193_v20  ;;  %v5796_v61 = vld [vmem:[#allocation16 + $0x18] sm:$0xff] }
 0xfb7   : > { %v3850_v1 = vsel %vm1228_vm1, %v3832_v59, %v3849_v31  ;;  %v5794_v31 = vld [vmem:[%s8501_s12 + $0x18] sm:$0xff]  ;;  %4212 = vmatpush.bf16.msra.mxu2 %v5796_v61 }
 0xfb8   : > { %v3858_v6 = vperm.slane %v3850_v1, %v7193_v20  ;;  %v3859_v7 = vrot.slane %v3854_v63, 4  ;;  %v3862_v8 = vsel %vm1228_vm1, %v3854_v63, %v3861_v62  ;;  %v5795_v62 = vld [vmem:[#allocation16 + $0x10] sm:$0xff]  ;;  %4067 = vmatpush.bf16.msra.mxu1 %v5794_v31  ;;  %v5793_v63 = vld [vmem:[%s8501_s12 + $0x10] sm:$0xff] }
 0xfb9   : > { %v3870_v11 = vperm.slane %v3862_v8, %v7202_v33 }
 0xfba   : > { %v3860_v12 = vsel %vm1228_vm1, %v3859_v7, %v3842_v32  ;;  %v3871_v5 = vrot.slane %v3858_v6, 4  ;;  %v3874_v27 = vsel %vm1228_vm1, %v3858_v6, %v3873_v3 }
 0xfbb   : > { %v3866_v14 = vperm.slane %v3860_v12, %v7202_v33  ;;  %v3882_v16 = vperm.slane %v3874_v27, %v7202_v33  ;;  %v3885_v18 = vrot.slane %v3870_v11, 4  ;;  %4213 = vmatpush.bf16.msra.mxu2 %v5795_v62 }
 0xfbc   : > { %v3872_v19 = vsel %vm1228_vm1, %v3871_v5, %v3846_v21  ;;  %v5792_v21 = vld [vmem:[%s8500_s28 + $0x18] sm:$0xff]  ;;  %4068 = vmatpush.bf16.msra.mxu1 %v5793_v63 }
 0xfbd   : > { %v3878_v22 = vperm.slane %v3872_v19, %v7202_v33  ;;  %v3883_v50 = vrot.slane %v3866_v14, 4  ;;  %v3886_v23 = vsel %vm1228_vm1, 0.0, %v3885_v18  ;;  %v3889_v53 = vrot.slane %v3882_v16, 4  ;;  %3985 = vmatpush.bf16.msra.mxu0 %v5792_v21 }
 0xfbe   : > { %v3891_v25 = vsel %vm1228_vm1, %v3885_v18, %v3866_v14  ;;  %v3896_v26 = vrot.slane %v3886_v23, 4  ;;  %5655 = vmatmul.msk.bf16.vlgmr.msra.gmra.mxu2 %vm1200_vm0, %v7430_v0 }
 0xfbf   : > { %v3884_v58 = vsel %vm1228_vm1, 0.0, %v3883_v50  ;;  %v3887_v29 = vrot.slane %v3878_v22, 4  ;;  %v3890_v30 = vsel %vm1228_vm1, 0.0, %v3889_v53  ;;  %v3895_v43 = vperm.slane %v3891_v25, %v7193_v20  ;;  %5646 = vmatmul.msk.bf16.vlgmr.msra.gmra.mxu1 %vm1200_vm0, %v7443_v34  ;;  %v6014_v34 = vld [vmem:[#allocation11 + $0x1] ss:$0 sm:$0xff] }
 0xfc0   : > { %v3907_v35 = vrot.slane %v3890_v30, 4  ;;  %v3897_v36 = vsel %vm1228_vm1, %v3896_v26, %v3884_v58  ;;  %v3902_v37 = vsel %vm1228_vm1, %v3889_v53, %v3878_v22 }
 0xfc1   : > { %v3888_v38 = vsel %vm1228_vm1, 0.0, %v3887_v29  ;;  %v3901_v9 = vperm.slane %v3897_v36, %v7193_v20  ;;  %v3906_v39 = vperm.slane %v3902_v37, %v7193_v20  ;;  %v3915_v40 = vrot.slane %v3895_v43, 4  ;;  %3986 = vmatpush.bf16.msra.mxu0 %v5791_v60 }
 0xfc2   : > { %v3908_v41 = vsel %vm1228_vm1, %v3907_v35, %v3888_v38 }
 0xfc3   : > { %v3912_v42 = vperm.slane %v3908_v41, %v7193_v20  ;;  %v3916_v44 = vsel %vm1228_vm1, %v3901_v9, %v3915_v40  ;;  %v3927_v46 = vrot.slane %v3906_v39, 4  ;;  %v3913_v28 = vrot.slane %v3901_v9, 4 }
 0xfc4   : > { %v3924_v13 = vperm.slane %v3916_v44, %v7202_v33 }
 0xfc5   : > { %v3928_v2 = vsel %vm1228_vm1, %v3912_v42, %v3927_v46  ;;  %v3914_v47 = vsel %vm1228_vm1, %v3913_v28, %v3895_v43  ;;  %v3925_v48 = vrot.slane %v3912_v42, 4 }
 0xfc6   : > { %v3936_v51 = vperm.slane %v3928_v2, %v7202_v33  ;;  %v3943_v52 = vrot.slane %v3924_v13, 4  ;;  %v3920_v54 = vperm.slane %v3914_v47, %v7202_v33 }
 0xfc7   : > { %v3926_v17 = vsel %vm1228_vm1, %v3925_v48, %v3906_v39 }
 0xfc8   : > { %v3944_v55 = vsel %vm1228_vm1, %v3936_v51, %v3943_v52  ;;  %v3941_v15 = vrot.slane %v3936_v51, 4  ;;  %v3932_v49 = vperm.slane %v3926_v17, %v7202_v33  ;;  %v3939_v56 = vrot.slane %v3920_v54, 4 }
 0xfc9   : > { %3954 = vrot.lane.b32.xlu2 %v3944_v55, %s8504_s20 }
 0xfca   : > { %v3942_v57 = vsel %vm1228_vm1, %v3941_v15, %v3924_v13  ;;  %v3937_v32 = vrot.slane %v3932_v49, 4  ;;  %v3940_v59 = vsel %vm1228_vm1, %v3932_v49, %v3939_v56 }
 0xfcb   : > { %3950 = vrot.lane.b32.xlu0 %v3942_v57, %s8512_s22  ;;  %3946 = vrot.lane.b32.xlu1 %v3940_v59, %s8513_s8 }
 0xfcc   : > { %v3938_v4 = vsel %vm1228_vm1, %v3937_v32, %v3920_v54 }
0x1023   : > { %v3955_v7 = vpop.permute.xlu2 %3954 }
0x103c   : > { %v8012_v5 = vpop.f32.mrf.mxu1 }
0x103d   : > { %v3951_v1 = vpop.permute.xlu0 %3950  ;;  %v3947_v3 = vpop.permute.xlu1 %3946 }
0x103e   : > { %v3957_v6 = vsel %vm1628_vm2, %v3938_v4, %v3947_v3 }
0x103f   : > { %v3958_v8 = vsel %vm1999_vm4, %v3957_v6, %v3951_v1 }
0x1040   : > { %v3959_v11 = vsel %vm2001_vm5, %v3958_v8, %v3955_v7 }
0x1041   : > { %v3960_v12 = vpack.c.bf16 %v3959_v11, %v3959_v11  ;;  %v4215_v27 = vpop.f32.mrf.mxu2 }
0x1042   : > { %4220 = vrot.lane.b32.xlu2 %v4215_v27, %s8514_s1  ;;  %v4231_v53 = vrot.slane %v4215_v27, 4 }
0x1043   : > { %5633 = vmatmul.msk.bf16.vlgmr.msra.gmra.mxu0 %vm1200_vm0, %v3960_v12 }
0x1044   : > { %v4072_v0 = vpop.f32.mrf.mxu1 }
0x1049   : > { %v4217_v14 = vpop.f32.mrf.mxu2 }
0x104a   : > { %4223 = vrot.lane.b32.xlu2 %v4215_v27, %s8510_s9 }
0x1052   : > { %4226 = vrot.lane.b32.xlu2 %v4215_v27, %s8511_s0 }
0x105a   : > { %4075 = vrot.lane.b32.xlu2 %v8012_v5, %s8514_s1 }
0x1062   : > { %4078 = vrot.lane.b32.xlu2 %v8012_v5, %s8510_s9 }
0x109c   : > { %v4221_v23 = vpop.permute.xlu2 %4220 }
0x109d   : > { %v4243_v30 = vrot.slane %v4221_v23, 4 }
0x10a4   : > { %v4224_v25 = vpop.permute.xlu2 %4223 }
0x10a5   : > { %v4229_v26 = vrot.slane %v4224_v25, 4 }
0x10a7   : > { %v4230_v58 = vsel %vm1228_vm1, %v4229_v26, %v4215_v27 }
0x10a8   : > { %v4236_v43 = vperm.slane %v4230_v58, %v7193_v20 }
0x10aa   : > { %v4255_v39 = vrot.slane %v4236_v43, 4 }
0x10ac   : > { %v4227_v36 = vpop.permute.xlu2 %4226 }
0x10ad   : > { %v4241_v37 = vrot.slane %v4227_v36, 4  ;;  %v4244_v38 = vsel %vm1228_vm1, %v4227_v36, %v4243_v30 }
0x10ae   : > { %v4252_v9 = vperm.slane %v4244_v38, %v7193_v20 }
0x10af   : > { %v4242_v40 = vsel %vm1228_vm1, %v4241_v37, %v4221_v23 }
0x10b0   : > { %v4248_v41 = vperm.slane %v4242_v40, %v7193_v20  ;;  %v4265_v42 = vrot.slane %v4252_v9, 4 }
0x10b2   : > { %v4253_v13 = vrot.slane %v4248_v41, 4  ;;  %v4256_v2 = vsel %vm1228_vm1, %v4248_v41, %v4255_v39  ;;  %v4086_v39 = vrot.slane %v8012_v5, 4 }
0x10b3   : > { %v4264_v51 = vperm.slane %v4256_v2, %v7202_v33 }
0x10b4   : > { %v4254_v52 = vsel %vm1228_vm1, %v4253_v13, %v4236_v43  ;;  %v4076_v1 = vpop.permute.xlu2 %4075  ;;  %v5797_v43 = vld [vmem:[#allocation17 + $0x10] sm:$0xff] }
0x10b5   : > { %v4260_v55 = vperm.slane %v4254_v52, %v7202_v33  ;;  %v4279_v15 = vrot.slane %v4264_v51, 4 }
0x10b7   : > { %v4277_v57 = vrot.slane %v4260_v55, 4  ;;  %v4280_v32 = vsel %vm1228_vm1, 0.0, %v4279_v15  ;;  %v4285_v7 = vsel %vm1228_vm1, %v4279_v15, %v4260_v55 }
0x10b8   : > { %v4290_v21 = vrot.slane %v4280_v32, 4  ;;  %v4289_v8 = vperm.slane %v4285_v7, %v7193_v20 }
0x10b9   : > { %v4278_v60 = vsel %vm1228_vm1, 0.0, %v4277_v57 }
0x10ba   : > { %v4291_v62 = vsel %vm1228_vm1, %v4290_v21, %v4278_v60 }
0x10bb   : > { %v4295_v3 = vperm.slane %v4291_v62, %v7193_v20 }
0x10bd   : > { %v4307_v11 = vrot.slane %v4295_v3, 4 }
0x10c0   : > { %v3988_v16 = vpop.f32.mrf.mxu0 }
0x10c1   : > { %v3989_v18 = vadd.f32 %v6014_v34, %v3988_v16  ;;  %v5798_v34 = vld [vmem:[#allocation17 + $0x18] sm:$0xff]  ;;  %v4308_v16 = vsel %vm1228_vm1, %v4307_v11, %v4289_v8 }
0x10c2   : > { %4361 = vmatpush.bf16.msrb.mxu3 %v5798_v34 }
0x10c3   : > { %v8018_v19 = vadd.f32 %v3989_v18, %v7762_v24  ;;  %v4232_v24 = vsel %vm1228_vm1, %v4224_v25, %v4231_v53  ;;  %v4309_v18 = vrot.slane %v4289_v8, 4 }
0x10c4   : > { %v4240_v29 = vperm.slane %v4232_v24, %v7193_v20 }
0x10c5   : > { %v3997_v22 = vsel %vm1200_vm0, %v8018_v19, 0.0  ;;  %v4310_v26 = vsel %vm1228_vm1, %v4295_v3, %v4309_v18 }
0x10c6   : > { %3998 = vadd.xlane.f32.xlu0 %v3997_v22  ;;  %v4267_v35 = vrot.slane %v4240_v29, 4  ;;  %v4266_v28 = vsel %vm1228_vm1, %v4265_v42, %v4240_v29  ;;  %v4318_v29 = vperm.slane %v4310_v26, %v7202_v33  ;;  %4362 = vmatpush.bf16.msrb.mxu3 %v5797_v43 }
0x10c7   : > { %v4272_v47 = vperm.slane %v4266_v28, %v7202_v33  ;;  %v4098_v28 = vrot.slane %v4076_v1, 4 }
0x10c8   : > { %v3990_v50 = vpop.f32.mrf.mxu0  ;;  %v4268_v44 = vsel %vm1228_vm1, %v4252_v9, %v4267_v35  ;;  %v4337_v37 = vrot.slane %v4318_v29, 4  ;;  %v4079_v9 = vpop.permute.xlu2 %4078 }
0x10c9   : > { %v4276_v46 = vperm.slane %v4268_v44, %v7202_v33  ;;  %v4281_v54 = vrot.slane %v4272_v47, 4  ;;  %v4314_v50 = vperm.slane %v4308_v16, %v7202_v33  ;;  %v4084_v41 = vrot.slane %v4079_v9, 4 }
0x10ca   : > { %v4087_v42 = vsel %vm1228_vm1, %v4079_v9, %v4086_v39 }
0x10cb   : > { %v4283_v48 = vrot.slane %v4276_v46, 4  ;;  %v4282_v56 = vsel %vm1228_vm1, 0.0, %v4281_v54  ;;  %v4333_v58 = vrot.slane %v4314_v50, 4  ;;  %v4085_v44 = vsel %vm1228_vm1, %v4084_v41, %v8012_v5 }
0x10cc   : > { %v4095_v46 = vperm.slane %v4087_v42, %v7193_v20  ;;  %v4091_v13 = vperm.slane %v4085_v44, %v7193_v20 }
0x10cd   : > { %v4284_v17 = vsel %vm1228_vm1, 0.0, %v4283_v48  ;;  %v4296_v59 = vsel %vm1228_vm1, %v4283_v48, %v4272_v47 }
0x10ce   : > { %v4301_v49 = vrot.slane %v4284_v17, 4  ;;  %v4300_v61 = vperm.slane %v4296_v59, %v7193_v20  ;;  %v4122_v2 = vrot.slane %v4095_v46, 4  ;;  %v4110_v52 = vrot.slane %v4091_v13, 4 }
0x10d0   : > { %v4302_v4 = vsel %vm1228_vm1, %v4301_v49, %v4282_v56  ;;  %v4321_v63 = vrot.slane %v4300_v61, 4 }
0x10d1   : > { %v4306_v31 = vperm.slane %v4302_v4, %v7193_v20 }
0x10d3   : > { %v4319_v6 = vrot.slane %v4306_v31, 4  ;;  %v4322_v22 = vsel %vm1228_vm1, %v4306_v31, %v4321_v63 }
0x10d4   : > { %v4330_v53 = vperm.slane %v4322_v22, %v7202_v33 }
0x10d5   : > { %v4320_v12 = vsel %vm1228_vm1, %v4319_v6, %v4300_v61 }
0x10d6   : > { %v4326_v0 = vperm.slane %v4320_v12, %v7202_v33  ;;  %v4335_v30 = vrot.slane %v4330_v53, 4  ;;  %v4338_v40 = vsel %vm1228_vm1, %v4330_v53, %v4337_v37 }
0x10d7   : > { %5671 = vmatpush.xpose.msk.msra.mxu3 %vm1628_vm2, %v4338_v40 }
0x10d8   : > { %v4331_v23 = vrot.slane %v4326_v0, 4  ;;  %v4334_v36 = vsel %vm1228_vm1, %v4326_v0, %v4333_v58 }
0x10d9   : > { %5667 = vmatpush.xpose.msk.msrb.mxu1 %vm1628_vm2, %v4334_v36 }
0x10da   : > { %4081 = vrot.lane.b32.xlu0 %v8012_v5, %s8511_s0  ;;  %v4332_v24 = vsel %vm1228_vm1, %v4331_v23, %v4314_v50 }
0x10db   : > { %5665 = vmatpush.xpose.msk.msrb.mxu0 %vm1628_vm2, %v4332_v24 }
0x1139   : > { %v3999_v27 = vpop.xlane.xlu0 %3998 }
0x113a   : > { %v4000_v14 = vmul.f32 %v3999_v27, %v7511_v10 }
0x113c   : > { %v8064_v25 = vsub.f32 %v8018_v19, %v4000_v14  ;;  %v4336_v19 = vsel %vm1228_vm1, %v4335_v30, %v4318_v29 }
0x113d   : > { %5669 = vmatpush.xpose.msk.msrb.mxu2 %vm1628_vm2, %v4336_v19 }
0x113e   : > { %v4002_v35 = vmul.f32 %v8064_v25, %v8064_v25 }
0x1140   : > { %v4003_v38 = vsel %vm1200_vm0, %v4002_v35, 0.0 }
0x1141   : > { %4004 = vadd.xlane.f32.xlu1 %v4003_v38 }
0x114c   : > { %v4082_v47 = vpop.permute.xlu0 %4081 }
0x114d   : > { %v4096_v48 = vrot.slane %v4082_v47, 4  ;;  %v4099_v51 = vsel %vm1228_vm1, %v4082_v47, %v4098_v28 }
0x114e   : > { %v4107_v54 = vperm.slane %v4099_v51, %v7193_v20 }
0x114f   : > { %v4097_v17 = vsel %vm1228_vm1, %v4096_v48, %v4076_v1 }
0x1150   : > { %v4103_v55 = vperm.slane %v4097_v17, %v7193_v20  ;;  %v4120_v15 = vrot.slane %v4107_v54, 4  ;;  %v4123_v5 = vsel %vm1228_vm1, %v4107_v54, %v4122_v2  ;;  %v6015_v17 = vld [vmem:[#allocation13 + $0x1] ss:$0 sm:$0xff] }
0x1151   : > { %v4131_v49 = vperm.slane %v4123_v5, %v7202_v33  ;;  %v6016_v5 = vld [vmem:[#allocation14 + $0x1] ss:$0 sm:$0xff] }
0x1152   : > { %v4108_v56 = vrot.slane %v4103_v55, 4  ;;  %v4111_v57 = vsel %vm1228_vm1, %v4103_v55, %v4110_v52  ;;  %v4121_v32 = vsel %vm1228_vm1, %v4120_v15, %v4095_v46 }
0x1153   : > { %v4119_v59 = vperm.slane %v4111_v57, %v7202_v33  ;;  %v4127_v4 = vperm.slane %v4121_v32, %v7202_v33  ;;  %v4138_v21 = vrot.slane %v4131_v49, 4 }
0x1154   : > { %v4109_v60 = vsel %vm1228_vm1, %v4108_v56, %v4091_v13 }
0x1155   : > { %v4115_v61 = vperm.slane %v4109_v60, %v7202_v33  ;;  %v4134_v31 = vrot.slane %v4119_v59, 4  ;;  %v4136_v62 = vrot.slane %v4127_v4, 4  ;;  %v4139_v63 = vsel %vm1228_vm1, 0.0, %v4138_v21 }
0x1156   : > { %v4151_v1 = vsel %vm1228_vm1, %v4138_v21, %v4127_v4  ;;  %v4156_v3 = vrot.slane %v4139_v63, 4 }
0x1157   : > { %v4132_v6 = vrot.slane %v4115_v61, 4  ;;  %v4135_v7 = vsel %vm1228_vm1, 0.0, %v4134_v31  ;;  %v4137_v8 = vsel %vm1228_vm1, 0.0, %v4136_v62  ;;  %v4140_v11 = vsel %vm1228_vm1, %v4134_v31, %v4115_v61 }
0x1158   : > { %v4145_v12 = vrot.slane %v4135_v7, 4  ;;  %v4155_v27 = vperm.slane %v4151_v1, %v7193_v20  ;;  %v4157_v0 = vsel %vm1228_vm1, %v4156_v3, %v4137_v8  ;;  %v4144_v14 = vperm.slane %v4140_v11, %v7193_v20 }
0x1159   : > { %v4133_v34 = vsel %vm1228_vm1, 0.0, %v4132_v6  ;;  %v4161_v16 = vperm.slane %v4157_v0, %v7193_v20 }
0x115a   : > { %v4176_v18 = vrot.slane %v4155_v27, 4  ;;  %v4146_v22 = vsel %vm1228_vm1, %v4145_v12, %v4133_v34  ;;  %v4164_v50 = vrot.slane %v4144_v14, 4 }
0x115b   : > { %v4150_v23 = vperm.slane %v4146_v22, %v7193_v20  ;;  %v4174_v53 = vrot.slane %v4161_v16, 4 }
0x115c   : > { %v4177_v26 = vsel %vm1228_vm1, %v4161_v16, %v4176_v18 }
0x115d   : > { %v4165_v24 = vsel %vm1228_vm1, %v4150_v23, %v4164_v50  ;;  %v4185_v58 = vperm.slane %v4177_v26, %v7202_v33  ;;  %v4162_v29 = vrot.slane %v4150_v23, 4  ;;  %v4175_v30 = vsel %vm1228_vm1, %v4174_v53, %v4155_v27 }
0x115e   : > { %v4173_v43 = vperm.slane %v4165_v24, %v7202_v33  ;;  %v4181_v35 = vperm.slane %v4175_v30, %v7202_v33 }
0x115f   : > { %v4190_v36 = vrot.slane %v4185_v58, 4  ;;  %v4163_v19 = vsel %vm1228_vm1, %v4162_v29, %v4144_v14 }
0x1160   : > { %v4169_v37 = vperm.slane %v4163_v19, %v7202_v33  ;;  %v4186_v38 = vrot.slane %v4181_v35, 4  ;;  %v4192_v9 = vrot.slane %v4173_v43, 4 }
0x1161   : > { %v4191_v39 = vsel %vm1228_vm1, %v4190_v36, %v4173_v43 }
0x1162   : > { %5670 = vmatmul.msk.f32.vlgmr.msrb.gmra.mxu2 %vm1628_vm2, %v4191_v39  ;;  %v4187_v40 = vsel %vm1228_vm1, %v4186_v38, %v4169_v37  ;;  %v4188_v41 = vrot.slane %v4169_v37, 4  ;;  %v4193_v42 = vsel %vm1228_vm1, %v4185_v58, %v4192_v9 }
0x1163   : > { %5666 = vmatmul.msk.f32.vlgmr.msrb.gmra.mxu0 %vm1628_vm2, %v4187_v40 }
0x1164   : > { %v4189_v44 = vsel %vm1228_vm1, %v4181_v35, %v4188_v41 }
0x1165   : > { %5668 = vmatmul.msk.f32.vlgmr.msrb.gmra.mxu1 %vm1628_vm2, %v4189_v44 }
0x11b4   : > { %v4005_v46 = vpop.xlane.xlu1 %4004 }
0x11b5   : > { %v4006_v28 = vmul.f32 %v4005_v46, %v7511_v10 }
0x11b7   : > { %v4007_v13 = vadd.f32 1e-05, %v4006_v28 }
0x11b9   : > { %6081 = vrsqrt.f32 %v4007_v13  ;;  %vm4014_vm8 = vweird.f32 %v4007_v13 }
0x11bf   : > { %v6082_v2 = vpop.eup %6081 }
0x11c0   : > { %v4009_v47 = vmul.f32 %v6082_v2, %v4007_v13  ;;  %vm4015_vm3 = vweird.f32 %v6082_v2 }
0x11c1   : > { %vm4016_vm9 = vmor %vm4014_vm8, %vm4015_vm3 }
0x11c2   : > { %v4010_v48 = vmul.f32 %v6082_v2, %v4009_v47 }
0x11c4   : > { %v4011_v51 = vmul.f32 0.5, %v4010_v48 }
0x11c6   : > { %v4012_v52 = vsub.f32 1.5, %v4011_v51 }
0x11c8   : > { %v4013_v54 = vmul.f32 %v6082_v2, %v4012_v52 }
0x11ca   : > { %v4017_v55 = vsel %vm4016_vm9, %v6082_v2, %v4013_v54 }
0x11cb   : > { %v4018_v15 = vmul.f32 %v4017_v55, %v8064_v25 }
0x11cd   : > { %v4022_v49 = vmul.f32 %v6015_v17, %v4018_v15 }
0x11cf   : > { %v4026_v56 = vadd.f32 %v6016_v5, %v4022_v49 }
0x11d1   : > { %v4339_v57 = vpack.c.bf16 %v4026_v56, %v4026_v56 }
0x11d3   : > { %5664 = vmatmul.msk.bf16.vlgmr.msrb.gmra.mxu3 %vm1200_vm0, %v4339_v57 }
0x11e0   : > { %v4511_v21 = vpop.f32.mrf.mxu0 }
0x11e1   : > { %v4592_v60 = vsel %vm7571_vm11, -1e+20, %v4511_v21 }
0x11e2   : > { %v4596_v25 = vsel %vm1628_vm2, %v4592_v60, -inf  ;;  %v4537_v61 = vpop.f32.mrf.mxu1 }
0x11e3   : > { %5672 = vmatmul.msk.f32.vlgmr.msra.gmra.mxu3 %vm1628_vm2, %v4193_v42  ;;  %v8136_v31 = vsel %vm7571_vm11, -1e+20, %v4537_v61 }
0x11e4   : > { %v4599_v62 = vsel %vm1628_vm2, %v8136_v31, -inf }
0x11e5   : > { %v4563_v32 = vpop.f32.mrf.mxu2 }
0x11e6   : > { %v4594_v59 = vsel %vm7571_vm11, -1e+20, %v4563_v32 }
0x11e7   : > { %v4602_v4 = vsel %vm1628_vm2, %v4594_v59, -inf }
0x11e8   : > { %4603 = vmax.xlane.f32.xlu1 %v4602_v4 }
0x11f0   : > { %4597 = vmax.xlane.f32.xlu1 %v4596_v25 }
0x11f8   : > { %4600 = vmax.xlane.f32.xlu1 %v4599_v62 }
0x1256   : > { %v4364_v63 = vpop.f32.mrf.mxu3 }
0x1257   : > { %4369 = vrot.lane.b32.xlu0 %v4364_v63, %s8514_s1  ;;  %4372 = vrot.lane.b32.xlu1 %v4364_v63, %s8510_s9  ;;  %v4380_v53 = vrot.slane %v4364_v63, 4  ;;  %s1163_s1 = scalar_lea.vmem [#allocation28], %s7117_s5 }
0x125b   : > { %v4604_v3 = vpop.xlane.xlu1 %4603 }
0x125c   : > { %v4610_v0 = vsub.f32 %v4594_v59, %v4604_v3 }
0x125e   : > { %v4366_v1 = vpop.f32.mrf.mxu3  ;;  %v4616_v14 = vmul.f32 1.442695, %v4610_v0 }
0x125f   : > { %4375 = vrot.lane.b32.xlu0 %v4364_v63, %s8511_s0 }
0x1263   : > { %v4598_v11 = vpop.xlane.xlu1 %4597 }
0x1264   : > { %v4608_v12 = vsub.f32 %v4592_v60, %v4598_v11 }
0x1266   : > { %v4589_v6 = vpop.f32.mrf.mxu3  ;;  %v4612_v27 = vmul.f32 1.442695, %v4608_v12 }
0x1267   : > { %v8145_v7 = vsel %vm7571_vm11, -1e+20, %v4589_v6 }
0x1268   : > { %v4605_v8 = vsel %vm1628_vm2, %v8145_v7, -inf  ;;  %6083 = vpow2.f32 %v4612_v27 }
0x1269   : > { %4606 = vmax.xlane.f32.xlu2 %v4605_v8  ;;  %6085 = vpow2.f32 %v4616_v14 }
0x126b   : > { %v4601_v22 = vpop.xlane.xlu1 %4600 }
0x126c   : > { %v4609_v3 = vsub.f32 %v8136_v31, %v4601_v22 }
0x126e   : > { %v8149_v34 = vpop.eup %6083 }
0x126f   : > { %v4620_v16 = vsel %vm1628_vm2, %v8149_v34, 0.0  ;;  %v8153_v45 = vpop.eup %6085 }
0x1270   : > { %v4626_v18 = vsel %vm1628_vm2, %v8153_v45, 0.0 }
0x1281   : > { %4621 = vadd.xlane.f32.xlu1 %v4620_v16 }
0x1289   : > { %4627 = vadd.xlane.f32.xlu0 %v4626_v18 }
0x12c9   : > { %v4373_v50 = vpop.permute.xlu1 %4372  ;;  %v4370_v23 = vpop.permute.xlu0 %4369 }
0x12ca   : > { %v4378_v26 = vrot.slane %v4373_v50, 4  ;;  %v4381_v24 = vsel %vm1228_vm1, %v4373_v50, %v4380_v53  ;;  %v4392_v30 = vrot.slane %v4370_v23, 4  ;;  %v4614_v50 = vmul.f32 1.442695, %v4609_v3 }
0x12cb   : > { %v4389_v29 = vperm.slane %v4381_v24, %v7193_v20 }
0x12cc   : > { %v4379_v58 = vsel %vm1228_vm1, %v4378_v26, %v4364_v63 }
0x12cd   : > { %v4385_v43 = vperm.slane %v4379_v58, %v7193_v20  ;;  %v4416_v37 = vrot.slane %v4389_v29, 4 }
0x12cf   : > { %v4404_v39 = vrot.slane %v4385_v43, 4 }
0x12d1   : > { %v4376_v35 = vpop.permute.xlu0 %4375 }
0x12d2   : > { %v4390_v36 = vrot.slane %v4376_v35, 4  ;;  %v4393_v19 = vsel %vm1228_vm1, %v4376_v35, %v4392_v30 }
0x12d3   : > { %v4401_v38 = vperm.slane %v4393_v19, %v7193_v20 }
0x12d4   : > { %v4391_v9 = vsel %vm1228_vm1, %v4390_v36, %v4370_v23 }
0x12d5   : > { %v4397_v40 = vperm.slane %v4391_v9, %v7193_v20  ;;  %v4414_v41 = vrot.slane %v4401_v38, 4  ;;  %v4417_v42 = vsel %vm1228_vm1, %v4401_v38, %v4416_v37 }
0x12d6   : > { %v4425_v44 = vperm.slane %v4417_v42, %v7202_v33 }
0x12d7   : > { %v4402_v46 = vrot.slane %v4397_v40, 4  ;;  %v4405_v28 = vsel %vm1228_vm1, %v4397_v40, %v4404_v39  ;;  %v4415_v13 = vsel %vm1228_vm1, %v4414_v41, %v4389_v29 }
0x12d8   : > { %v4413_v2 = vperm.slane %v4405_v28, %v7202_v33  ;;  %v4421_v47 = vperm.slane %v4415_v13, %v7202_v33  ;;  %v4432_v48 = vrot.slane %v4425_v44, 4 }
0x12d9   : > { %v4403_v51 = vsel %vm1228_vm1, %v4402_v46, %v4385_v43 }
0x12da   : > { %v4409_v52 = vperm.slane %v4403_v51, %v7202_v33  ;;  %v4428_v54 = vrot.slane %v4413_v2, 4  ;;  %v4430_v17 = vrot.slane %v4421_v47, 4  ;;  %v4433_v55 = vsel %vm1228_vm1, 0.0, %v4432_v48 }
0x12db   : > { %v4445_v15 = vsel %vm1228_vm1, %v4432_v48, %v4421_v47  ;;  %v4450_v5 = vrot.slane %v4433_v55, 4 }
0x12dc   : > { %v4426_v49 = vrot.slane %v4409_v52, 4  ;;  %v4429_v56 = vsel %vm1228_vm1, 0.0, %v4428_v54  ;;  %v4431_v57 = vsel %vm1228_vm1, 0.0, %v4430_v17  ;;  %v4449_v32 = vperm.slane %v4445_v15, %v7193_v20  ;;  %v4607_v59 = vpop.xlane.xlu2 %4606 }
0x12dd   : > { %v4439_v4 = vrot.slane %v4429_v56, 4  ;;  %v4451_v21 = vsel %vm1228_vm1, %v4450_v5, %v4431_v57  ;;  %v4611_v60 = vsub.f32 %v8145_v7, %v4607_v59  ;;  %v4434_v25 = vsel %vm1228_vm1, %v4428_v54, %v4409_v52 }
0x12de   : > { %v4427_v61 = vsel %vm1228_vm1, 0.0, %v4426_v49  ;;  %v4438_v62 = vperm.slane %v4434_v25, %v7193_v20  ;;  %v4455_v63 = vperm.slane %v4451_v21, %v7193_v20  ;;  %v4470_v1 = vrot.slane %v4449_v32, 4 }
0x12df   : > { %v4618_v6 = vmul.f32 1.442695, %v4611_v60  ;;  %v4440_v8 = vsel %vm1228_vm1, %v4439_v4, %v4427_v61 }
0x12e0   : > { %v4444_v11 = vperm.slane %v4440_v8, %v7193_v20  ;;  %v4458_v12 = vrot.slane %v4438_v62, 4  ;;  %v4471_v27 = vsel %vm1228_vm1, %v4455_v63, %v4470_v1  ;;  %v4468_v7 = vrot.slane %v4455_v63, 4 }
0x12e1   : > { %6087 = vpow2.f32 %v4618_v6  ;;  %v4479_v0 = vperm.slane %v4471_v27, %v7202_v33 }
0x12e2   : > { %v4459_v14 = vsel %vm1228_vm1, %v4444_v11, %v4458_v12  ;;  %v4456_v16 = vrot.slane %v4444_v11, 4  ;;  %v4469_v18 = vsel %vm1228_vm1, %v4468_v7, %v4449_v32  ;;  %6089 = vpow2.f32 %v4614_v50 }
0x12e3   : > { %v4467_v31 = vperm.slane %v4459_v14, %v7202_v33  ;;  %v4484_v22 = vrot.slane %v4479_v0, 4  ;;  %v4475_v23 = vperm.slane %v4469_v18, %v7202_v33 }
0x12e4   : > { %v4457_v53 = vsel %vm1228_vm1, %v4456_v16, %v4438_v62 }
0x12e5   : > { %v4485_v26 = vsel %vm1228_vm1, %v4484_v22, %v4467_v31  ;;  %v4463_v24 = vperm.slane %v4457_v53, %v7202_v33  ;;  %v4480_v58 = vrot.slane %v4475_v23, 4  ;;  %v4486_v29 = vrot.slane %v4467_v31, 4 }
0x12e6   : > { %4704 = vmatpush.msra.mxu2 %v4485_v26 }
0x12e7   : > { %v6088_v30 = vpop.eup %6087  ;;  %v4481_v43 = vsel %vm1228_vm1, %v4480_v58, %v4463_v24  ;;  %v4487_v35 = vsel %vm1228_vm1, %v4479_v0, %v4486_v29  ;;  %v4482_v36 = vrot.slane %v4463_v24, 4 }
0x12e8   : > { %4658 = vmatpush.msra.mxu0 %v4481_v43  ;;  %4727 = vmatpush.msrb.mxu3 %v4487_v35  ;;  %v4629_v19 = vsel %vm1628_vm2, %v6088_v30, 0.0  ;;  %v6090_v38 = vpop.eup %6089 }
0x12e9   : > { %4630 = vadd.xlane.f32.xlu2 %v4629_v19  ;;  %v4483_v37 = vsel %vm1228_vm1, %v4475_v23, %v4482_v36  ;;  %v4623_v9 = vsel %vm1628_vm2, %v6090_v38, 0.0 }
0x12ea   : > { %4681 = vmatpush.msra.mxu1 %v4483_v37 }
0x12f1   : > { %4624 = vadd.xlane.f32.xlu2 %v4623_v9 }
0x12f4   : > { %v4622_v39 = vpop.xlane.xlu1 %4621 }
0x12f5   : > { %6091 = vrcp.f32 %v4622_v39 }
0x12fb   : > { %v6092_v40 = vpop.eup %6091 }
0x12fc   : > { %v4636_v41 = vmul.f32 %v6092_v40, %v8149_v34  ;;  %v4628_v42 = vpop.xlane.xlu0 %4627 }
0x12fd   : > { %6093 = vrcp.f32 %v4628_v42 }
0x12fe   : > { %5673 = vmatmul.msk.f32.vlgmr.msra.gmra.mxu0 %vm1628_vm2, %v4636_v41 }
0x1303   : > { %v6094_v44 = vpop.eup %6093 }
0x1304   : > { %v4638_v46 = vmul.f32 %v6094_v44, %v8153_v45 }
0x1306   : > { %5675 = vmatmul.msk.f32.vlgmr.msra.gmra.mxu2 %vm1628_vm2, %v4638_v46 }
0x135c   : > { %v4631_v28 = vpop.xlane.xlu2 %4630 }
0x135d   : > { %6095 = vrcp.f32 %v4631_v28 }
0x1363   : > { %v6096_v13 = vpop.eup %6095 }
0x1364   : > { %v4639_v2 = vmul.f32 %v6096_v13, %v6088_v30  ;;  %v4625_v47 = vpop.xlane.xlu2 %4624 }
0x1365   : > { %6097 = vrcp.f32 %v4625_v47 }
0x1366   : > { %5676 = vmatmul.msk.f32.vlgmr.msrb.gmra.mxu3 %vm1628_vm2, %v4639_v2 }
0x136b   : > { %v6098_v48 = vpop.eup %6097 }
0x136c   : > { %v4637_v51 = vmul.f32 %v6098_v48, %v6090_v38 }
0x136e   : > { %5674 = vmatmul.msk.f32.vlgmr.msra.gmra.mxu1 %vm1628_vm2, %v4637_v51 }
0x137b   : > { %v4660_v54 = vpop.f32.mrf.mxu0 }
0x137c   : > { %v4734_v17 = vrot.slane %v4660_v54, 4 }
0x1389   : > { %v4706_v34 = vpop.f32.mrf.mxu2 }
0x138a   : > { %v4732_v52 = vrot.slane %v4706_v34, 4  ;;  %v4735_v55 = vsel %vm1228_vm1, %v4706_v34, %v4734_v17 }
0x138b   : > { %v4743_v56 = vperm.slane %v4735_v55, %v7193_v20 }
0x138c   : > { %v4733_v45 = vsel %vm1228_vm1, %v4732_v52, %v4660_v54 }
0x138d   : > { %v4739_v15 = vperm.slane %v4733_v45, %v7193_v20  ;;  %v4770_v25 = vrot.slane %v4743_v56, 4  ;;  %v5800_v45 = vld [vmem:[#allocation19 + $0x18] sm:$0xff] }
0x138e   : > { %4882 = vmatpush.bf16.msrb.mxu0 %v5800_v45 }
0x138f   : > { %v4758_v4 = vrot.slane %v4739_v15, 4 }
0x13e9   : > { %v4729_v5 = vpop.f32.mrf.mxu3 }
0x13ea   : > { %v4744_v49 = vrot.slane %v4729_v5, 4 }
0x13eb   : > { %v4683_v57 = vpop.f32.mrf.mxu1 }
0x13ec   : > { %v4745_v32 = vsel %vm1228_vm1, %v4744_v49, %v4683_v57  ;;  %v4746_v59 = vrot.slane %v4683_v57, 4 }
0x13ed   : > { %v4751_v21 = vperm.slane %v4745_v32, %v7193_v20 }
0x13ee   : > { %v4747_v60 = vsel %vm1228_vm1, %v4729_v5, %v4746_v59  ;;  %v6017_v59 = vld [vmem:[#allocation20 + $0x1] ss:$0 sm:$0xff] }
0x13ef   : > { %v4755_v61 = vperm.slane %v4747_v60, %v7193_v20  ;;  %v4756_v62 = vrot.slane %v4751_v21, 4  ;;  %v4759_v63 = vsel %vm1228_vm1, %v4751_v21, %v4758_v4  ;;  %v6103_v60 = vld [vmem:[%s8515_s14] sm:$0xff] }
0x13f0   : > { %v4767_v1 = vperm.slane %v4759_v63, %v7202_v33 }
0x13f1   : > { %v4757_v3 = vsel %vm1228_vm1, %v4756_v62, %v4739_v15  ;;  %v4768_v6 = vrot.slane %v4755_v61, 4  ;;  %v4771_v8 = vsel %vm1228_vm1, %v4755_v61, %v4770_v25 }
0x13f2   : > { %v4763_v11 = vperm.slane %v4757_v3, %v7202_v33  ;;  %v4779_v12 = vperm.slane %v4771_v8, %v7202_v33  ;;  %v4782_v27 = vrot.slane %v4767_v1, 4 }
0x13f3   : > { %v4769_v7 = vsel %vm1228_vm1, %v4768_v6, %v4743_v56 }
0x13f4   : > { %v4775_v0 = vperm.slane %v4769_v7, %v7202_v33  ;;  %v4780_v14 = vrot.slane %v4763_v11, 4  ;;  %v4783_v16 = vsel %vm1228_vm1, 0.0, %v4782_v27  ;;  %v4786_v18 = vrot.slane %v4779_v12, 4  ;;  %v5801_v12 = vld [vmem:[#allocation25 + $0x10] sm:$0xff] }
0x13f5   : > { %v4788_v50 = vsel %vm1228_vm1, %v4782_v27, %v4763_v11  ;;  %v4793_v31 = vrot.slane %v4783_v16, 4  ;;  %v5802_v11 = vld [vmem:[#allocation25 + $0x18] sm:$0xff]  ;;  %v5810_v27 = vld [vmem:[%s8505_s29 + $0x78] sm:$0xff] }
0x13f6   : > { %v4781_v22 = vsel %vm1228_vm1, 0.0, %v4780_v14  ;;  %v4784_v23 = vrot.slane %v4775_v0, 4  ;;  %v4787_v53 = vsel %vm1228_vm1, 0.0, %v4786_v18  ;;  %v4792_v26 = vperm.slane %v4788_v50, %v7193_v20  ;;  %4956 = vmatpush.bf16.msrb.mxu1 %v5802_v11  ;;  %5035 = vmatpush.bf16.msrb.mxu2 %v5810_v27  ;;  %v5809_v14 = vld [vmem:[%s8505_s29 + $0x70] sm:$0xff]  ;;  %v5807_v50 = vld [vmem:[%s8505_s29 + $0x60] sm:$0xff] }
0x13f7   : > { %v4804_v24 = vrot.slane %v4787_v53, 4  ;;  %v4794_v58 = vsel %vm1228_vm1, %v4793_v31, %v4781_v22  ;;  %v4799_v29 = vsel %vm1228_vm1, %v4786_v18, %v4775_v0  ;;  %v5808_v18 = vld [vmem:[%s8505_s29 + $0x68] sm:$0xff] }
0x13f8   : > { %v4785_v30 = vsel %vm1228_vm1, 0.0, %v4784_v23  ;;  %v4798_v43 = vperm.slane %v4794_v58, %v7193_v20  ;;  %v4803_v35 = vperm.slane %v4799_v29, %v7193_v20  ;;  %v4812_v36 = vrot.slane %v4792_v26, 4  ;;  %v5806_v23 = vld [vmem:[%s8505_s29 + $0x58] sm:$0xff] }
0x13f9   : > { %v4805_v19 = vsel %vm1228_vm1, %v4804_v24, %v4785_v30  ;;  %v5805_v24 = vld [vmem:[%s8505_s29 + $0x50] sm:$0xff]  ;;  %v6018_v30 = vld [vmem:[#allocation22 + $0x1] ss:$0 sm:$0xff] }
0x13fa   : > { %v4809_v37 = vperm.slane %v4805_v19, %v7193_v20  ;;  %v4824_v38 = vrot.slane %v4803_v35, 4  ;;  %v4810_v9 = vrot.slane %v4798_v43, 4  ;;  %v4813_v39 = vsel %vm1228_vm1, %v4798_v43, %v4812_v36  ;;  %4957 = vmatpush.bf16.msrb.mxu1 %v5801_v12  ;;  %5036 = vmatpush.bf16.msrb.mxu2 %v5809_v14 }
0x13fb   : > { %v4821_v13 = vperm.slane %v4813_v39, %v7202_v33  ;;  %v5803_v39 = vld [vmem:[%s8505_s29 + $0x40] sm:$0xff] }
0x13fc   : > { %v4825_v40 = vsel %vm1228_vm1, %v4809_v37, %v4824_v38  ;;  %v4811_v41 = vsel %vm1228_vm1, %v4810_v9, %v4792_v26  ;;  %v4822_v42 = vrot.slane %v4809_v37, 4  ;;  %v5804_v9 = vld [vmem:[%s8505_s29 + $0x48] sm:$0xff] }
0x13fd   : > { %v4833_v44 = vperm.slane %v4825_v40, %v7202_v33  ;;  %v4817_v46 = vperm.slane %v4811_v41, %v7202_v33  ;;  %v4840_v54 = vrot.slane %v4821_v13, 4  ;;  %v6020_v40 = vld [vmem:[%s8507_s3 + $0x1] ss:$0 sm:$0xff]  ;;  %s5134_s3 = sshll.u32 %s1163_s1, 4  ;;  %s5135_s3 = int_to_ptr.vmem [resolvable:$true] %s5134_s3 }
0x13fe   : > { %v4823_v28 = vsel %vm1228_vm1, %v4822_v42, %v4803_v35  ;;  %5037 = vmatpush.bf16.msrb.mxu2 %v5808_v18  ;;  %v6019_v35 = vld [vmem:[#allocation23 + $0x1] ss:$0 sm:$0xff] }
0x13ff   : > { %v4838_v2 = vrot.slane %v4833_v44, 4  ;;  %v4829_v20 = vperm.slane %v4823_v28, %v7202_v33  ;;  %v4836_v47 = vrot.slane %v4817_v46, 4  ;;  %v4841_v17 = vsel %vm1228_vm1, %v4833_v44, %v4840_v54  ;;  %v5799_v33 = vld [vmem:[#allocation19 + $0x10] sm:$0xff] }
0x1400   : > { %4883 = vmatpush.bf16.msrb.mxu0 %v5799_v33  ;;  %v5812_v33 = vld [vmem:[%s8516_s24 + $0x8] sm:$0xff] }
0x1401   : > { %v4839_v48 = vsel %vm1228_vm1, %v4838_v2, %v4821_v13  ;;  %v4834_v51 = vrot.slane %v4829_v20, 4  ;;  %v4837_v34 = vsel %vm1228_vm1, %v4829_v20, %v4836_v47  ;;  %v6021_v13 = vld [vmem:[%s8508_s15 + $0x1] ss:$0 sm:$0xff]  ;;  %5113 = vmatpush.bf16.msra.mxu3 %v5812_v33 }
0x1402   : > { %4847 = vrot.lane.b32.xlu0 %v4839_v48, %s8512_s22  ;;  %4843 = vrot.lane.b32.xlu2 %v4837_v34, %s8513_s8  ;;  %s8517_s22 = sld [smem:[#allocation71_spill]] }
0x1403   : > { %v4835_v52 = vsel %vm1228_vm1, %v4834_v51, %v4817_v46  ;;  %5038 = vmatpush.bf16.msrb.mxu2 %v5807_v50 }
0x1407   : > { %5039 = vmatpush.bf16.msrb.mxu2 %v5806_v23 }
0x1408   : > { %s6604_s0 = scalar_lea.hbm %s8517_s22, 16 }
0x140a   : > { %4851 = vrot.lane.b32.xlu2 %v4841_v17, %s8504_s20  ;;  %s5756_s20 = sshll.u32 %s8483_s11, 3 }
0x140b   : > { %5040 = vmatpush.bf16.msrb.mxu2 %v5805_v24  ;;  %s5132_s7 = scalar_lea.hbm %s8517_s22, %s5756_s20 }
0x140c   : > { %s5136_s14 = sshll.u32 %s5132_s7, 4  ;;  %s5137_s14 = int_to_ptr.hbm [resolvable:$true] %s5136_s14 }
0x140d   : > { %s6598_s6 = sshra.s32 %s5137_s14, 4  ;;  %s6599_s6 = int_to_ptr.hbm [resolvable:$true] %s6598_s6 }
0x140e   : > { %s6600_s11 = scalar_lea.hbm %s6599_s6, 8  ;;  %p6605_p12 = scmp.lt.s32.totalorder %s6599_s6, %s8517_s22 }
0x140f   : > { %5041 = vmatpush.bf16.msrb.mxu2 %v5804_v9  ;;  %p6601_p3 = scmp.ne.s32.totalorder %s6599_s6, %s6600_s11  ;;  %p6606_p2 = scmp.lt.s32.totalorder %s6604_s0, %s6600_s11 }
0x1411   : > { %p6602_p8 = pnand %p6601_p3, %p6950_p0  ;;  %p6607_p4 = por %p6606_p2, %p6605_p12 }
0x1413   : > { %5042 = vmatpush.bf16.msrb.mxu2 %v5803_v39  ;;  %p6603_p9 = pneg %p6602_p8 }
0x1415   : > { %p6608_p13 = pnand %p6607_p4, %p6603_p9 }
0x145c   : > { %v4844_v55 = vpop.permute.xlu2 %4843 }
0x145d   : > { %v4854_v15 = vsel %vm1628_vm2, %v4835_v52, %v4844_v55  ;;  %v5811_v55 = vld [vmem:[%s8516_s24] sm:$0xff] }
0x145e   : > { %5114 = vmatpush.bf16.msra.mxu3 %v5811_v55 }
0x1464   : > { %v4852_v49 = vpop.permute.xlu2 %4851 }
0x1474   : > { %v4848_v5 = vpop.permute.xlu0 %4847 }
0x1475   : > { %v4855_v56 = vsel %vm1999_vm4, %v4854_v15, %v4848_v5 }
0x1476   : > { %v4856_v57 = vsel %vm2001_vm5, %v4855_v56, %v4852_v49 }
0x1477   : > { %v4857_v32 = vpack.c.bf16 %v4856_v57, %v4856_v57 }
0x1479   : > { %5685 = vmatmul.msk.bf16.vlgmr.msrb.gmra.mxu0 %vm1200_vm0, %v4857_v32 }
0x14f6   : > { %v4885_v4 = vpop.f32.mrf.mxu0 }
0x14f7   : > { %v4886_v21 = vadd.f32 %v6017_v59, %v4885_v4 }
0x14f9   : > { %v4889_v25 = vadd.f32 %v6103_v60, %v4886_v21  ;;  %v6022_v60 = vld [vmem:[#allocation26 + $0x1] ss:$0 sm:$0xff] }
0x14fb   : > { %v4894_v61 = vsel %vm1200_vm0, %v4889_v25, 0.0 }
0x14fc   : > { %4895 = vadd.xlane.f32.xlu1 %v4894_v61 }
0x14fe   : > { %v4887_v62 = vpop.f32.mrf.mxu0 }
0x156f   : > { %v4896_v63 = vpop.xlane.xlu1 %4895 }
0x1570   : > { %v4897_v1 = vmul.f32 %v4896_v63, %v7511_v10 }
0x1572   : > { %v4898_v3 = vsub.f32 %v4889_v25, %v4897_v1 }
0x1574   : > { %v4899_v6 = vmul.f32 %v4898_v3, %v4898_v3 }
0x1576   : > { %v4900_v8 = vsel %vm1200_vm0, %v4899_v6, 0.0 }
0x1577   : > { %4901 = vadd.xlane.f32.xlu2 %v4900_v8 }
0x15ea   : > { %v4902_v7 = vpop.xlane.xlu2 %4901 }
0x15eb   : > { %v4903_v0 = vmul.f32 %v4902_v7, %v7511_v10 }
0x15ed   : > { %v4904_v16 = vadd.f32 1e-05, %v4903_v0 }
0x15ef   : > { %6099 = vrsqrt.f32 %v4904_v16  ;;  %vm4911_vm2 = vweird.f32 %v4904_v16 }
0x15f5   : > { %v6100_v31 = vpop.eup %6099 }
0x15f6   : > { %v4906_v22 = vmul.f32 %v6100_v31, %v4904_v16  ;;  %vm4912_vm1 = vweird.f32 %v6100_v31 }
0x15f7   : > { %vm4913_vm4 = vmor %vm4911_vm2, %vm4912_vm1 }
0x15f8   : > { %v4907_v53 = vmul.f32 %v6100_v31, %v4906_v22 }
0x15fa   : > { %v4908_v26 = vmul.f32 0.5, %v4907_v53 }
0x15fc   : > { %v4909_v58 = vsub.f32 1.5, %v4908_v26 }
0x15fe   : > { %v4910_v29 = vmul.f32 %v6100_v31, %v4909_v58 }
0x1600   : > { %v4914_v43 = vsel %vm4913_vm4, %v6100_v31, %v4910_v29 }
0x1601   : > { %v4915_v36 = vmul.f32 %v4914_v43, %v4898_v3  ;;  %v6024_v3 = vld [vmem:[%s8519_s13] ss:$0 sm:$0xff] }
0x1603   : > { %v4919_v19 = vmul.f32 %v6018_v30, %v4915_v36 }
0x1605   : > { %v4923_v37 = vadd.f32 %v6019_v35, %v4919_v19 }
0x1607   : > { %v4924_v38 = vpack.c.bf16 %v4923_v37, %v4923_v37 }
0x1609   : > { %5695 = vmatmul.msk.bf16.vlgmr.msrb.gmra.mxu1 %vm1200_vm0, %v4924_v38 }
0x1686   : > { %v4959_v41 = vpop.f32.mrf.mxu1 }
0x1687   : > { %v4960_v42 = vadd.f32 %v6020_v40, %v4959_v41 }
0x1689   : > { %v4963_v44 = vmax.f32 %v4960_v42, 0.0 }
0x168b   : > { %v4964_v46 = vpack.c.bf16 %v4963_v44, %v4963_v44 }
0x168d   : > { %5043 = vmatmul.bf16.vlgmr.msrb.gmra.mxu2 %v4964_v46 }
0x168e   : > { %v4961_v28 = vpop.f32.mrf.mxu1 }
0x1710   : > { %v5044_v2 = vpop.f32.mrf.mxu2 }
0x1711   : > { %v5045_v20 = vadd.f32 %v6021_v13, %v5044_v2 }
0x1713   : > { %v5048_v47 = vadd.f32 %v5045_v20, %v4923_v37 }
0x1715   : > { %v5053_v48 = vsel %vm1200_vm0, %v5048_v47, 0.0 }
0x1716   : > { %5054 = vadd.xlane.f32.xlu0 %v5053_v48 }
0x1718   : > { %v5046_v51 = vpop.f32.mrf.mxu2 }
0x1789   : > { %v5055_v34 = vpop.xlane.xlu0 %5054 }
0x178a   : > { %v5056_v52 = vmul.f32 %v5055_v34, %v7511_v10 }
0x178c   : > { %v5057_v54 = vsub.f32 %v5048_v47, %v5056_v52 }
0x178e   : > { %v5058_v17 = vmul.f32 %v5057_v54, %v5057_v54 }
0x1790   : > { %v5059_v45 = vsel %vm1200_vm0, %v5058_v17, 0.0 }
0x1791   : > { %5060 = vadd.xlane.f32.xlu1 %v5059_v45 }
0x1804   : > { %v5061_v15 = vpop.xlane.xlu1 %5060 }
0x1805   : > { %v5062_v5 = vmul.f32 %v5061_v15, %v7511_v10  ;;  %v6023_v10 = vld [vmem:[%s8509_s26 + $0x1] ss:$0 sm:$0xff] }
0x1807   : > { %v5063_v49 = vadd.f32 1e-05, %v5062_v5 }
0x1809   : > { %6101 = vrsqrt.f32 %v5063_v49  ;;  %vm5070_vm10 = vweird.f32 %v5063_v49 }
0x180f   : > { %v6102_v56 = vpop.eup %6101 }
0x1810   : > { %v5065_v57 = vmul.f32 %v6102_v56, %v5063_v49  ;;  %vm5071_vm5 = vweird.f32 %v6102_v56 }
0x1811   : > { %vm5072_vm11 = vmor %vm5070_vm10, %vm5071_vm5 }
0x1812   : > { %v5066_v32 = vmul.f32 %v6102_v56, %v5065_v57 }
0x1814   : > { %v5067_v59 = vmul.f32 0.5, %v5066_v32 }
0x1816   : > { %v5068_v4 = vsub.f32 1.5, %v5067_v59 }
0x1818   : > { %v5069_v21 = vmul.f32 %v6102_v56, %v5068_v4 }
0x181a   : > { %v5073_v25 = vsel %vm5072_vm11, %v6102_v56, %v5069_v21 }
0x181b   : > { %v5074_v61 = vmul.f32 %v5073_v25, %v5057_v54 }
0x181d   : > { %v5078_v62 = vmul.f32 %v6022_v60, %v5074_v61 }
0x181f   : > { %v5082_v63 = vadd.f32 %v6023_v10, %v5078_v62 }
0x1821   : > { %v5083_v1 = vpack.c.bf16 %v5082_v63, %v5082_v63 }
0x1823   : > { %5754 = vmatmul.msk.bf16.vlgmr.msra.gmra.mxu3 %vm1200_vm0, %v5083_v1 }
0x18a6   : > { %v5116_v6 = vpop.f32.mrf.mxu3 }
0x18a7   : > { %v5117_v8 = vadd.f32 %v6024_v3, %v5116_v6 }
0x18a9   : > { %5120 = vst [vmem:[%s1163_s1] sm:$0xff] %v5117_v8 }
0x18aa   : > { %6611 = shalt.err (!%p6608_p13)
}
0x18ab   : > { %5867 = dma.vmem_to_hbm [thread:$0]  (%p6950_p0), %s5135_s3, 128, %s5137_s14, %s5122_s2  }
0x18ae   : > { %v5118_v11 = vpop.f32.mrf.mxu3 }
0x18af PF: > { %s8520_s25 = sld [smem:[#allocation39_spill]]  ;;  %p8522_p1 = scmp.ge.s32.totalorder %s6682_s30, 2 }
0x18b1   : > { %p5920_p7 = pnand %p8522_p1, %p6958_p5 }
0x18b3   : > { %p5921_p10 = pneg %p5920_p7 }
0x18b5   : > { %s5148_s27 = sand.u32 1, %s8520_s25  }
0x18b6   : > { %s5149_s13 = scalar_lea.sflag [#allocation4], %s5148_s27 }
0x18b7   : > { %6665 = dma.done.wait (%p5921_p10), %s5149_s13, 128  }
0x18b8   : > { %6667 = vsyncadd (%p5921_p10), %s5149_s13, 4294967168  ;;  %s8523_s30 = sld [smem:[#allocation42_spill]]  ;;  %s8526_s7 = smov %s6674_s4 }
0x18b9   : > { %s8524_s6 = sld [smem:[#allocation40_spill]] }
0x18ba   : > { %s8525_s8 = sld [smem:[#allocation43_spill]] }
0x18be   : > { %p52_p6 = scmp.ge.s32.totalorder %s8523_s30, 4  }
0x18bf   : > { %s8527_s4 = smov %s8524_s6 }
0x18c0   :  { %54 = sbr.rel (!%p52_p6) target bundleno = 41 (0x29), region = 285 }
0x18c5   :  { %5155 = vsyncpa [#allocation3], 1 }
0x18c6   :  { %5157 = vsyncpa [#allocation3 + $0x1], 1 }
0x18c7   :  { %5158 = vsyncpa [#allocation6], 1 }
0x18c8   :  { %5160 = vsyncpa [#allocation6 + $0x1], 1 }
0x18c9   :  { %5161 = vsyncpa [#allocation9], 1 }
0x18ca   :  { %5163 = vsyncpa [#allocation9 + $0x1], 1 }
0x18cb   :  { %5164 = vsyncpa [#allocation12], 1 }
0x18cc   :  { %5165 = vsyncpa [#allocation15], 1 }
0x18cd   :  { %5166 = vsyncpa [#allocation18], 1 }
0x18ce   :  { %5167 = vsyncpa [#allocation21], 1 }
0x18cf   :  { %5168 = vsyncpa [#allocation24], 1 }
0x18d0   :  { %5169 = vsyncpa [#allocation27], 1 }
0x18d1   :  { %5170 = vsyncpa [#allocation4], 1 }
0x18d2   :  { %5172 = vsyncpa [#allocation4 + $0x1], 1 }

</bundles_post_ra>
